<compile_context>
chip_gen: v7x
topology: tpu7x:2x2x1
jax: 0.10.0
libtpu: 0.0.40
codegen_flags: <defaults>
</compile_context>

<pallas_src>
import numpy as np
import jax
import jax.numpy as jnp
from jax.experimental import pallas as pl
from jax.experimental.pallas import tpu as pltpu


# ----------------------- label branch kernel (run once) -------------------- #
def _label_branch_kernel(inp_ref, adj_ref, wg1_ref, wg2_ref, y_ref):
    # y2 = adj @ ( leaky_relu_0.2( adj @ (inp @ W_gc1) ) @ W_gc2 )
    adj = adj_ref[...]
    s1 = jnp.dot(inp_ref[...], wg1_ref[...], preferred_element_type=jnp.float32)
    y1 = jnp.dot(adj, s1, preferred_element_type=jnp.float32)
    y1 = jnp.where(y1 > 0, y1, 0.2 * y1)                       # nn.LeakyReLU(0.2)
    s2 = jnp.dot(y1, wg2_ref[...], preferred_element_type=jnp.float32)
    y_ref[...] = jnp.dot(adj, s2, preferred_element_type=jnp.float32)


# ------------------ drug branch + fusion kernel (gridded) ------------------ #
def _drug_fusion_kernel(x_ref, w1_ref, b1_ref, w2_ref, b2_ref, y2t_ref,
                        out_ref, acc_ref):
    # Single "arbitrary" grid axis over the (padded) 1500 hidden dim; k==0
    # zeroing precedes every accumulation because it is the only grid axis.
    k = pl.program_id(0)

    @pl.when(k == 0)
    def _():
        acc_ref[...] = jnp.zeros_like(acc_ref)

    # fc_g1 tile: h_k = relu(x @ W1[:, tile] + b1[tile])   (bf16 in, f32 acc)
    h = jnp.dot(x_ref[...], w1_ref[...],
                preferred_element_type=jnp.float32) + b1_ref[...]
    h = jnp.maximum(h, 0.0)                                    # nn.ReLU
    # nn.Dropout(p) is identity at inference.
    # fc_g2 partial sum: acc += h_k @ W2[tile, :]
    acc_ref[...] += jnp.dot(h.astype(w2_ref.dtype), w2_ref[...],
                            preferred_element_type=jnp.float32)

    @pl.when(k == pl.num_programs(0) - 1)
    def _():
        acc = acc_ref[...] + b2_ref[...]                       # fc_g2 bias, once
        # fusion: c = acc @ y2^T  with y2^T pre-materialized (N2, CP) bf16,
        # CP padded to 128 so the store is lane-dense (no masked vst).
        out_ref[...] = jnp.dot(acc.astype(y2t_ref.dtype), y2t_ref[...],
                               preferred_element_type=jnp.float32
                               ).astype(out_ref.dtype)


# ------------------------- one-time prepare / cache ------------------------ #
def prepare_mlgl_mp(inp, A, params, *, tile_k=512, class_pad=128):
    """Everything batch-independent: adj, label-branch y2, weight prep."""
    W_fc1, b_fc1 = params["W_fc1"], params["b_fc1"]   # (1500, in),  (1500,)
    W_fc2, b_fc2 = params["W_fc2"], params["b_fc2"]   # (1024, 1500), (1024,)
    W_gc1, W_gc2 = params["W_gc1"], params["W_gc2"]   # (in_ch,1024), (1024,1024)

    # gen_adj(A)  (tiny [C,C] op -> plain JAX glue, matches torch exactly)
    D = jnp.power(A.sum(1), -0.5)
    Dm = jnp.diag(D)
    adj = jnp.matmul(jnp.matmul(A, Dm).T, Dm)

    C = A.shape[0]
    H = W_fc1.shape[0]            # 1500
    fc1_in = W_fc1.shape[1]
    N2 = W_fc2.shape[0]           # 1024

    vmem = pl.BlockSpec(memory_space=pltpu.MemorySpace.VMEM)
    # Label branch: batch-independent, computed exactly once here (f32).
    y2 = pl.pallas_call(
        _label_branch_kernel,
        out_shape=jax.ShapeDtypeStruct((C, N2), jnp.float32),
        in_specs=[vmem] * 4,
        out_specs=vmem,
        compiler_params=pltpu.CompilerParams(vmem_limit_bytes=32 * 1024 * 1024),
    )(inp, adj, W_gc1, W_gc2)

    HP = pl.cdiv(H, tile_k) * tile_k          # 1500 -> 1536
    CP = pl.cdiv(C, class_pad) * class_pad    # 8    -> 128

    # bf16 weight storage, f32 accumulation (halves HBM traffic).  Zero pad of
    # the hidden dim is exact: relu(0 + 0) = 0 and padded W2 rows are 0.
    W1 = jnp.pad(W_fc1.T, ((0, 0), (0, HP - H))).astype(jnp.bfloat16)  # (in, HP)
    b1 = jnp.pad(b_fc1, (0, HP - H)).reshape(1, HP).astype(jnp.float32)
    W2 = jnp.pad(W_fc2.T, ((0, HP - H), (0, 0))).astype(jnp.bfloat16)  # (HP, N2)
    b2 = b_fc2.reshape(1, N2).astype(jnp.float32)
    y2t = jnp.pad(y2.T, ((0, 0), (0, CP - C))).astype(jnp.bfloat16)    # (N2, CP)

    return {
        "W1": W1, "b1": b1, "W2": W2, "b2": b2, "y2t": y2t,
        "tile_k": tile_k, "HP": HP, "CP": CP, "C": C, "N2": N2,
        "fc1_in": fc1_in,
    }


# ------------------------------ per-batch call ------------------------------ #
def mlgl_mp_forward(x_pooled, prepped):
    """x_pooled: [B, num_features_xd*10*2]; prepped: output of prepare_mlgl_mp."""
    W1, b1 = prepped["W1"], prepped["b1"]
    W2, b2 = prepped["W2"], prepped["b2"]
    y2t = prepped["y2t"]
    tile_k, HP, CP = prepped["tile_k"], prepped["HP"], prepped["CP"]
    C, N2, fc1_in = prepped["C"], prepped["N2"], prepped["fc1_in"]

    B = x_pooled.shape[0]
    KT = HP // tile_k
    xb = x_pooled.astype(jnp.bfloat16)

    out = pl.pallas_call(
        _drug_fusion_kernel,
        out_shape=jax.ShapeDtypeStruct((B, CP), jnp.float32),
        grid_spec=pltpu.PrefetchScalarGridSpec(
            num_scalar_prefetch=0,
            grid=(KT,),
            in_specs=[
                pl.BlockSpec((B, fc1_in), lambda k: (0, 0)),       # x (resident)
                pl.BlockSpec((fc1_in, tile_k), lambda k: (0, k)),  # W1 tile
                pl.BlockSpec((1, tile_k), lambda k: (0, k)),       # b1 tile
                pl.BlockSpec((tile_k, N2), lambda k: (k, 0)),      # W2 tile
                pl.BlockSpec((1, N2), lambda k: (0, 0)),           # b2 (resident)
                pl.BlockSpec((N2, CP), lambda k: (0, 0)),          # y2^T (resident)
            ],
            out_specs=pl.BlockSpec((B, CP), lambda k: (0, 0)),     # lane-dense
            scratch_shapes=[pltpu.VMEM((B, N2), jnp.float32)],     # fc_g2 acc
        ),
        compiler_params=pltpu.CompilerParams(
            dimension_semantics=("arbitrary",),
            vmem_limit_bytes=32 * 1024 * 1024),
    )(xb, W1, b1, W2, b2, y2t)

    return out[:, :C]      # strip the class-dim padding


# ----------------------------- pure-JAX reference -------------------------- #
def mlgl_mp_reference(x_pooled, inp, A, params):
    hi = jax.lax.Precision.HIGHEST
    D = jnp.power(A.sum(1), -0.5)
    Dm = jnp.diag(D)
    adj = jnp.matmul(jnp.matmul(A, Dm, precision=hi).T, Dm, precision=hi)

    h = jnp.dot(x_pooled, params["W_fc1"].T, precision=hi) + params["b_fc1"]
    h = jnp.maximum(h, 0.0)
    h = jnp.dot(h, params["W_fc2"].T, precision=hi) + params["b_fc2"]

    s1 = jnp.dot(inp, params["W_gc1"], precision=hi)
    y1 = jnp.dot(adj, s1, precision=hi)
    y1 = jnp.where(y1 > 0, y1, 0.2 * y1)
    s2 = jnp.dot(y1, params["W_gc2"], precision=hi)
    y2 = jnp.dot(adj, s2, precision=hi)
    return jnp.dot(h, y2.T, precision=hi)


# ----------------------------- setup helpers ------------------------------- #
def gen_A_synthetic(num_classes, t, seed=0):
    """Same math as gen_A but with in-script synthetic co-occurrence stats."""
    rng = np.random.default_rng(seed)
    nums = rng.integers(5, 50, size=(num_classes,)).astype(np.float64)
    _adj = rng.integers(0, 20, size=(num_classes, num_classes)).astype(np.float64)
    _nums = nums[:, np.newaxis]
    _adj = _adj / _nums
    _adj[_adj < t] = 0
    _adj[_adj >= t] = 1
    _adj = _adj * 0.2 / (_adj.sum(0, keepdims=True) + 1e-06)
    _adj = _adj + np.identity(num_classes, dtype=np.float64)
    return _adj.astype(np.float32)


def init_params(key, num_features_xd, in_channel):
    def u(k, shape, bound):
        return jax.random.uniform(k, shape, jnp.float32, -bound, bound)

    ks = jax.random.split(key, 6)
    fc1_in = num_features_xd * 10 * 2
    return {
        # nn.Linear default init: uniform(+-1/sqrt(fan_in))
        "W_fc1": u(ks[0], (1500, fc1_in), 1.0 / np.sqrt(fc1_in)),
        "b_fc1": u(ks[1], (1500,), 1.0 / np.sqrt(fc1_in)),
        "W_fc2": u(ks[2], (1024, 1500), 1.0 / np.sqrt(1500)),
        "b_fc2": u(ks[3], (1024,), 1.0 / np.sqrt(1500)),
        # GraphConvolution: uniform(-stdv, stdv), stdv = 1/sqrt(out_features)
        "W_gc1": u(ks[4], (in_channel, 1024), 1.0 / np.sqrt(1024)),
        "W_gc2": u(ks[5], (1024, 1024), 1.0 / np.sqrt(1024)),
    }


# --------------------------------- main ------------------------------------ #
if __name__ == "__main__":
    num_classes = 8
    in_channel = 32          # (module default 300, shrunk for the demo)
    num_features_xd = 8      # (module default 78, shrunk for the demo)
    batch = 2
    t = 0.4

    key = jax.random.PRNGKey(0)
    k_param, k_x, k_inp = jax.random.split(key, 3)

    params = init_params(k_param, num_features_xd, in_channel)
    A = jnp.asarray(gen_A_synthetic(num_classes, t), jnp.float32)

    # x_pooled stands in for cat([gmp(x,batch), gap(x,batch)]) of the GNN branch.
    x_pooled = jax.random.normal(k_x, (batch, num_features_xd * 10 * 2), jnp.float32)
    # inp = label word embeddings, shape [num_classes, in_channel]
    inp = jax.random.normal(k_inp, (num_classes, in_channel), jnp.float32)

    # One-time prepare (label branch + weight prep) — cached across batches.
    prepped = prepare_mlgl_mp(inp, A, params)
    jax.block_until_ready(prepped["y2t"])

    # Per-batch hot path: one pallas_call.
    c = mlgl_mp_forward(x_pooled, prepped)
    c = jax.block_until_ready(c)

    c_ref = jax.block_until_ready(mlgl_mp_reference(x_pooled, inp, A, params))
    # bf16 weight/activation storage (f32 accumulation) vs f32 HIGHEST reference.
    np.testing.assert_allclose(np.asarray(c), np.asarray(c_ref), rtol=2e-2, atol=2e-2)

    print("KERNEL_OK")
</pallas_src>

<mosaic_0001>
module attributes {stable_mosaic.version = 11 : i64} {
  func.func @_label_branch_kernel(%arg0: memref<8x32xf32, #tpu.memory_space<vmem>>, %arg1: memref<8x8xf32, #tpu.memory_space<vmem>>, %arg2: memref<32x1024xf32, #tpu.memory_space<vmem>>, %arg3: memref<1024x1024xf32, #tpu.memory_space<vmem>>, %arg4: memref<8x1024xf32, #tpu.memory_space<vmem>>) attributes {dimension_semantics = [], scalar_prefetch = 0 : i64, scratch_operands = 0 : i64, tpu.core_type = #tpu.core_type<tc>} {
    %c0 = arith.constant 0 : index
    %c0_0 = arith.constant 0 : index
    %0 = vector.load %arg1[%c0, %c0_0] : memref<8x8xf32, #tpu.memory_space<vmem>>, vector<8x8xf32>
    %c0_1 = arith.constant 0 : index
    %c0_2 = arith.constant 0 : index
    %1 = vector.load %arg0[%c0_1, %c0_2] : memref<8x32xf32, #tpu.memory_space<vmem>>, vector<8x32xf32>
    %c0_3 = arith.constant 0 : index
    %c0_4 = arith.constant 0 : index
    %2 = vector.load %arg2[%c0_3, %c0_4] : memref<32x1024xf32, #tpu.memory_space<vmem>>, vector<32x1024xf32>
    %cst = arith.constant dense<0.000000e+00> : vector<8x1024xf32>
    %3 = tpu.matmul %1, %2, %cst {dimension_numbers = #tpu.dot_dimension_numbers<[1], [0], [0], [1], [0, 0, 1, 1], [], []>} : vector<8x32xf32>, vector<32x1024xf32>, vector<8x1024xf32> -> vector<8x1024xf32>
    %cst_5 = arith.constant dense<0.000000e+00> : vector<8x1024xf32>
    %4 = tpu.matmul %0, %3, %cst_5 {dimension_numbers = #tpu.dot_dimension_numbers<[1], [0], [0], [1], [0, 0, 1, 1], [], []>} : vector<8x8xf32>, vector<8x1024xf32>, vector<8x1024xf32> -> vector<8x1024xf32>
    %cst_6 = arith.constant 0.000000e+00 : f32
    %5 = vector.broadcast %cst_6 : f32 to vector<8x1024xf32>
    %6 = arith.cmpf ogt, %4, %5 : vector<8x1024xf32>
    %cst_7 = arith.constant 2.000000e-01 : f32
    %7 = vector.broadcast %cst_7 : f32 to vector<8x1024xf32>
    %8 = arith.mulf %7, %4 : vector<8x1024xf32>
    %9 = arith.select %6, %4, %8 : vector<8x1024xi1>, vector<8x1024xf32>
    %c0_8 = arith.constant 0 : index
    %c0_9 = arith.constant 0 : index
    %10 = vector.load %arg3[%c0_8, %c0_9] : memref<1024x1024xf32, #tpu.memory_space<vmem>>, vector<1024x1024xf32>
    %cst_10 = arith.constant dense<0.000000e+00> : vector<8x1024xf32>
    %11 = tpu.matmul %9, %10, %cst_10 {dimension_numbers = #tpu.dot_dimension_numbers<[1], [0], [0], [1], [0, 0, 1, 1], [], []>} : vector<8x1024xf32>, vector<1024x1024xf32>, vector<8x1024xf32> -> vector<8x1024xf32>
    %cst_11 = arith.constant dense<0.000000e+00> : vector<8x1024xf32>
    %12 = tpu.matmul %0, %11, %cst_11 {dimension_numbers = #tpu.dot_dimension_numbers<[1], [0], [0], [1], [0, 0, 1, 1], [], []>} : vector<8x8xf32>, vector<8x1024xf32>, vector<8x1024xf32> -> vector<8x1024xf32>
    %c0_12 = arith.constant 0 : index
    %c0_13 = arith.constant 0 : index
    %13 = vector.load %arg4[%c0_12, %c0_13] : memref<8x1024xf32, #tpu.memory_space<vmem>>, vector<8x1024xf32>
    tpu.vector_store %arg4[%c0_12, %c0_13], %12 {strides = array<i32>} : memref<8x1024xf32, #tpu.memory_space<vmem>>, vector<8x1024xf32>,
    return
  }
}

</mosaic_0001>

<bundles_post_ra>
// kernel: tpu_custom_call.1
= control target key start
LH: loop header
LB: loop body
LE: loop exit
PB: predicated region body
PF: predicated region fallthrough
CT: control target
= control target key end

     0   :  { %9 = vsyncpa [#allocation3], 0  ;;  %s4598_s0 = inlined_call_operand.hbm [shape: f32[8,32], index: 0, kind: input, shape index: {}]   ;;  %s4599_s1 = inlined_call_operand.hbm [shape: f32[8,8], index: 1, kind: input, shape index: {}]   ;;  %s4600_s2 = inlined_call_operand.hbm [shape: f32[32,1024], index: 2, kind: input, shape index: {}]   ;;  %s4601_s3 = inlined_call_operand.hbm [shape: f32[1024,1024], index: 3, kind: input, shape index: {}]   ;;  %s4602_s4 = inlined_call_operand.hbm [shape: f32[8,1024], index: 4, kind: output, shape index: {}]  }
   0x1   :  { %10 = vsyncpa [#allocation6], 0 }
   0x2   :  { %11 = vsyncpa [#allocation9], 0 }
   0x3   :  { %12 = vsyncpa [#allocation4], 0  ;;  %s4391_s15 = smov [#allocation5]   ;;  %s4392_s17 = smov [#allocation2]  }
   0x4   :  { %s29_s16 = sshll.u32 %s4391_s15, 4  ;;  %s19_s18 = sshll.u32 %s4392_s17, 4  ;;  %s30_s16 = int_to_ptr.vmem [resolvable:$true] %s29_s16  ;;  %s20_s18 = int_to_ptr.vmem [resolvable:$true] %s19_s18 }
   0x5   :  { %s4273_s21 = scalar_lea.hbm %s4599_s1, 128 }
   0x6   :  { %p4274_p0 = scmp.ne.s32.totalorder %s4599_s1, %s4273_s21  ;;  %p4277_p1 = scmp.lt.u32.totalorder %s4273_s21, %s4599_s1 }
   0x8   :  { %p4279_p2 = pnand %p4277_p1, %p4274_p0 }
   0xa   :  { %4282 = shalt.err (!%p4279_p2)
}
   0xb   :  { %s4283_s26 = scalar_lea.vmem %s30_s16, 128  ;;  %p4288_p4 = scmp.lt.s32.totalorder %s30_s16, %s30_s16 }
   0xc   :  { %p4284_p3 = scmp.ne.s32.totalorder %s30_s16, %s4283_s26  ;;  %p4289_p5 = scmp.lt.s32.totalorder %s4283_s26, %s4283_s26 }
   0xe   :  { %p4290_p6 = por %p4289_p5, %p4288_p4 }
  0x10   :  { %p4291_p7 = pnand %p4290_p6, %p4284_p3 }
  0x12   :  { %4294 = shalt.err (!%p4291_p7)
}
  0x13   :  { %32 = dma.hbm_to_vmem [thread:$0]  %s4599_s1, 128, %s30_s16, [#allocation6]  }
  0x14   :  { %s4295_s5 = scalar_lea.hbm %s4598_s0, 128 }
  0x15   :  { %p4296_p8 = scmp.ne.s32.totalorder %s4598_s0, %s4295_s5  ;;  %p4299_p9 = scmp.lt.u32.totalorder %s4295_s5, %s4598_s0 }
  0x17   :  { %p4301_p10 = pnand %p4299_p9, %p4296_p8 }
  0x19   :  { %4304 = shalt.err (!%p4301_p10)
}
  0x1a   :  { %s4305_s10 = scalar_lea.vmem %s20_s18, 128  ;;  %p4310_p12 = scmp.lt.s32.totalorder %s20_s18, %s20_s18 }
  0x1b   :  { %p4306_p11 = scmp.ne.s32.totalorder %s20_s18, %s4305_s10  ;;  %p4311_p13 = scmp.lt.s32.totalorder %s4305_s10, %s4305_s10 }
  0x1d   :  { %p4312_p0 = por %p4311_p13, %p4310_p12 }
  0x1f   :  { %p4313_p1 = pnand %p4312_p0, %p4306_p11 }
  0x21   :  { %4316 = shalt.err (!%p4313_p1)
}
  0x22   :  { %22 = dma.hbm_to_vmem [thread:$0]  %s4598_s0, 128, %s20_s18, [#allocation3]  }
  0x23   :  { %s4393_s12 = smov [#allocation7]   ;;  %s4317_s16 = scalar_lea.hbm %s4600_s2, 4096 }
  0x24   :  { %s38_s13 = sshll.u32 %s4393_s12, 4  ;;  %p4318_p2 = scmp.ne.s32.totalorder %s4600_s2, %s4317_s16  ;;  %s39_s13 = int_to_ptr.vmem [resolvable:$true] %s38_s13 }
  0x25   :  { %p4321_p3 = scmp.lt.u32.totalorder %s4317_s16, %s4600_s2 }
  0x27   :  { %p4323_p4 = pnand %p4321_p3, %p4318_p2 }
  0x29   :  { %4326 = shalt.err (!%p4323_p4)
}
  0x2a   :  { %s4327_s22 = scalar_lea.vmem %s39_s13, 4096  ;;  %p4332_p6 = scmp.lt.s32.totalorder %s39_s13, %s39_s13 }
  0x2b   :  { %p4328_p5 = scmp.ne.s32.totalorder %s39_s13, %s4327_s22  ;;  %p4333_p7 = scmp.lt.s32.totalorder %s4327_s22, %s4327_s22 }
  0x2d   :  { %p4334_p8 = por %p4333_p7, %p4332_p6 }
  0x2f   :  { %p4335_p9 = pnand %p4334_p8, %p4328_p5 }
  0x31   :  { %4338 = shalt.err (!%p4335_p9)
}
  0x32   :  { %s4394_s0 = smov 1024   ;;  %s4395_s18 = smov 64  }
  0x33   :  { %44 = dma.hbm_to_vmem [thread:$0]  %s4600_s2, 4096, %s39_s13, [#allocation6], %s4394_s0, %s4394_s0, %s4395_s18  }
  0x34   :  { %s4396_s25 = smov [#allocation8]   ;;  %s4339_s29 = scalar_lea.hbm %s4601_s3, 131072 }
  0x35   :  { %s50_s26 = sshll.u32 %s4396_s25, 4  ;;  %p4340_p10 = scmp.ne.s32.totalorder %s4601_s3, %s4339_s29  ;;  %s51_s26 = int_to_ptr.vmem [resolvable:$true] %s50_s26 }
  0x36   :  { %p4343_p11 = scmp.lt.u32.totalorder %s4339_s29, %s4601_s3 }
  0x38   :  { %p4345_p12 = pnand %p4343_p11, %p4340_p10 }
  0x3a   :  { %4348 = shalt.err (!%p4345_p12)
}
  0x3b   :  { %s4349_s8 = scalar_lea.vmem %s51_s26, 131072  ;;  %p4354_p0 = scmp.lt.s32.totalorder %s51_s26, %s51_s26 }
  0x3c   :  { %p4350_p13 = scmp.ne.s32.totalorder %s51_s26, %s4349_s8  ;;  %p4355_p1 = scmp.lt.s32.totalorder %s4349_s8, %s4349_s8 }
  0x3e   :  { %p4356_p2 = por %p4355_p1, %p4354_p0 }
  0x40   :  { %p4357_p3 = pnand %p4356_p2, %p4350_p13 }
  0x42   :  { %4360 = shalt.err (!%p4357_p3)
}
  0x43   :  { %56 = dma.hbm_to_vmem [thread:$0]  %s4601_s3, 131072, %s51_s26, [#allocation9], %s4394_s0, %s4394_s0, %s4395_s18  }
  0x44   :  { %4383 = dma.done.wait [#allocation3], 128  }
  0x45   :  { %4384 = vsyncadd [#allocation3], 4294967168 }
  0x46   :  { %4385 = dma.done.wait [#allocation6], 4224  }
  0x47   :  { %4386 = vsyncadd [#allocation6], 4294963072 }
  0x48   :  { %4387 = dma.done.wait [#allocation9], 131072  }
  0x49   :  { %4388 = vsyncadd [#allocation9], 4294836224  ;;  %v4397_v0 = vmov 0.0   ;;  %v72_v1 = vld [vmem:[#allocation7 + $0x8] sm:$0xff]  ;;  %v71_v3 = vld [vmem:[#allocation7] sm:$0xff]  ;;  %vm103_vm0 = vcmask 261120  }
  0x4a   :  { %171 = vmatprep.mubr.f32.mxu0 %v4397_v0  ;;  %242 = vmatprep.mubr.f32.mxu1 %v4397_v0  ;;  %v80_v2 = vld [vmem:[#allocation7 + $0x48] sm:$0xff]  ;;  %v79_v5 = vld [vmem:[#allocation7 + $0x40] sm:$0xff]  ;;  %v74_v12 = vld [vmem:[#allocation7 + $0x18] sm:$0xff]  ;;  %vm391_vm1 = vcmask 64512   ;;  %s4398_s3 = smov [#allocation10]  }
  0x4b   :  { %v3184_v4 = vpack.c.bf16 %v80_v2, %v72_v1  ;;  %v88_v6 = vld [vmem:[#allocation7 + $0x88] sm:$0xff]  ;;  %v3186_v8 = vpack.c.bf16 %v79_v5, %v71_v3  ;;  %v87_v10 = vld [vmem:[#allocation7 + $0x80] sm:$0xff]  ;;  %v82_v13 = vld [vmem:[#allocation7 + $0x58] sm:$0xff]  ;;  %s3161_s10 = sshll.u32 %s4398_s3, 4  ;;  %s3162_s10 = int_to_ptr.vmem [resolvable:$true] %s3161_s10 }
  0x4c   :  { %v96_v7 = vld [vmem:[#allocation7 + $0xc8] sm:$0xff]  ;;  %v95_v11 = vld [vmem:[#allocation7 + $0xc0] sm:$0xff]  ;;  %v73_v14 = vld [vmem:[#allocation7 + $0x10] sm:$0xff]  ;;  %v3192_v16 = vpack.c.bf16 %v82_v13, %v74_v12  ;;  %s4361_s1 = scalar_lea.vmem %s3162_s10, 1024  ;;  %p4366_p5 = scmp.lt.s32.totalorder %s3162_s10, %s3162_s10 }
  0x4d   :  { %v3188_v9 = vpack.c.bf16 %v96_v7, %v88_v6  ;;  %3185 = vmatprep.subr.bf16.mxu0 %v3184_v4  ;;  %v3190_v15 = vpack.c.bf16 %v95_v11, %v87_v10  ;;  %v81_v17 = vld [vmem:[#allocation7 + $0x50] sm:$0xff]  ;;  %v90_v18 = vld [vmem:[#allocation7 + $0x98] sm:$0xff]  ;;  %v76_v24 = vld [vmem:[#allocation7 + $0x28] sm:$0xff]  ;;  %p4362_p4 = scmp.ne.s32.totalorder %s3162_s10, %s4361_s1  ;;  %p4367_p6 = scmp.lt.s32.totalorder %s4361_s1, %s4361_s1 }
  0x4e   :  { %3187 = vmatpush1.bf16.msra.mxu0 %v3186_v8  ;;  %v98_v19 = vld [vmem:[#allocation7 + $0xd8] sm:$0xff]  ;;  %v3194_v20 = vpack.c.bf16 %v81_v17, %v73_v14  ;;  %v89_v22 = vld [vmem:[#allocation7 + $0x90] sm:$0xff]  ;;  %3193 = vmatprep.subr.bf16.mxu1 %v3192_v16  ;;  %v84_v26 = vld [vmem:[#allocation7 + $0x68] sm:$0xff] }
  0x4f   :  { %3189 = vmatprep.subr.bf16.mxu0 %v3188_v9  ;;  %v3196_v21 = vpack.c.bf16 %v98_v19, %v90_v18  ;;  %v97_v23 = vld [vmem:[#allocation7 + $0xd0] sm:$0xff]  ;;  %v75_v27 = vld [vmem:[#allocation7 + $0x20] sm:$0xff]  ;;  %v3200_v30 = vpack.c.bf16 %v84_v26, %v76_v24  ;;  %v92_v31 = vld [vmem:[#allocation7 + $0xa8] sm:$0xff]  ;;  %p4368_p7 = por %p4367_p6, %p4366_p5 }
  0x50   :  { %v70_v25 = vld [vmem:[#allocation2] sm:$0xff]  ;;  %v83_v28 = vld [vmem:[#allocation7 + $0x60] sm:$0xff]  ;;  %3195 = vmatpush1.bf16.msra.mxu1 %v3194_v20  ;;  %v3198_v29 = vpack.c.bf16 %v97_v23, %v89_v22  ;;  %v100_v32 = vld [vmem:[#allocation7 + $0xe8] sm:$0xff] }
  0x51   :  { %v91_v33 = vld [vmem:[#allocation7 + $0xa0] sm:$0xff]  ;;  %3197 = vmatprep.subr.bf16.mxu1 %v3196_v21  ;;  %v3202_v34 = vpack.c.bf16 %v83_v28, %v75_v27  ;;  %v78_v36 = vld [vmem:[#allocation7 + $0x38] sm:$0xff]  ;;  %v3204_v38 = vpack.c.bf16 %v100_v32, %v92_v31  ;;  %v77_v40 = vld [vmem:[#allocation7 + $0x30] sm:$0xff]  ;;  %p4369_p8 = pnand %p4368_p7, %p4362_p4 }
  0x52   :  { %3191 = vmatpush1.bf16.msra.mxu0 %v3190_v15  ;;  %v99_v35 = vld [vmem:[#allocation7 + $0xe0] sm:$0xff]  ;;  %v86_v37 = vld [vmem:[#allocation7 + $0x78] sm:$0xff]  ;;  %v85_v41 = vld [vmem:[#allocation7 + $0x70] sm:$0xff] }
  0x53   :  { %3201 = vmatprep.subr.bf16.mxu0 %v3200_v30  ;;  %v3208_v39 = vpack.c.bf16 %v86_v37, %v78_v36  ;;  %v94_v42 = vld [vmem:[#allocation7 + $0xb8] sm:$0xff]  ;;  %v3210_v44 = vpack.c.bf16 %v85_v41, %v77_v40  ;;  %v3206_v45 = vpack.c.bf16 %v99_v35, %v91_v33  ;;  %v93_v47 = vld [vmem:[#allocation7 + $0xb0] sm:$0xff]  ;;  %v704_v55 = vld [vmem:[#allocation8 + $0x8] sm:$0xff] }
  0x54   :  { %v102_v43 = vld [vmem:[#allocation7 + $0xf8] sm:$0xff]  ;;  %3199 = vmatpush1.bf16.msra.mxu1 %v3198_v29  ;;  %v101_v48 = vld [vmem:[#allocation7 + $0xf0] sm:$0xff]  ;;  %v712_v56 = vld [vmem:[#allocation8 + $0x48] sm:$0xff] }
  0x55   :  { %3172 = vmatmul.mubr.msk.f32.vlgmr.msra.gmra.mrb[0].mxu0 %vm103_vm0, %v70_v25  ;;  %v3212_v46 = vpack.c.bf16 %v102_v43, %v94_v42  ;;  %3209 = vmatprep.subr.bf16.mxu1 %v3208_v39  ;;  %v3214_v49 = vpack.c.bf16 %v101_v48, %v93_v47  ;;  %v69_v52 = vld [vmem:[#allocation5] sm:$0xff]  ;;  %v703_v57 = vld [vmem:[#allocation8] sm:$0xff]  ;;  %v720_v59 = vld [vmem:[#allocation8 + $0x88] sm:$0xff]  ;;  %v3216_v62 = vpack.c.bf16 %v712_v56, %v704_v55 }
  0x56   :  { %3203 = vmatpush1.bf16.msra.mxu0 %v3202_v34  ;;  %313 = vmatprep.mubr.f32.mxu0 %v4397_v0  ;;  %v711_v58 = vld [vmem:[#allocation8 + $0x40] sm:$0xff]  ;;  %v728_v60 = vld [vmem:[#allocation8 + $0xc8] sm:$0xff]  ;;  %v706_v63 = vld [vmem:[#allocation8 + $0x18] sm:$0xff] }
  0x57   :  { %3205 = vmatprep.subr.bf16.mxu0 %v3204_v38  ;;  %3173 = vmatmul.mubr.msk.f32.vlgmr.msra.gmra.mrb[0].mxu1 %vm103_vm0, %v70_v25  ;;  %v714_v1 = vld [vmem:[#allocation8 + $0x58] sm:$0xff]  ;;  %v3218_v3 = vpack.c.bf16 %v711_v58, %v703_v57  ;;  %v705_v4 = vld [vmem:[#allocation8 + $0x10] sm:$0xff]  ;;  %v3220_v7 = vpack.c.bf16 %v728_v60, %v720_v59  ;;  %v719_v9 = vld [vmem:[#allocation8 + $0x80] sm:$0xff] }
  0x58   :  { %3211 = vmatpush1.bf16.msra.mxu1 %v3210_v44  ;;  %384 = vmatprep.mubr.f32.mxu1 %v4397_v0  ;;  %v713_v5 = vld [vmem:[#allocation8 + $0x50] sm:$0xff]  ;;  %v722_v6 = vld [vmem:[#allocation8 + $0x98] sm:$0xff]  ;;  %v727_v10 = vld [vmem:[#allocation8 + $0xc0] sm:$0xff]  ;;  %v3472_v12 = vpack.c.bf16 %v714_v1, %v706_v63 }
  0x59   :  { %3213 = vmatprep.subr.bf16.mxu1 %v3212_v46  ;;  %v730_v8 = vld [vmem:[#allocation8 + $0xd8] sm:$0xff]  ;;  %v736_v13 = vld [vmem:[#allocation8 + $0x108] sm:$0xff]  ;;  %v3474_v16 = vpack.c.bf16 %v713_v5, %v705_v4  ;;  %v3222_v18 = vpack.c.bf16 %v727_v10, %v719_v9  ;;  %v721_v19 = vld [vmem:[#allocation8 + $0x90] sm:$0xff] }
  0x5a   :  { %3207 = vmatpush1.bf16.msra.mxu0 %v3206_v45  ;;  %v744_v14 = vld [vmem:[#allocation8 + $0x148] sm:$0xff]  ;;  %v3476_v17 = vpack.c.bf16 %v730_v8, %v722_v6  ;;  %v729_v20 = vld [vmem:[#allocation8 + $0xd0] sm:$0xff]  ;;  %v738_v21 = vld [vmem:[#allocation8 + $0x118] sm:$0xff] }
  0x5b   :  { %v3224_v22 = vpack.c.bf16 %v744_v14, %v736_v13  ;;  %v746_v23 = vld [vmem:[#allocation8 + $0x158] sm:$0xff]  ;;  %v735_v24 = vld [vmem:[#allocation8 + $0x100] sm:$0xff]  ;;  %v752_v26 = vld [vmem:[#allocation8 + $0x188] sm:$0xff]  ;;  %v3478_v28 = vpack.c.bf16 %v729_v20, %v721_v19 }
  0x5c   :  { %3215 = vmatpush1.bf16.msra.mxu1 %v3214_v49  ;;  %v760_v27 = vld [vmem:[#allocation8 + $0x1c8] sm:$0xff]  ;;  %v3480_v29 = vpack.c.bf16 %v746_v23, %v738_v21  ;;  %v737_v31 = vld [vmem:[#allocation8 + $0x110] sm:$0xff]  ;;  %v754_v33 = vld [vmem:[#allocation8 + $0x198] sm:$0xff] }
  0x5d   :  { %3174 = vmatmul.mubr.msk.f32.vlgmr.msra.gmra.mrb[2].mxu0 %vm103_vm0, %v70_v25  ;;  %v745_v32 = vld [vmem:[#allocation8 + $0x150] sm:$0xff]  ;;  %v3228_v34 = vpack.c.bf16 %v760_v27, %v752_v26  ;;  %v762_v35 = vld [vmem:[#allocation8 + $0x1d8] sm:$0xff]  ;;  %v751_v36 = vld [vmem:[#allocation8 + $0x180] sm:$0xff] }
  0x5e   :  { %459 = vmatprep.mubr.f32.mxu0 %v4397_v0  ;;  %v759_v37 = vld [vmem:[#allocation8 + $0x1c0] sm:$0xff]  ;;  %v768_v38 = vld [vmem:[#allocation8 + $0x208] sm:$0xff]  ;;  %v3482_v40 = vpack.c.bf16 %v745_v32, %v737_v31  ;;  %v3484_v41 = vpack.c.bf16 %v762_v35, %v754_v33  ;;  %v753_v43 = vld [vmem:[#allocation8 + $0x190] sm:$0xff] }
  0x5f   :  { %3175 = vmatmul.mubr.msk.f32.vlgmr.msra.gmra.mrb[2].mxu1 %vm103_vm0, %v70_v25  ;;  %v743_v25 = vld [vmem:[#allocation8 + $0x140] sm:$0xff]  ;;  %v776_v39 = vld [vmem:[#allocation8 + $0x248] sm:$0xff]  ;;  %v3230_v42 = vpack.c.bf16 %v759_v37, %v751_v36  ;;  %v761_v44 = vld [vmem:[#allocation8 + $0x1d0] sm:$0xff] }
  0x60   :  { %530 = vmatprep.mubr.f32.mxu1 %v4397_v0  ;;  %v3226_v30 = vpack.c.bf16 %v743_v25, %v735_v24  ;;  %v770_v45 = vld [vmem:[#allocation8 + $0x218] sm:$0xff]  ;;  %v3232_v46 = vpack.c.bf16 %v776_v39, %v768_v38  ;;  %v767_v48 = vld [vmem:[#allocation8 + $0x200] sm:$0xff]  ;;  %v769_v55 = vld [vmem:[#allocation8 + $0x210] sm:$0xff] }
  0x61   :  { %v778_v47 = vld [vmem:[#allocation8 + $0x258] sm:$0xff]  ;;  %v775_v49 = vld [vmem:[#allocation8 + $0x240] sm:$0xff]  ;;  %v777_v56 = vld [vmem:[#allocation8 + $0x250] sm:$0xff] }
  0x62   :  { %v786_v57 = vld [vmem:[#allocation8 + $0x298] sm:$0xff]  ;;  %v783_v60 = vld [vmem:[#allocation8 + $0x280] sm:$0xff]  ;;  %v808_v63 = vld [vmem:[#allocation8 + $0x348] sm:$0xff]  ;;  %v3490_v1 = vpack.c.bf16 %v777_v56, %v769_v55 }
  0x63   :  { %v794_v59 = vld [vmem:[#allocation8 + $0x2d8] sm:$0xff]  ;;  %v785_v4 = vld [vmem:[#allocation8 + $0x290] sm:$0xff]  ;;  %v799_v9 = vld [vmem:[#allocation8 + $0x300] sm:$0xff] }
  0x64   :  { %v793_v5 = vld [vmem:[#allocation8 + $0x2d0] sm:$0xff]  ;;  %v802_v6 = vld [vmem:[#allocation8 + $0x318] sm:$0xff]  ;;  %v807_v10 = vld [vmem:[#allocation8 + $0x340] sm:$0xff] }
  0x65   :  { %v810_v8 = vld [vmem:[#allocation8 + $0x358] sm:$0xff]  ;;  %v3494_v13 = vpack.c.bf16 %v793_v5, %v785_v4  ;;  %v815_v21 = vld [vmem:[#allocation8 + $0x380] sm:$0xff]  ;;  %v832_v23 = vld [vmem:[#allocation8 + $0x408] sm:$0xff] }
  0x66   :  { %v3496_v14 = vpack.c.bf16 %v810_v8, %v802_v6  ;;  %v826_v20 = vld [vmem:[#allocation8 + $0x3d8] sm:$0xff]  ;;  %v840_v24 = vld [vmem:[#allocation8 + $0x448] sm:$0xff]  ;;  %v831_v33 = vld [vmem:[#allocation8 + $0x400] sm:$0xff] }
  0x67   :  { %v3248_v31 = vpack.c.bf16 %v840_v24, %v832_v23  ;;  %v842_v32 = vld [vmem:[#allocation8 + $0x458] sm:$0xff]  ;;  %v848_v35 = vld [vmem:[#allocation8 + $0x488] sm:$0xff]  ;;  %v879_v6 = vld [vmem:[#allocation8 + $0x580] sm:$0xff] }
  0x68   :  { %v856_v36 = vld [vmem:[#allocation8 + $0x4c8] sm:$0xff]  ;;  %v874_v56 = vld [vmem:[#allocation8 + $0x558] sm:$0xff] }
  0x69   :  { %v890_v5 = vld [vmem:[#allocation8 + $0x5d8] sm:$0xff]  ;;  %v896_v8 = vld [vmem:[#allocation8 + $0x608] sm:$0xff] }
 0x128   :  { %v173_v50 = vpop.f32.mrb[0].mxu0 }
 0x129   :  { %v175_v51 = vpop.f32.mrb[1].mxu0 }
 0x12a   :  { %395 = vmatprep.subr.mxu0 %v175_v51  ;;  %v244_v53 = vpop.f32.mrb[0].mxu1  ;;  %v792_v51 = vld [vmem:[#allocation8 + $0x2c8] sm:$0xff] }
 0x12b   :  { %396 = vmatpush1.msra.mxu0 %v173_v50  ;;  %v246_v54 = vpop.f32.mrb[1].mxu1  ;;  %v784_v50 = vld [vmem:[#allocation8 + $0x288] sm:$0xff] }
 0x12c   :  { %3176 = vmatmul.mubr.msk.f32.vlgmr.msra.gmra.mrb[4].mxu0 %vm391_vm1, %v69_v52  ;;  %466 = vmatprep.subr.mxu1 %v246_v54  ;;  %v3234_v54 = vpack.c.bf16 %v775_v49, %v767_v48  ;;  %v3236_v58 = vpack.c.bf16 %v792_v51, %v784_v50  ;;  %v872_v48 = vld [vmem:[#allocation8 + $0x548] sm:$0xff] }
 0x12d   :  { %601 = vmatprep.mubr.f32.mxu0 %v4397_v0  ;;  %467 = vmatpush1.msra.mxu1 %v244_v53  ;;  %v3488_v53 = vpack.c.bf16 %v778_v47, %v770_v45  ;;  %v847_v45 = vld [vmem:[#allocation8 + $0x480] sm:$0xff]  ;;  %v864_v47 = vld [vmem:[#allocation8 + $0x508] sm:$0xff] }
 0x12e   :  { %3177 = vmatmul.mubr.msk.f32.vlgmr.msra.gmra.mrb[4].mxu1 %vm391_vm1, %v69_v52  ;;  %v3256_v55 = vpack.c.bf16 %v872_v48, %v864_v47  ;;  %v929_v47 = vld [vmem:[#allocation8 + $0x710] sm:$0xff] }
 0x12f   :  { %672 = vmatprep.mubr.f32.mxu1 %v4397_v0  ;;  %v937_v48 = vld [vmem:[#allocation8 + $0x750] sm:$0xff] }
 0x130   :  { %v315_v61 = vpop.f32.mrb[2].mxu0 }
 0x131   :  { %v317_v2 = vpop.f32.mrb[3].mxu0 }
 0x132   :  { %537 = vmatprep.subr.mxu0 %v317_v2  ;;  %v386_v11 = vpop.f32.mrb[2].mxu1  ;;  %v3492_v2 = vpack.c.bf16 %v794_v59, %v786_v57  ;;  %v863_v57 = vld [vmem:[#allocation8 + $0x500] sm:$0xff]  ;;  %v880_v59 = vld [vmem:[#allocation8 + $0x588] sm:$0xff] }
 0x133   :  { %538 = vmatpush1.msra.mxu0 %v315_v61  ;;  %v388_v15 = vpop.f32.mrb[3].mxu1  ;;  %v791_v61 = vld [vmem:[#allocation8 + $0x2c0] sm:$0xff] }
 0x134   :  { %3178 = vmatmul.mubr.msk.f32.vlgmr.msra.gmra.mrb[6].mxu0 %vm391_vm1, %v69_v52  ;;  %3217 = vmatprep.subr.bf16.mxu0 %v3216_v62  ;;  %v800_v62 = vld [vmem:[#allocation8 + $0x308] sm:$0xff] }
 0x135   :  { %608 = vmatprep.subr.mxu1 %v388_v15  ;;  %3219 = vmatpush1.bf16.msra.mxu0 %v3218_v3  ;;  %v3238_v3 = vpack.c.bf16 %v791_v61, %v783_v60  ;;  %v3242_v15 = vpack.c.bf16 %v807_v10, %v799_v9  ;;  %v888_v60 = vld [vmem:[#allocation8 + $0x5c8] sm:$0xff] }
 0x136   :  { %609 = vmatpush1.msra.mxu1 %v386_v11  ;;  %3221 = vmatprep.subr.bf16.mxu0 %v3220_v7  ;;  %v3240_v7 = vpack.c.bf16 %v808_v63, %v800_v62  ;;  %v816_v11 = vld [vmem:[#allocation8 + $0x388] sm:$0xff]  ;;  %v3260_v4 = vpack.c.bf16 %v888_v60, %v880_v59  ;;  %v945_v59 = vld [vmem:[#allocation8 + $0x790] sm:$0xff] }
 0x137   :  { %3179 = vmatmul.mubr.msk.f32.vlgmr.msra.gmra.mrb[6].mxu1 %vm391_vm1, %v69_v52  ;;  %3473 = vmatprep.subr.bf16.mxu1 %v3472_v12  ;;  %v3486_v52 = vpack.c.bf16 %v761_v44, %v753_v43  ;;  %v824_v12 = vld [vmem:[#allocation8 + $0x3c8] sm:$0xff]  ;;  %v3252_v43 = vpack.c.bf16 %v856_v36, %v848_v35  ;;  %v858_v44 = vld [vmem:[#allocation8 + $0x4d8] sm:$0xff]  ;;  %v953_v60 = vld [vmem:[#allocation8 + $0x7d0] sm:$0xff] }
 0x138   :  { %3475 = vmatpush1.bf16.msra.mxu1 %v3474_v16  ;;  %v801_v16 = vld [vmem:[#allocation8 + $0x310] sm:$0xff]  ;;  %v3244_v19 = vpack.c.bf16 %v824_v12, %v816_v11  ;;  %v904_v9 = vld [vmem:[#allocation8 + $0x648] sm:$0xff] }
 0x139   :  { %3477 = vmatprep.subr.bf16.mxu1 %v3476_v17  ;;  %3223 = vmatpush1.bf16.msra.mxu0 %v3222_v18  ;;  %v809_v17 = vld [vmem:[#allocation8 + $0x350] sm:$0xff]  ;;  %v818_v18 = vld [vmem:[#allocation8 + $0x398] sm:$0xff] }
 0x13a   :  { %3225 = vmatprep.subr.bf16.mxu0 %v3224_v22  ;;  %v823_v22 = vld [vmem:[#allocation8 + $0x3c0] sm:$0xff]  ;;  %v3498_v25 = vpack.c.bf16 %v809_v17, %v801_v16  ;;  %v3500_v26 = vpack.c.bf16 %v826_v20, %v818_v18  ;;  %v3264_v16 = vpack.c.bf16 %v904_v9, %v896_v8  ;;  %v906_v17 = vld [vmem:[#allocation8 + $0x658] sm:$0xff]  ;;  %v912_v20 = vld [vmem:[#allocation8 + $0x688] sm:$0xff] }
 0x13b   :  { %v3246_v27 = vpack.c.bf16 %v823_v22, %v815_v21  ;;  %v895_v18 = vld [vmem:[#allocation8 + $0x600] sm:$0xff]  ;;  %v920_v21 = vld [vmem:[#allocation8 + $0x6c8] sm:$0xff]  ;;  %v961_v8 = vld [vmem:[#allocation8 + $0x810] sm:$0xff] }
 0x13c   :  { %3479 = vmatpush1.bf16.msra.mxu1 %v3478_v28  ;;  %v817_v28 = vld [vmem:[#allocation8 + $0x390] sm:$0xff] }
 0x13d   :  { %3481 = vmatprep.subr.bf16.mxu1 %v3480_v29  ;;  %3227 = vmatpush1.bf16.msra.mxu0 %v3226_v30  ;;  %v825_v29 = vld [vmem:[#allocation8 + $0x3d0] sm:$0xff]  ;;  %v834_v30 = vld [vmem:[#allocation8 + $0x418] sm:$0xff] }
 0x13e   :  { %3229 = vmatprep.subr.bf16.mxu0 %v3228_v34  ;;  %v839_v34 = vld [vmem:[#allocation8 + $0x440] sm:$0xff]  ;;  %v3502_v37 = vpack.c.bf16 %v825_v29, %v817_v28  ;;  %v3504_v38 = vpack.c.bf16 %v842_v32, %v834_v30  ;;  %v3268_v28 = vpack.c.bf16 %v920_v21, %v912_v20  ;;  %v922_v29 = vld [vmem:[#allocation8 + $0x6d8] sm:$0xff]  ;;  %v928_v32 = vld [vmem:[#allocation8 + $0x708] sm:$0xff] }
 0x13f   :  { %v3250_v39 = vpack.c.bf16 %v839_v34, %v831_v33  ;;  %v911_v30 = vld [vmem:[#allocation8 + $0x680] sm:$0xff]  ;;  %v936_v33 = vld [vmem:[#allocation8 + $0x748] sm:$0xff]  ;;  %v969_v9 = vld [vmem:[#allocation8 + $0x850] sm:$0xff] }
 0x140   :  { %3483 = vmatpush1.bf16.msra.mxu1 %v3482_v40  ;;  %v833_v40 = vld [vmem:[#allocation8 + $0x410] sm:$0xff]  ;;  %v983_v20 = vld [vmem:[#allocation8 + $0x8c0] sm:$0xff] }
 0x141   :  { %3485 = vmatprep.subr.bf16.mxu1 %v3484_v41  ;;  %3231 = vmatpush1.bf16.msra.mxu0 %v3230_v42  ;;  %v841_v41 = vld [vmem:[#allocation8 + $0x450] sm:$0xff]  ;;  %v850_v42 = vld [vmem:[#allocation8 + $0x498] sm:$0xff] }
 0x142   :  { %3233 = vmatprep.subr.bf16.mxu0 %v3232_v46  ;;  %v855_v46 = vld [vmem:[#allocation8 + $0x4c0] sm:$0xff]  ;;  %v3506_v49 = vpack.c.bf16 %v841_v41, %v833_v40  ;;  %v3508_v50 = vpack.c.bf16 %v858_v44, %v850_v42  ;;  %v3272_v40 = vpack.c.bf16 %v936_v33, %v928_v32  ;;  %v938_v41 = vld [vmem:[#allocation8 + $0x758] sm:$0xff] }
 0x143   :  { %v3254_v51 = vpack.c.bf16 %v855_v46, %v847_v45  ;;  %v927_v42 = vld [vmem:[#allocation8 + $0x700] sm:$0xff]  ;;  %v1002_v32 = vld [vmem:[#allocation8 + $0x958] sm:$0xff] }
 0x144   :  { %3487 = vmatpush1.bf16.msra.mxu1 %v3486_v52  ;;  %v849_v52 = vld [vmem:[#allocation8 + $0x490] sm:$0xff] }
 0x145   :  { %3489 = vmatprep.subr.bf16.mxu1 %v3488_v53  ;;  %3235 = vmatpush1.bf16.msra.mxu0 %v3234_v54  ;;  %v857_v53 = vld [vmem:[#allocation8 + $0x4d0] sm:$0xff]  ;;  %v866_v54 = vld [vmem:[#allocation8 + $0x518] sm:$0xff] }
 0x146   :  { %3237 = vmatprep.subr.bf16.mxu0 %v3236_v58  ;;  %v871_v58 = vld [vmem:[#allocation8 + $0x540] sm:$0xff]  ;;  %v3510_v61 = vpack.c.bf16 %v857_v53, %v849_v52  ;;  %v3512_v62 = vpack.c.bf16 %v874_v56, %v866_v54  ;;  %v946_v52 = vld [vmem:[#allocation8 + $0x798] sm:$0xff] }
 0x147   :  { %v3258_v63 = vpack.c.bf16 %v871_v58, %v863_v57  ;;  %v954_v54 = vld [vmem:[#allocation8 + $0x7d8] sm:$0xff]  ;;  %v951_v56 = vld [vmem:[#allocation8 + $0x7c0] sm:$0xff] }
 0x148   :  { %3491 = vmatpush1.bf16.msra.mxu1 %v3490_v1  ;;  %v865_v1 = vld [vmem:[#allocation8 + $0x510] sm:$0xff]  ;;  %v3532_v57 = vpack.c.bf16 %v954_v54, %v946_v52  ;;  %v1015_v52 = vld [vmem:[#allocation8 + $0x9c0] sm:$0xff] }
 0x149   :  { %3493 = vmatprep.subr.bf16.mxu1 %v3492_v2  ;;  %3239 = vmatpush1.bf16.msra.mxu0 %v3238_v3  ;;  %v873_v2 = vld [vmem:[#allocation8 + $0x550] sm:$0xff]  ;;  %v882_v3 = vld [vmem:[#allocation8 + $0x598] sm:$0xff] }
 0x14a   :  { %3241 = vmatprep.subr.bf16.mxu0 %v3240_v7  ;;  %v887_v7 = vld [vmem:[#allocation8 + $0x5c0] sm:$0xff]  ;;  %v3514_v10 = vpack.c.bf16 %v873_v2, %v865_v1  ;;  %v3516_v11 = vpack.c.bf16 %v890_v5, %v882_v3  ;;  %v962_v1 = vld [vmem:[#allocation8 + $0x818] sm:$0xff] }
 0x14b   :  { %v3262_v12 = vpack.c.bf16 %v887_v7, %v879_v6  ;;  %v970_v3 = vld [vmem:[#allocation8 + $0x858] sm:$0xff]  ;;  %v959_v5 = vld [vmem:[#allocation8 + $0x800] sm:$0xff] }
 0x14c   :  { %3495 = vmatpush1.bf16.msra.mxu1 %v3494_v13  ;;  %v881_v13 = vld [vmem:[#allocation8 + $0x590] sm:$0xff]  ;;  %v967_v6 = vld [vmem:[#allocation8 + $0x840] sm:$0xff] }
 0x14d   :  { %3497 = vmatprep.subr.bf16.mxu1 %v3496_v14  ;;  %3243 = vmatpush1.bf16.msra.mxu0 %v3242_v15  ;;  %v889_v14 = vld [vmem:[#allocation8 + $0x5d0] sm:$0xff]  ;;  %v898_v15 = vld [vmem:[#allocation8 + $0x618] sm:$0xff] }
 0x14e   :  { %3245 = vmatprep.subr.bf16.mxu0 %v3244_v19  ;;  %v903_v19 = vld [vmem:[#allocation8 + $0x640] sm:$0xff]  ;;  %v3518_v22 = vpack.c.bf16 %v889_v14, %v881_v13  ;;  %v3520_v23 = vpack.c.bf16 %v906_v17, %v898_v15  ;;  %v984_v13 = vld [vmem:[#allocation8 + $0x8c8] sm:$0xff]  ;;  %v978_v14 = vld [vmem:[#allocation8 + $0x898] sm:$0xff]  ;;  %v3282_v17 = vpack.c.bf16 %v967_v6, %v959_v5 }
 0x14f   :  { %v3266_v24 = vpack.c.bf16 %v903_v19, %v895_v18  ;;  %v986_v15 = vld [vmem:[#allocation8 + $0x8d8] sm:$0xff]  ;;  %v3538_v18 = vpack.c.bf16 %v969_v9, %v961_v8  ;;  %v975_v19 = vld [vmem:[#allocation8 + $0x880] sm:$0xff]  ;;  %v1033_v5 = vld [vmem:[#allocation8 + $0xa50] sm:$0xff] }
 0x150   :  { %3499 = vmatpush1.bf16.msra.mxu1 %v3498_v25  ;;  %v897_v25 = vld [vmem:[#allocation8 + $0x610] sm:$0xff]  ;;  %v1040_v6 = vld [vmem:[#allocation8 + $0xa88] sm:$0xff]  ;;  %v1042_v8 = vld [vmem:[#allocation8 + $0xa98] sm:$0xff] }
 0x151   :  { %3501 = vmatprep.subr.bf16.mxu1 %v3500_v26  ;;  %3247 = vmatpush1.bf16.msra.mxu0 %v3246_v27  ;;  %v905_v26 = vld [vmem:[#allocation8 + $0x650] sm:$0xff]  ;;  %v914_v27 = vld [vmem:[#allocation8 + $0x698] sm:$0xff] }
 0x152   :  { %3249 = vmatprep.subr.bf16.mxu0 %v3248_v31  ;;  %v919_v31 = vld [vmem:[#allocation8 + $0x6c0] sm:$0xff]  ;;  %v3522_v34 = vpack.c.bf16 %v905_v26, %v897_v25  ;;  %v3524_v35 = vpack.c.bf16 %v922_v29, %v914_v27  ;;  %v977_v25 = vld [vmem:[#allocation8 + $0x890] sm:$0xff]  ;;  %v992_v27 = vld [vmem:[#allocation8 + $0x908] sm:$0xff] }
 0x153   :  { %v3270_v36 = vpack.c.bf16 %v919_v31, %v911_v30  ;;  %v985_v26 = vld [vmem:[#allocation8 + $0x8d0] sm:$0xff]  ;;  %v1000_v30 = vld [vmem:[#allocation8 + $0x948] sm:$0xff]  ;;  %v994_v31 = vld [vmem:[#allocation8 + $0x918] sm:$0xff] }
 0x154   :  { %3503 = vmatpush1.bf16.msra.mxu1 %v3502_v37  ;;  %v913_v37 = vld [vmem:[#allocation8 + $0x690] sm:$0xff]  ;;  %v1050_v9 = vld [vmem:[#allocation8 + $0xad8] sm:$0xff] }
 0x155   :  { %3505 = vmatprep.subr.bf16.mxu1 %v3504_v38  ;;  %3251 = vmatpush1.bf16.msra.mxu0 %v3250_v39  ;;  %v921_v38 = vld [vmem:[#allocation8 + $0x6d0] sm:$0xff]  ;;  %v930_v39 = vld [vmem:[#allocation8 + $0x718] sm:$0xff] }
 0x156   :  { %3253 = vmatprep.subr.bf16.mxu0 %v3252_v43  ;;  %v935_v43 = vld [vmem:[#allocation8 + $0x740] sm:$0xff]  ;;  %v3526_v44 = vpack.c.bf16 %v921_v38, %v913_v37  ;;  %v3528_v45 = vpack.c.bf16 %v938_v41, %v930_v39  ;;  %v3288_v39 = vpack.c.bf16 %v1000_v30, %v992_v27  ;;  %v993_v41 = vld [vmem:[#allocation8 + $0x910] sm:$0xff] }
 0x157   :  { %v3274_v46 = vpack.c.bf16 %v935_v43, %v927_v42  ;;  %v999_v37 = vld [vmem:[#allocation8 + $0x940] sm:$0xff]  ;;  %v1001_v42 = vld [vmem:[#allocation8 + $0x950] sm:$0xff]  ;;  %v1008_v43 = vld [vmem:[#allocation8 + $0x988] sm:$0xff] }
 0x158   :  { %3507 = vmatpush1.bf16.msra.mxu1 %v3506_v49  ;;  %v3530_v49 = vpack.c.bf16 %v937_v48, %v929_v47  ;;  %v1018_v47 = vld [vmem:[#allocation8 + $0x9d8] sm:$0xff]  ;;  %v1055_v27 = vld [vmem:[#allocation8 + $0xb00] sm:$0xff] }
 0x159   :  { %3509 = vmatprep.subr.bf16.mxu1 %v3508_v50  ;;  %3255 = vmatpush1.bf16.msra.mxu0 %v3254_v51  ;;  %v944_v50 = vld [vmem:[#allocation8 + $0x788] sm:$0xff] }
 0x15a   :  { %3257 = vmatprep.subr.bf16.mxu0 %v3256_v55  ;;  %v952_v51 = vld [vmem:[#allocation8 + $0x7c8] sm:$0xff]  ;;  %v943_v55 = vld [vmem:[#allocation8 + $0x780] sm:$0xff] }
 0x15b   :  { %v3276_v53 = vpack.c.bf16 %v952_v51, %v944_v50  ;;  %v3278_v58 = vpack.c.bf16 %v951_v56, %v943_v55  ;;  %v3546_v50 = vpack.c.bf16 %v1001_v42, %v993_v41  ;;  %v1007_v51 = vld [vmem:[#allocation8 + $0x980] sm:$0xff]  ;;  %v1009_v55 = vld [vmem:[#allocation8 + $0x990] sm:$0xff] }
 0x15c   :  { %3511 = vmatpush1.bf16.msra.mxu1 %v3510_v61  ;;  %v3534_v61 = vpack.c.bf16 %v953_v60, %v945_v59  ;;  %v1017_v56 = vld [vmem:[#allocation8 + $0x9d0] sm:$0xff]  ;;  %v1026_v59 = vld [vmem:[#allocation8 + $0xa18] sm:$0xff]  ;;  %v1071_v42 = vld [vmem:[#allocation8 + $0xb80] sm:$0xff] }
 0x15d   :  { %3513 = vmatprep.subr.bf16.mxu1 %v3512_v62  ;;  %3259 = vmatpush1.bf16.msra.mxu0 %v3258_v63  ;;  %v960_v62 = vld [vmem:[#allocation8 + $0x808] sm:$0xff]  ;;  %v1034_v60 = vld [vmem:[#allocation8 + $0xa58] sm:$0xff] }
 0x15e   :  { %3261 = vmatprep.subr.bf16.mxu0 %v3260_v4  ;;  %v968_v63 = vld [vmem:[#allocation8 + $0x848] sm:$0xff]  ;;  %v3536_v4 = vpack.c.bf16 %v970_v3, %v962_v1  ;;  %v1031_v1 = vld [vmem:[#allocation8 + $0xa40] sm:$0xff]  ;;  %v3552_v3 = vpack.c.bf16 %v1034_v60, %v1026_v59  ;;  %v1089_v60 = vld [vmem:[#allocation8 + $0xc10] sm:$0xff] }
 0x15f   :  { %v3280_v2 = vpack.c.bf16 %v968_v63, %v960_v62  ;;  %v3550_v62 = vpack.c.bf16 %v1017_v56, %v1009_v55  ;;  %v1023_v63 = vld [vmem:[#allocation8 + $0xa00] sm:$0xff] }
 0x160   :  { %3515 = vmatpush1.bf16.msra.mxu1 %v3514_v10  ;;  %v976_v10 = vld [vmem:[#allocation8 + $0x888] sm:$0xff]  ;;  %v1087_v56 = vld [vmem:[#allocation8 + $0xc00] sm:$0xff] }
 0x161   :  { %3517 = vmatprep.subr.bf16.mxu1 %v3516_v11  ;;  %3263 = vmatpush1.bf16.msra.mxu0 %v3262_v12 }
 0x162   :  { %3265 = vmatprep.subr.bf16.mxu0 %v3264_v16 }
 0x164   :  { %3519 = vmatpush1.bf16.msra.mxu1 %v3518_v22 }
 0x165   :  { %3521 = vmatprep.subr.bf16.mxu1 %v3520_v23  ;;  %3267 = vmatpush1.bf16.msra.mxu0 %v3266_v24  ;;  %v3284_v23 = vpack.c.bf16 %v984_v13, %v976_v10  ;;  %v3540_v24 = vpack.c.bf16 %v986_v15, %v978_v14  ;;  %v3298_v10 = vpack.c.bf16 %v1031_v1, %v1023_v63  ;;  %v1047_v13 = vld [vmem:[#allocation8 + $0xac0] sm:$0xff]  ;;  %v1112_v63 = vld [vmem:[#allocation8 + $0xcc8] sm:$0xff]  ;;  %v1106_v1 = vld [vmem:[#allocation8 + $0xc98] sm:$0xff] }
 0x166   :  { %3269 = vmatprep.subr.bf16.mxu0 %v3268_v28  ;;  %v3556_v15 = vpack.c.bf16 %v1050_v9, %v1042_v8  ;;  %v1105_v9 = vld [vmem:[#allocation8 + $0xc90] sm:$0xff] }
 0x168   :  { %3523 = vmatpush1.bf16.msra.mxu1 %v3522_v34  ;;  %v3286_v34 = vpack.c.bf16 %v983_v20, %v975_v19  ;;  %v1064_v20 = vld [vmem:[#allocation8 + $0xb48] sm:$0xff] }
 0x169   :  { %3525 = vmatprep.subr.bf16.mxu1 %v3524_v35  ;;  %3271 = vmatpush1.bf16.msra.mxu0 %v3270_v36  ;;  %v3542_v35 = vpack.c.bf16 %v985_v26, %v977_v25  ;;  %v991_v36 = vld [vmem:[#allocation8 + $0x900] sm:$0xff] }
 0x16a   :  { %3273 = vmatprep.subr.bf16.mxu0 %v3272_v40  ;;  %v3544_v40 = vpack.c.bf16 %v1002_v32, %v994_v31 }
 0x16c   :  { %3527 = vmatpush1.bf16.msra.mxu1 %v3526_v44 }
 0x16d   :  { %3529 = vmatprep.subr.bf16.mxu1 %v3528_v45  ;;  %3275 = vmatpush1.bf16.msra.mxu0 %v3274_v46  ;;  %v1016_v45 = vld [vmem:[#allocation8 + $0x9c8] sm:$0xff]  ;;  %v1010_v46 = vld [vmem:[#allocation8 + $0x998] sm:$0xff] }
 0x16e   :  { %3277 = vmatprep.subr.bf16.mxu0 %v3276_v53  ;;  %v3292_v53 = vpack.c.bf16 %v1016_v45, %v1008_v43  ;;  %v3548_v54 = vpack.c.bf16 %v1018_v47, %v1010_v46  ;;  %v1079_v43 = vld [vmem:[#allocation8 + $0xbc0] sm:$0xff]  ;;  %v1073_v47 = vld [vmem:[#allocation8 + $0xb90] sm:$0xff] }
 0x170   :  { %3531 = vmatpush1.bf16.msra.mxu1 %v3530_v49  ;;  %v3290_v49 = vpack.c.bf16 %v999_v37, %v991_v36  ;;  %v1080_v36 = vld [vmem:[#allocation8 + $0xbc8] sm:$0xff]  ;;  %v1074_v37 = vld [vmem:[#allocation8 + $0xb98] sm:$0xff] }
 0x171   :  { %3533 = vmatprep.subr.bf16.mxu1 %v3532_v57  ;;  %3279 = vmatpush1.bf16.msra.mxu0 %v3278_v58  ;;  %v1024_v57 = vld [vmem:[#allocation8 + $0xa08] sm:$0xff] }
 0x172   :  { %3281 = vmatprep.subr.bf16.mxu0 %v3280_v2  ;;  %v1032_v58 = vld [vmem:[#allocation8 + $0xa48] sm:$0xff] }
 0x173   :  { %v3296_v2 = vpack.c.bf16 %v1032_v58, %v1024_v57  ;;  %v1095_v57 = vld [vmem:[#allocation8 + $0xc40] sm:$0xff] }
 0x174   :  { %3535 = vmatpush1.bf16.msra.mxu1 %v3534_v61  ;;  %v3294_v61 = vpack.c.bf16 %v1015_v52, %v1007_v51  ;;  %v1096_v51 = vld [vmem:[#allocation8 + $0xc48] sm:$0xff]  ;;  %v1090_v52 = vld [vmem:[#allocation8 + $0xc18] sm:$0xff] }
 0x175   :  { %3537 = vmatprep.subr.bf16.mxu1 %v3536_v4  ;;  %v1025_v4 = vld [vmem:[#allocation8 + $0xa10] sm:$0xff] }
 0x1ff   :  { %v461_v7 = vpop.f32.mrb[4].mxu0 }
 0x200   :  { %v687_v11 = vmul.f32 0.2, %v461_v7  ;;  %v463_v12 = vpop.f32.mrb[5].mxu0  ;;  %vm679_vm2 = vcmp.gt.f32.partialorder %v461_v7, 0.0 }
 0x201   :  { %vm680_vm3 = vcmp.gt.f32.partialorder %v463_v12, 0.0  ;;  %v688_v16 = vmul.f32 0.2, %v463_v12  ;;  %v4488_v21 = vpop.f32.mrb[4].mxu1 }
 0x202   :  { %v534_v28 = vpop.f32.mrb[5].mxu1  ;;  %v4495_v29 = vsel %vm679_vm2, %v461_v7, %v687_v11  ;;  %v1048_v7 = vld [vmem:[#allocation8 + $0xac8] sm:$0xff]  ;;  %v3554_v11 = vpack.c.bf16 %v1033_v5, %v1025_v4  ;;  %v1103_v5 = vld [vmem:[#allocation8 + $0xc80] sm:$0xff]  ;;  %vm681_vm5 = vcmp.gt.f32.partialorder %v4488_v21, 0.0 }
 0x203   :  { %v4490_v22 = vsel %vm680_vm3, %v463_v12, %v688_v16  ;;  %vm682_vm4 = vcmp.gt.f32.partialorder %v534_v28, 0.0  ;;  %v690_v33 = vmul.f32 0.2, %v534_v28  ;;  %v1039_v12 = vld [vmem:[#allocation8 + $0xa80] sm:$0xff]  ;;  %v3300_v14 = vpack.c.bf16 %v1048_v7, %v1040_v6  ;;  %v1041_v16 = vld [vmem:[#allocation8 + $0xa90] sm:$0xff] }
 0x204   :  { %1791 = vmatprep.mubr.f32.mxu0 %v4490_v22  ;;  %2075 = vmatprep.mubr.f32.mxu1 %v4490_v22  ;;  %v3302_v25 = vpack.c.bf16 %v1047_v13, %v1039_v12  ;;  %v1111_v6 = vld [vmem:[#allocation8 + $0xcc0] sm:$0xff]  ;;  %v1128_v12 = vld [vmem:[#allocation8 + $0xd48] sm:$0xff]  ;;  %v1122_v13 = vld [vmem:[#allocation8 + $0xd18] sm:$0xff] }
 0x205   :  { %1792 = vmatmul.mubr.f32.vlgmr.msra.gmra.mrb[8].mxu0 %v4495_v29  ;;  %2076 = vmatmul.mubr.f32.vlgmr.msra.gmra.mrb[8].mxu1 %v4495_v29  ;;  %v4499_v38 = vsel %vm682_vm4, %v534_v28, %v690_v33  ;;  %v1063_v28 = vld [vmem:[#allocation8 + $0xb40] sm:$0xff]  ;;  %v1057_v33 = vld [vmem:[#allocation8 + $0xb10] sm:$0xff] }
 0x206   :  { %3283 = vmatpush1.bf16.msra.mxu0 %v3282_v17  ;;  %3539 = vmatpush1.bf16.msra.mxu1 %v3538_v18  ;;  %v1049_v17 = vld [vmem:[#allocation8 + $0xad0] sm:$0xff]  ;;  %v1056_v18 = vld [vmem:[#allocation8 + $0xb08] sm:$0xff] }
 0x207   :  { %3285 = vmatprep.subr.bf16.mxu0 %v3284_v23  ;;  %3541 = vmatprep.subr.bf16.mxu1 %v3540_v24  ;;  %v4501_v44 = vpop.f32.mrb[6].mxu0  ;;  %v1058_v23 = vld [vmem:[#allocation8 + $0xb18] sm:$0xff]  ;;  %v3558_v26 = vpack.c.bf16 %v1049_v17, %v1041_v16  ;;  %v3304_v31 = vpack.c.bf16 %v1064_v20, %v1056_v18  ;;  %v1119_v17 = vld [vmem:[#allocation8 + $0xd00] sm:$0xff] }
 0x208   :  { %1862 = vmatprep.mubr.f32.mxu0 %v4499_v38  ;;  %2146 = vmatprep.mubr.f32.mxu1 %v4499_v38  ;;  %v4505_v48 = vpop.f32.mrb[7].mxu0  ;;  %v1066_v24 = vld [vmem:[#allocation8 + $0xb58] sm:$0xff]  ;;  %v1127_v18 = vld [vmem:[#allocation8 + $0xd40] sm:$0xff]  ;;  %vm683_vm7 = vcmp.gt.f32.partialorder %v4501_v44, 0.0 }
 0x209   :  { %v3560_v32 = vpack.c.bf16 %v1066_v24, %v1058_v23  ;;  %v1121_v24 = vld [vmem:[#allocation8 + $0xd10] sm:$0xff]  ;;  %vm684_vm6 = vcmp.gt.f32.partialorder %v4505_v48, 0.0 }
 0x20a   :  { %3287 = vmatpush1.bf16.msra.mxu0 %v3286_v34  ;;  %3543 = vmatpush1.bf16.msra.mxu1 %v3542_v35  ;;  %v4507_v19 = vpop.f32.mrb[6].mxu1  ;;  %v1065_v34 = vld [vmem:[#allocation8 + $0xb50] sm:$0xff]  ;;  %v1072_v35 = vld [vmem:[#allocation8 + $0xb88] sm:$0xff] }
 0x20b   :  { %3289 = vmatprep.subr.bf16.mxu0 %v3288_v39  ;;  %3545 = vmatprep.subr.bf16.mxu1 %v3544_v40  ;;  %v4509_v30 = vpop.f32.mrb[7].mxu1  ;;  %v1082_v39 = vld [vmem:[#allocation8 + $0xbd8] sm:$0xff]  ;;  %v3306_v40 = vpack.c.bf16 %v1063_v28, %v1055_v27  ;;  %v3562_v41 = vpack.c.bf16 %v1065_v34, %v1057_v33  ;;  %v3308_v45 = vpack.c.bf16 %v1080_v36, %v1072_v35  ;;  %v1144_v27 = vld [vmem:[#allocation8 + $0xdc8] sm:$0xff]  ;;  %v1135_v34 = vld [vmem:[#allocation8 + $0xd80] sm:$0xff]  ;;  %vm685_vm9 = vcmp.gt.f32.partialorder %v4507_v19, 0.0 }
 0x20c   :  { %v3564_v46 = vpack.c.bf16 %v1082_v39, %v1074_v37  ;;  %v1138_v28 = vld [vmem:[#allocation8 + $0xd98] sm:$0xff]  ;;  %v1143_v35 = vld [vmem:[#allocation8 + $0xdc0] sm:$0xff]  ;;  %v1137_v39 = vld [vmem:[#allocation8 + $0xd90] sm:$0xff]  ;;  %vm686_vm8 = vcmp.gt.f32.partialorder %v4509_v30, 0.0 }
 0x20e   :  { %3291 = vmatpush1.bf16.msra.mxu0 %v3290_v49  ;;  %3547 = vmatpush1.bf16.msra.mxu1 %v3546_v50  ;;  %v1081_v49 = vld [vmem:[#allocation8 + $0xbd0] sm:$0xff]  ;;  %v1088_v50 = vld [vmem:[#allocation8 + $0xc08] sm:$0xff] }
 0x20f   :  { %3293 = vmatprep.subr.bf16.mxu0 %v3292_v53  ;;  %3549 = vmatprep.subr.bf16.mxu1 %v3548_v54  ;;  %v1098_v53 = vld [vmem:[#allocation8 + $0xc58] sm:$0xff]  ;;  %v3310_v54 = vpack.c.bf16 %v1079_v43, %v1071_v42  ;;  %v3566_v55 = vpack.c.bf16 %v1081_v49, %v1073_v47  ;;  %v3312_v58 = vpack.c.bf16 %v1096_v51, %v1088_v50  ;;  %v1160_v42 = vld [vmem:[#allocation8 + $0xe48] sm:$0xff]  ;;  %v1151_v49 = vld [vmem:[#allocation8 + $0xe00] sm:$0xff] }
 0x210   :  { %v3568_v59 = vpack.c.bf16 %v1098_v53, %v1090_v52  ;;  %v1154_v43 = vld [vmem:[#allocation8 + $0xe18] sm:$0xff]  ;;  %v1159_v50 = vld [vmem:[#allocation8 + $0xe40] sm:$0xff]  ;;  %v1153_v53 = vld [vmem:[#allocation8 + $0xe10] sm:$0xff] }
 0x212   :  { %3295 = vmatpush1.bf16.msra.mxu0 %v3294_v61  ;;  %3551 = vmatpush1.bf16.msra.mxu1 %v3550_v62  ;;  %v1097_v61 = vld [vmem:[#allocation8 + $0xc50] sm:$0xff]  ;;  %v1104_v62 = vld [vmem:[#allocation8 + $0xc88] sm:$0xff] }
 0x213   :  { %3297 = vmatprep.subr.bf16.mxu0 %v3296_v2  ;;  %3553 = vmatprep.subr.bf16.mxu1 %v3552_v3  ;;  %v1114_v2 = vld [vmem:[#allocation8 + $0xcd8] sm:$0xff]  ;;  %v3314_v3 = vpack.c.bf16 %v1095_v57, %v1087_v56  ;;  %v3570_v4 = vpack.c.bf16 %v1097_v61, %v1089_v60  ;;  %v3316_v7 = vpack.c.bf16 %v1112_v63, %v1104_v62  ;;  %v1176_v56 = vld [vmem:[#allocation8 + $0xec8] sm:$0xff]  ;;  %v1167_v61 = vld [vmem:[#allocation8 + $0xe80] sm:$0xff] }
 0x214   :  { %v3572_v8 = vpack.c.bf16 %v1114_v2, %v1106_v1  ;;  %v1170_v57 = vld [vmem:[#allocation8 + $0xe98] sm:$0xff]  ;;  %v1175_v62 = vld [vmem:[#allocation8 + $0xec0] sm:$0xff]  ;;  %v1169_v2 = vld [vmem:[#allocation8 + $0xe90] sm:$0xff] }
 0x216   :  { %3299 = vmatpush1.bf16.msra.mxu0 %v3298_v10  ;;  %3555 = vmatpush1.bf16.msra.mxu1 %v3554_v11  ;;  %v1113_v10 = vld [vmem:[#allocation8 + $0xcd0] sm:$0xff]  ;;  %v1120_v11 = vld [vmem:[#allocation8 + $0xd08] sm:$0xff] }
 0x217   :  { %3301 = vmatprep.subr.bf16.mxu0 %v3300_v14  ;;  %3557 = vmatprep.subr.bf16.mxu1 %v3556_v15  ;;  %v1130_v14 = vld [vmem:[#allocation8 + $0xd58] sm:$0xff]  ;;  %v3318_v15 = vpack.c.bf16 %v1111_v6, %v1103_v5  ;;  %v3574_v16 = vpack.c.bf16 %v1113_v10, %v1105_v9  ;;  %v3320_v20 = vpack.c.bf16 %v1128_v12, %v1120_v11  ;;  %v1192_v5 = vld [vmem:[#allocation8 + $0xf48] sm:$0xff]  ;;  %v1183_v10 = vld [vmem:[#allocation8 + $0xf00] sm:$0xff] }
 0x218   :  { %v3576_v23 = vpack.c.bf16 %v1130_v14, %v1122_v13  ;;  %v1186_v6 = vld [vmem:[#allocation8 + $0xf18] sm:$0xff]  ;;  %v1191_v11 = vld [vmem:[#allocation8 + $0xf40] sm:$0xff]  ;;  %v1185_v14 = vld [vmem:[#allocation8 + $0xf10] sm:$0xff] }
 0x21a   :  { %3303 = vmatpush1.bf16.msra.mxu0 %v3302_v25  ;;  %3559 = vmatpush1.bf16.msra.mxu1 %v3558_v26  ;;  %v1129_v25 = vld [vmem:[#allocation8 + $0xd50] sm:$0xff]  ;;  %v1136_v26 = vld [vmem:[#allocation8 + $0xd88] sm:$0xff] }
 0x21b   :  { %3305 = vmatprep.subr.bf16.mxu0 %v3304_v31  ;;  %3561 = vmatprep.subr.bf16.mxu1 %v3560_v32  ;;  %v1146_v31 = vld [vmem:[#allocation8 + $0xdd8] sm:$0xff]  ;;  %v3322_v32 = vpack.c.bf16 %v1127_v18, %v1119_v17  ;;  %v3578_v33 = vpack.c.bf16 %v1129_v25, %v1121_v24  ;;  %v3324_v36 = vpack.c.bf16 %v1144_v27, %v1136_v26  ;;  %v1208_v17 = vld [vmem:[#allocation8 + $0xfc8] sm:$0xff]  ;;  %v1199_v25 = vld [vmem:[#allocation8 + $0xf80] sm:$0xff] }
 0x21c   :  { %v3580_v37 = vpack.c.bf16 %v1146_v31, %v1138_v28  ;;  %v1202_v18 = vld [vmem:[#allocation8 + $0xf98] sm:$0xff]  ;;  %v1207_v26 = vld [vmem:[#allocation8 + $0xfc0] sm:$0xff]  ;;  %v1201_v31 = vld [vmem:[#allocation8 + $0xf90] sm:$0xff] }
 0x21e   :  { %3307 = vmatpush1.bf16.msra.mxu0 %v3306_v40  ;;  %3563 = vmatpush1.bf16.msra.mxu1 %v3562_v41  ;;  %v1145_v40 = vld [vmem:[#allocation8 + $0xdd0] sm:$0xff]  ;;  %v1152_v41 = vld [vmem:[#allocation8 + $0xe08] sm:$0xff] }
 0x21f   :  { %3309 = vmatprep.subr.bf16.mxu0 %v3308_v45  ;;  %3565 = vmatprep.subr.bf16.mxu1 %v3564_v46  ;;  %v1162_v45 = vld [vmem:[#allocation8 + $0xe58] sm:$0xff]  ;;  %v3326_v46 = vpack.c.bf16 %v1143_v35, %v1135_v34  ;;  %v3582_v47 = vpack.c.bf16 %v1145_v40, %v1137_v39  ;;  %v3328_v51 = vpack.c.bf16 %v1160_v42, %v1152_v41  ;;  %v1224_v34 = vld [vmem:[#allocation8 + $0x1048] sm:$0xff]  ;;  %v1215_v40 = vld [vmem:[#allocation8 + $0x1000] sm:$0xff] }
 0x220   :  { %v3584_v52 = vpack.c.bf16 %v1162_v45, %v1154_v43  ;;  %v1218_v35 = vld [vmem:[#allocation8 + $0x1018] sm:$0xff]  ;;  %v1223_v41 = vld [vmem:[#allocation8 + $0x1040] sm:$0xff]  ;;  %v1217_v45 = vld [vmem:[#allocation8 + $0x1010] sm:$0xff] }
 0x222   :  { %3311 = vmatpush1.bf16.msra.mxu0 %v3310_v54  ;;  %3567 = vmatpush1.bf16.msra.mxu1 %v3566_v55  ;;  %v1161_v54 = vld [vmem:[#allocation8 + $0xe50] sm:$0xff]  ;;  %v1168_v55 = vld [vmem:[#allocation8 + $0xe88] sm:$0xff] }
 0x223   :  { %3313 = vmatprep.subr.bf16.mxu0 %v3312_v58  ;;  %3569 = vmatprep.subr.bf16.mxu1 %v3568_v59  ;;  %v1178_v58 = vld [vmem:[#allocation8 + $0xed8] sm:$0xff]  ;;  %v3330_v59 = vpack.c.bf16 %v1159_v50, %v1151_v49  ;;  %v3586_v60 = vpack.c.bf16 %v1161_v54, %v1153_v53  ;;  %v3332_v63 = vpack.c.bf16 %v1176_v56, %v1168_v55  ;;  %v689_v49 = vmul.f32 0.2, %v4488_v21  ;;  %v1240_v50 = vld [vmem:[#allocation8 + $0x10c8] sm:$0xff]  ;;  %v1231_v56 = vld [vmem:[#allocation8 + $0x1080] sm:$0xff] }
 0x224   :  { %v3588_v1 = vpack.c.bf16 %v1178_v58, %v1170_v57  ;;  %v692_v53 = vmul.f32 0.2, %v4505_v48  ;;  %v3346_v54 = vpack.c.bf16 %v1223_v41, %v1215_v40  ;;  %v1239_v57 = vld [vmem:[#allocation8 + $0x10c0] sm:$0xff]  ;;  %v1289_v40 = vld [vmem:[#allocation8 + $0x1250] sm:$0xff]  ;;  %v1296_v41 = vld [vmem:[#allocation8 + $0x1288] sm:$0xff] }
 0x226   :  { %3315 = vmatpush1.bf16.msra.mxu0 %v3314_v3  ;;  %3571 = vmatpush1.bf16.msra.mxu1 %v3570_v4  ;;  %v1177_v3 = vld [vmem:[#allocation8 + $0xed0] sm:$0xff]  ;;  %v1184_v4 = vld [vmem:[#allocation8 + $0xf08] sm:$0xff] }
 0x227   :  { %3317 = vmatprep.subr.bf16.mxu0 %v3316_v7  ;;  %3573 = vmatprep.subr.bf16.mxu1 %v3572_v8  ;;  %v1194_v7 = vld [vmem:[#allocation8 + $0xf58] sm:$0xff]  ;;  %v3334_v8 = vpack.c.bf16 %v1175_v62, %v1167_v61  ;;  %v3590_v9 = vpack.c.bf16 %v1177_v3, %v1169_v2  ;;  %v3336_v12 = vpack.c.bf16 %v1192_v5, %v1184_v4  ;;  %v1241_v61 = vld [vmem:[#allocation8 + $0x10d0] sm:$0xff]  ;;  %v1248_v62 = vld [vmem:[#allocation8 + $0x1108] sm:$0xff] }
 0x228   :  { %v3592_v13 = vpack.c.bf16 %v1194_v7, %v1186_v6  ;;  %v1250_v2 = vld [vmem:[#allocation8 + $0x1118] sm:$0xff]  ;;  %v4523_v4 = vsel %vm684_vm6, %v4505_v48, %v692_v53  ;;  %v3350_v5 = vpack.c.bf16 %v1239_v57, %v1231_v56  ;;  %v1247_v7 = vld [vmem:[#allocation8 + $0x1100] sm:$0xff]  ;;  %v1297_v53 = vld [vmem:[#allocation8 + $0x1290] sm:$0xff] }
 0x229   :  { %v1258_v3 = vld [vmem:[#allocation8 + $0x1158] sm:$0xff]  ;;  %v1320_v56 = vld [vmem:[#allocation8 + $0x1348] sm:$0xff] }
 0x22a   :  { %3319 = vmatpush1.bf16.msra.mxu0 %v3318_v15  ;;  %3575 = vmatpush1.bf16.msra.mxu1 %v3574_v16  ;;  %v1193_v15 = vld [vmem:[#allocation8 + $0xf50] sm:$0xff]  ;;  %v1200_v16 = vld [vmem:[#allocation8 + $0xf88] sm:$0xff]  ;;  %v1314_v57 = vld [vmem:[#allocation8 + $0x1318] sm:$0xff] }
 0x22b   :  { %3321 = vmatprep.subr.bf16.mxu0 %v3320_v20  ;;  %3577 = vmatprep.subr.bf16.mxu1 %v3576_v23  ;;  %v1210_v20 = vld [vmem:[#allocation8 + $0xfd8] sm:$0xff]  ;;  %v3338_v23 = vpack.c.bf16 %v1191_v11, %v1183_v10  ;;  %v3594_v24 = vpack.c.bf16 %v1193_v15, %v1185_v14  ;;  %v3340_v27 = vpack.c.bf16 %v1208_v17, %v1200_v16  ;;  %v1249_v10 = vld [vmem:[#allocation8 + $0x1110] sm:$0xff]  ;;  %v1263_v17 = vld [vmem:[#allocation8 + $0x1180] sm:$0xff] }
 0x22c   :  { %v3596_v28 = vpack.c.bf16 %v1210_v20, %v1202_v18  ;;  %v1257_v11 = vld [vmem:[#allocation8 + $0x1150] sm:$0xff]  ;;  %v1266_v14 = vld [vmem:[#allocation8 + $0x1198] sm:$0xff]  ;;  %v1271_v18 = vld [vmem:[#allocation8 + $0x11c0] sm:$0xff] }
 0x22d   :  { %v1274_v15 = vld [vmem:[#allocation8 + $0x11d8] sm:$0xff]  ;;  %v3610_v16 = vpack.c.bf16 %v1257_v11, %v1249_v10  ;;  %v1327_v11 = vld [vmem:[#allocation8 + $0x1380] sm:$0xff] }
 0x22e   :  { %3323 = vmatpush1.bf16.msra.mxu0 %v3322_v32  ;;  %3579 = vmatpush1.bf16.msra.mxu1 %v3578_v33  ;;  %v1209_v32 = vld [vmem:[#allocation8 + $0xfd0] sm:$0xff]  ;;  %v1216_v33 = vld [vmem:[#allocation8 + $0x1008] sm:$0xff] }
 0x22f   :  { %3325 = vmatprep.subr.bf16.mxu0 %v3324_v36  ;;  %3581 = vmatprep.subr.bf16.mxu1 %v3580_v37  ;;  %v1226_v36 = vld [vmem:[#allocation8 + $0x1058] sm:$0xff]  ;;  %v3342_v37 = vpack.c.bf16 %v1207_v26, %v1199_v25  ;;  %v3598_v39 = vpack.c.bf16 %v1209_v32, %v1201_v31  ;;  %v3344_v42 = vpack.c.bf16 %v1224_v34, %v1216_v33  ;;  %v1273_v25 = vld [vmem:[#allocation8 + $0x11d0] sm:$0xff]  ;;  %v1280_v26 = vld [vmem:[#allocation8 + $0x1208] sm:$0xff] }
 0x230   :  { %v3600_v43 = vpack.c.bf16 %v1226_v36, %v1218_v35  ;;  %v1290_v31 = vld [vmem:[#allocation8 + $0x1258] sm:$0xff]  ;;  %v3358_v32 = vpack.c.bf16 %v1271_v18, %v1263_v17  ;;  %v1279_v34 = vld [vmem:[#allocation8 + $0x1200] sm:$0xff]  ;;  %v1352_v17 = vld [vmem:[#allocation8 + $0x1448] sm:$0xff] }
 0x231   :  { %v1287_v35 = vld [vmem:[#allocation8 + $0x1240] sm:$0xff]  ;;  %v1346_v18 = vld [vmem:[#allocation8 + $0x1418] sm:$0xff] }
 0x232   :  { %3327 = vmatpush1.bf16.msra.mxu0 %v3326_v46  ;;  %3583 = vmatpush1.bf16.msra.mxu1 %v3582_v47  ;;  %v1225_v46 = vld [vmem:[#allocation8 + $0x1050] sm:$0xff]  ;;  %v1232_v47 = vld [vmem:[#allocation8 + $0x1088] sm:$0xff] }
 0x233   :  { %3329 = vmatprep.subr.bf16.mxu0 %v3328_v51  ;;  %3585 = vmatprep.subr.bf16.mxu1 %v3584_v52  ;;  %v1234_v51 = vld [vmem:[#allocation8 + $0x1098] sm:$0xff]  ;;  %v3602_v55 = vpack.c.bf16 %v1225_v46, %v1217_v45  ;;  %v3348_v58 = vpack.c.bf16 %v1240_v50, %v1232_v47  ;;  %v3362_v46 = vpack.c.bf16 %v1287_v35, %v1279_v34  ;;  %v1303_v50 = vld [vmem:[#allocation8 + $0x12c0] sm:$0xff]  ;;  %v1368_v34 = vld [vmem:[#allocation8 + $0x14c8] sm:$0xff] }
 0x234   :  { %v1242_v52 = vld [vmem:[#allocation8 + $0x10d8] sm:$0xff] }
 0x235   :  { %v1306_v45 = vld [vmem:[#allocation8 + $0x12d8] sm:$0xff] }
 0x236   :  { %3331 = vmatpush1.bf16.msra.mxu0 %v3330_v59  ;;  %3587 = vmatpush1.bf16.msra.mxu1 %v3586_v60  ;;  %v3604_v59 = vpack.c.bf16 %v1242_v52, %v1234_v51  ;;  %v1233_v60 = vld [vmem:[#allocation8 + $0x1090] sm:$0xff]  ;;  %v1362_v35 = vld [vmem:[#allocation8 + $0x1498] sm:$0xff] }
 0x237   :  { %3333 = vmatprep.subr.bf16.mxu0 %v3332_v63  ;;  %3589 = vmatprep.subr.bf16.mxu1 %v3588_v1  ;;  %v4518_v63 = vsel %vm681_vm5, %v4488_v21, %v689_v49  ;;  %v1256_v1 = vld [vmem:[#allocation8 + $0x1148] sm:$0xff]  ;;  %v3606_v6 = vpack.c.bf16 %v1241_v61, %v1233_v60  ;;  %v1295_v49 = vld [vmem:[#allocation8 + $0x1280] sm:$0xff] }
 0x238   :  { %v3352_v21 = vpack.c.bf16 %v1256_v1, %v1248_v62  ;;  %v1311_v61 = vld [vmem:[#allocation8 + $0x1300] sm:$0xff] }
 0x239   :  { %v1319_v62 = vld [vmem:[#allocation8 + $0x1340] sm:$0xff] }
 0x23a   :  { %3335 = vmatpush1.bf16.msra.mxu0 %v3334_v8  ;;  %3591 = vmatpush1.bf16.msra.mxu1 %v3590_v9  ;;  %v1255_v8 = vld [vmem:[#allocation8 + $0x1140] sm:$0xff]  ;;  %v3608_v9 = vpack.c.bf16 %v1258_v3, %v1250_v2  ;;  %v1313_v3 = vld [vmem:[#allocation8 + $0x1310] sm:$0xff] }
 0x23b   :  { %3337 = vmatprep.subr.bf16.mxu0 %v3336_v12  ;;  %3593 = vmatprep.subr.bf16.mxu1 %v3592_v13  ;;  %v1264_v12 = vld [vmem:[#allocation8 + $0x1188] sm:$0xff]  ;;  %v3354_v48 = vpack.c.bf16 %v1255_v8, %v1247_v7  ;;  %v1330_v8 = vld [vmem:[#allocation8 + $0x1398] sm:$0xff] }
 0x23c   :  { %v1272_v13 = vld [vmem:[#allocation8 + $0x11c8] sm:$0xff] }
 0x23d   :  { %v3356_v20 = vpack.c.bf16 %v1272_v13, %v1264_v12  ;;  %v1336_v7 = vld [vmem:[#allocation8 + $0x13c8] sm:$0xff]  ;;  %v1335_v12 = vld [vmem:[#allocation8 + $0x13c0] sm:$0xff] }
 0x23e   :  { %3339 = vmatpush1.bf16.msra.mxu0 %v3338_v23  ;;  %3595 = vmatpush1.bf16.msra.mxu1 %v3594_v24  ;;  %v3612_v23 = vpack.c.bf16 %v1274_v15, %v1266_v14  ;;  %v1265_v24 = vld [vmem:[#allocation8 + $0x1190] sm:$0xff] }
 0x23f   :  { %3341 = vmatprep.subr.bf16.mxu0 %v3340_v27  ;;  %3597 = vmatprep.subr.bf16.mxu1 %v3596_v28  ;;  %v1288_v27 = vld [vmem:[#allocation8 + $0x1248] sm:$0xff]  ;;  %v1282_v28 = vld [vmem:[#allocation8 + $0x1218] sm:$0xff]  ;;  %v3614_v33 = vpack.c.bf16 %v1273_v25, %v1265_v24  ;;  %v1329_v15 = vld [vmem:[#allocation8 + $0x1390] sm:$0xff] }
 0x240   :  { %v3360_v36 = vpack.c.bf16 %v1288_v27, %v1280_v26  ;;  %v1343_v25 = vld [vmem:[#allocation8 + $0x1400] sm:$0xff] }
 0x241   :  { %v1351_v26 = vld [vmem:[#allocation8 + $0x1440] sm:$0xff] }
 0x242   :  { %3343 = vmatpush1.bf16.msra.mxu0 %v3342_v37  ;;  %3599 = vmatpush1.bf16.msra.mxu1 %v3598_v39  ;;  %v3616_v37 = vpack.c.bf16 %v1290_v31, %v1282_v28  ;;  %v1281_v39 = vld [vmem:[#allocation8 + $0x1210] sm:$0xff] }
 0x243   :  { %3345 = vmatprep.subr.bf16.mxu0 %v3344_v42  ;;  %3601 = vmatprep.subr.bf16.mxu1 %v3600_v43  ;;  %v1304_v42 = vld [vmem:[#allocation8 + $0x12c8] sm:$0xff]  ;;  %v1298_v43 = vld [vmem:[#allocation8 + $0x1298] sm:$0xff]  ;;  %v3618_v47 = vpack.c.bf16 %v1289_v40, %v1281_v39  ;;  %v1345_v31 = vld [vmem:[#allocation8 + $0x1410] sm:$0xff] }
 0x244   :  { %v3364_v51 = vpack.c.bf16 %v1304_v42, %v1296_v41  ;;  %v3620_v52 = vpack.c.bf16 %v1306_v45, %v1298_v43  ;;  %v1359_v40 = vld [vmem:[#allocation8 + $0x1480] sm:$0xff]  ;;  %v1361_v45 = vld [vmem:[#allocation8 + $0x1490] sm:$0xff] }
 0x245   :  { %1863 = vmatmul.mubr.f32.vlgmr.msra.gmra.mrb[8].mxu0 %v4518_v63  ;;  %2147 = vmatmul.mubr.f32.vlgmr.msra.gmra.mrb[8].mxu1 %v4518_v63  ;;  %v1367_v41 = vld [vmem:[#allocation8 + $0x14c0] sm:$0xff] }
 0x246   :  { %3347 = vmatpush1.bf16.msra.mxu0 %v3346_v54  ;;  %3603 = vmatpush1.bf16.msra.mxu1 %v3602_v55  ;;  %v1305_v54 = vld [vmem:[#allocation8 + $0x12d0] sm:$0xff]  ;;  %v1312_v55 = vld [vmem:[#allocation8 + $0x1308] sm:$0xff] }
 0x247   :  { %3349 = vmatprep.subr.bf16.mxu0 %v3348_v58  ;;  %3605 = vmatprep.subr.bf16.mxu1 %v3604_v59  ;;  %v1322_v58 = vld [vmem:[#allocation8 + $0x1358] sm:$0xff]  ;;  %v3366_v59 = vpack.c.bf16 %v1303_v50, %v1295_v49  ;;  %v3622_v60 = vpack.c.bf16 %v1305_v54, %v1297_v53  ;;  %v3368_v1 = vpack.c.bf16 %v1320_v56, %v1312_v55  ;;  %v1384_v49 = vld [vmem:[#allocation8 + $0x1548] sm:$0xff]  ;;  %v1375_v54 = vld [vmem:[#allocation8 + $0x1500] sm:$0xff] }
 0x248   :  { %1933 = vmatprep.mubr.f32.mxu0 %v4523_v4  ;;  %2217 = vmatprep.mubr.f32.mxu1 %v4523_v4  ;;  %v3624_v2 = vpack.c.bf16 %v1322_v58, %v1314_v57  ;;  %v1378_v50 = vld [vmem:[#allocation8 + $0x1518] sm:$0xff]  ;;  %v1383_v55 = vld [vmem:[#allocation8 + $0x1540] sm:$0xff]  ;;  %v1377_v58 = vld [vmem:[#allocation8 + $0x1510] sm:$0xff] }
 0x24a   :  { %3351 = vmatpush1.bf16.msra.mxu0 %v3350_v5  ;;  %3607 = vmatpush1.bf16.msra.mxu1 %v3606_v6  ;;  %v1321_v5 = vld [vmem:[#allocation8 + $0x1350] sm:$0xff]  ;;  %v1328_v6 = vld [vmem:[#allocation8 + $0x1388] sm:$0xff] }
 0x24b   :  { %3353 = vmatprep.subr.bf16.mxu0 %v3352_v21  ;;  %3609 = vmatprep.subr.bf16.mxu1 %v3608_v9  ;;  %v1338_v21 = vld [vmem:[#allocation8 + $0x13d8] sm:$0xff]  ;;  %v3370_v9 = vpack.c.bf16 %v1319_v62, %v1311_v61  ;;  %v3626_v10 = vpack.c.bf16 %v1321_v5, %v1313_v3  ;;  %v3372_v13 = vpack.c.bf16 %v1336_v7, %v1328_v6  ;;  %v1400_v61 = vld [vmem:[#allocation8 + $0x15c8] sm:$0xff]  ;;  %v1391_v5 = vld [vmem:[#allocation8 + $0x1580] sm:$0xff] }
 0x24c   :  { %v3628_v14 = vpack.c.bf16 %v1338_v21, %v1330_v8  ;;  %v1394_v62 = vld [vmem:[#allocation8 + $0x1598] sm:$0xff]  ;;  %v1399_v6 = vld [vmem:[#allocation8 + $0x15c0] sm:$0xff]  ;;  %v1393_v21 = vld [vmem:[#allocation8 + $0x1590] sm:$0xff] }
 0x24e   :  { %3355 = vmatpush1.bf16.msra.mxu0 %v3354_v48  ;;  %3611 = vmatpush1.bf16.msra.mxu1 %v3610_v16  ;;  %v1337_v48 = vld [vmem:[#allocation8 + $0x13d0] sm:$0xff]  ;;  %v1344_v16 = vld [vmem:[#allocation8 + $0x1408] sm:$0xff] }
 0x24f   :  { %3357 = vmatprep.subr.bf16.mxu0 %v3356_v20  ;;  %3613 = vmatprep.subr.bf16.mxu1 %v3612_v23  ;;  %v1354_v20 = vld [vmem:[#allocation8 + $0x1458] sm:$0xff]  ;;  %v3374_v23 = vpack.c.bf16 %v1335_v12, %v1327_v11  ;;  %v3630_v24 = vpack.c.bf16 %v1337_v48, %v1329_v15  ;;  %v3376_v27 = vpack.c.bf16 %v1352_v17, %v1344_v16  ;;  %v1416_v11 = vld [vmem:[#allocation8 + $0x1648] sm:$0xff]  ;;  %v1407_v48 = vld [vmem:[#allocation8 + $0x1600] sm:$0xff] }
 0x250   :  { %v3632_v28 = vpack.c.bf16 %v1354_v20, %v1346_v18  ;;  %v1410_v12 = vld [vmem:[#allocation8 + $0x1618] sm:$0xff]  ;;  %v1415_v16 = vld [vmem:[#allocation8 + $0x1640] sm:$0xff]  ;;  %v1409_v20 = vld [vmem:[#allocation8 + $0x1610] sm:$0xff] }
 0x252   :  { %3359 = vmatpush1.bf16.msra.mxu0 %v3358_v32  ;;  %3615 = vmatpush1.bf16.msra.mxu1 %v3614_v33  ;;  %v1353_v32 = vld [vmem:[#allocation8 + $0x1450] sm:$0xff]  ;;  %v1360_v33 = vld [vmem:[#allocation8 + $0x1488] sm:$0xff] }
 0x253   :  { %3361 = vmatprep.subr.bf16.mxu0 %v3360_v36  ;;  %3617 = vmatprep.subr.bf16.mxu1 %v3616_v37  ;;  %v1370_v36 = vld [vmem:[#allocation8 + $0x14d8] sm:$0xff]  ;;  %v3378_v37 = vpack.c.bf16 %v1351_v26, %v1343_v25  ;;  %v3634_v39 = vpack.c.bf16 %v1353_v32, %v1345_v31  ;;  %v3380_v42 = vpack.c.bf16 %v1368_v34, %v1360_v33  ;;  %v1432_v25 = vld [vmem:[#allocation8 + $0x16c8] sm:$0xff]  ;;  %v1423_v32 = vld [vmem:[#allocation8 + $0x1680] sm:$0xff] }
 0x254   :  { %v3636_v43 = vpack.c.bf16 %v1370_v36, %v1362_v35  ;;  %v1426_v26 = vld [vmem:[#allocation8 + $0x1698] sm:$0xff]  ;;  %v1431_v33 = vld [vmem:[#allocation8 + $0x16c0] sm:$0xff]  ;;  %v1425_v36 = vld [vmem:[#allocation8 + $0x1690] sm:$0xff] }
 0x256   :  { %3363 = vmatpush1.bf16.msra.mxu0 %v3362_v46  ;;  %3619 = vmatpush1.bf16.msra.mxu1 %v3618_v47  ;;  %v1369_v46 = vld [vmem:[#allocation8 + $0x14d0] sm:$0xff]  ;;  %v1376_v47 = vld [vmem:[#allocation8 + $0x1508] sm:$0xff] }
 0x257   :  { %3365 = vmatprep.subr.bf16.mxu0 %v3364_v51  ;;  %3621 = vmatprep.subr.bf16.mxu1 %v3620_v52  ;;  %v1386_v51 = vld [vmem:[#allocation8 + $0x1558] sm:$0xff]  ;;  %v3382_v52 = vpack.c.bf16 %v1367_v41, %v1359_v40  ;;  %v3638_v53 = vpack.c.bf16 %v1369_v46, %v1361_v45  ;;  %v3384_v56 = vpack.c.bf16 %v1384_v49, %v1376_v47  ;;  %v1448_v40 = vld [vmem:[#allocation8 + $0x1748] sm:$0xff]  ;;  %v1439_v46 = vld [vmem:[#allocation8 + $0x1700] sm:$0xff] }
 0x258   :  { %v3640_v57 = vpack.c.bf16 %v1386_v51, %v1378_v50  ;;  %v1442_v41 = vld [vmem:[#allocation8 + $0x1718] sm:$0xff]  ;;  %v1447_v47 = vld [vmem:[#allocation8 + $0x1740] sm:$0xff]  ;;  %v1441_v51 = vld [vmem:[#allocation8 + $0x1710] sm:$0xff] }
 0x25a   :  { %3367 = vmatpush1.bf16.msra.mxu0 %v3366_v59  ;;  %3623 = vmatpush1.bf16.msra.mxu1 %v3622_v60  ;;  %v1385_v59 = vld [vmem:[#allocation8 + $0x1550] sm:$0xff]  ;;  %v1392_v60 = vld [vmem:[#allocation8 + $0x1588] sm:$0xff] }
 0x25b   :  { %3369 = vmatprep.subr.bf16.mxu0 %v3368_v1  ;;  %3625 = vmatprep.subr.bf16.mxu1 %v3624_v2  ;;  %v1402_v1 = vld [vmem:[#allocation8 + $0x15d8] sm:$0xff]  ;;  %v3386_v2 = vpack.c.bf16 %v1383_v55, %v1375_v54  ;;  %v3642_v3 = vpack.c.bf16 %v1385_v59, %v1377_v58  ;;  %v3388_v7 = vpack.c.bf16 %v1400_v61, %v1392_v60  ;;  %v1464_v54 = vld [vmem:[#allocation8 + $0x17c8] sm:$0xff]  ;;  %v1455_v59 = vld [vmem:[#allocation8 + $0x1780] sm:$0xff] }
 0x25c   :  { %v3644_v8 = vpack.c.bf16 %v1402_v1, %v1394_v62  ;;  %v1458_v55 = vld [vmem:[#allocation8 + $0x1798] sm:$0xff]  ;;  %v1463_v60 = vld [vmem:[#allocation8 + $0x17c0] sm:$0xff]  ;;  %v1457_v1 = vld [vmem:[#allocation8 + $0x1790] sm:$0xff] }
 0x25e   :  { %3371 = vmatpush1.bf16.msra.mxu0 %v3370_v9  ;;  %3627 = vmatpush1.bf16.msra.mxu1 %v3626_v10  ;;  %v1401_v9 = vld [vmem:[#allocation8 + $0x15d0] sm:$0xff]  ;;  %v1408_v10 = vld [vmem:[#allocation8 + $0x1608] sm:$0xff] }
 0x25f   :  { %3373 = vmatprep.subr.bf16.mxu0 %v3372_v13  ;;  %3629 = vmatprep.subr.bf16.mxu1 %v3628_v14  ;;  %v1418_v13 = vld [vmem:[#allocation8 + $0x1658] sm:$0xff]  ;;  %v3390_v14 = vpack.c.bf16 %v1399_v6, %v1391_v5  ;;  %v3646_v15 = vpack.c.bf16 %v1401_v9, %v1393_v21  ;;  %v3392_v17 = vpack.c.bf16 %v1416_v11, %v1408_v10  ;;  %v1480_v5 = vld [vmem:[#allocation8 + $0x1848] sm:$0xff]  ;;  %v1471_v9 = vld [vmem:[#allocation8 + $0x1800] sm:$0xff] }
 0x260   :  { %v3648_v18 = vpack.c.bf16 %v1418_v13, %v1410_v12  ;;  %v1474_v6 = vld [vmem:[#allocation8 + $0x1818] sm:$0xff]  ;;  %v1479_v10 = vld [vmem:[#allocation8 + $0x1840] sm:$0xff]  ;;  %v1473_v13 = vld [vmem:[#allocation8 + $0x1810] sm:$0xff] }
 0x262   :  { %3375 = vmatpush1.bf16.msra.mxu0 %v3374_v23  ;;  %3631 = vmatpush1.bf16.msra.mxu1 %v3630_v24  ;;  %v1417_v23 = vld [vmem:[#allocation8 + $0x1650] sm:$0xff]  ;;  %v1424_v24 = vld [vmem:[#allocation8 + $0x1688] sm:$0xff] }
 0x263   :  { %3377 = vmatprep.subr.bf16.mxu0 %v3376_v27  ;;  %3633 = vmatprep.subr.bf16.mxu1 %v3632_v28  ;;  %v1434_v27 = vld [vmem:[#allocation8 + $0x16d8] sm:$0xff]  ;;  %v3394_v28 = vpack.c.bf16 %v1415_v16, %v1407_v48  ;;  %v3650_v31 = vpack.c.bf16 %v1417_v23, %v1409_v20  ;;  %v3396_v34 = vpack.c.bf16 %v1432_v25, %v1424_v24  ;;  %v691_v48 = vmul.f32 0.2, %v4501_v44  ;;  %v1496_v16 = vld [vmem:[#allocation8 + $0x18c8] sm:$0xff]  ;;  %v1487_v25 = vld [vmem:[#allocation8 + $0x1880] sm:$0xff] }
 0x264   :  { %v3652_v35 = vpack.c.bf16 %v1434_v27, %v1426_v26  ;;  %v694_v20 = vmul.f32 0.2, %v4509_v30  ;;  %v3410_v23 = vpack.c.bf16 %v1479_v10, %v1471_v9  ;;  %v1495_v26 = vld [vmem:[#allocation8 + $0x18c0] sm:$0xff]  ;;  %v1545_v9 = vld [vmem:[#allocation8 + $0x1a50] sm:$0xff]  ;;  %v1552_v10 = vld [vmem:[#allocation8 + $0x1a88] sm:$0xff] }
 0x266   :  { %3379 = vmatpush1.bf16.msra.mxu0 %v3378_v37  ;;  %3635 = vmatpush1.bf16.msra.mxu1 %v3634_v39  ;;  %v1433_v37 = vld [vmem:[#allocation8 + $0x16d0] sm:$0xff]  ;;  %v1440_v39 = vld [vmem:[#allocation8 + $0x1708] sm:$0xff] }
 0x267   :  { %3381 = vmatprep.subr.bf16.mxu0 %v3380_v42  ;;  %3637 = vmatprep.subr.bf16.mxu1 %v3636_v43  ;;  %v1450_v42 = vld [vmem:[#allocation8 + $0x1758] sm:$0xff]  ;;  %v3398_v43 = vpack.c.bf16 %v1431_v33, %v1423_v32  ;;  %v3654_v45 = vpack.c.bf16 %v1433_v37, %v1425_v36  ;;  %v3400_v49 = vpack.c.bf16 %v1448_v40, %v1440_v39  ;;  %v1497_v32 = vld [vmem:[#allocation8 + $0x18d0] sm:$0xff]  ;;  %v1504_v33 = vld [vmem:[#allocation8 + $0x1908] sm:$0xff] }
 0x268   :  { %v3656_v50 = vpack.c.bf16 %v1450_v42, %v1442_v41  ;;  %v1506_v36 = vld [vmem:[#allocation8 + $0x1918] sm:$0xff]  ;;  %v4539_v39 = vsel %vm686_vm8, %v4509_v30, %v694_v20  ;;  %v3414_v40 = vpack.c.bf16 %v1495_v26, %v1487_v25  ;;  %v1503_v42 = vld [vmem:[#allocation8 + $0x1900] sm:$0xff]  ;;  %v1553_v20 = vld [vmem:[#allocation8 + $0x1a90] sm:$0xff] }
 0x269   :  { %v1514_v37 = vld [vmem:[#allocation8 + $0x1958] sm:$0xff]  ;;  %v1576_v25 = vld [vmem:[#allocation8 + $0x1b48] sm:$0xff] }
 0x26a   :  { %3383 = vmatpush1.bf16.msra.mxu0 %v3382_v52  ;;  %3639 = vmatpush1.bf16.msra.mxu1 %v3638_v53  ;;  %v1449_v52 = vld [vmem:[#allocation8 + $0x1750] sm:$0xff]  ;;  %v1456_v53 = vld [vmem:[#allocation8 + $0x1788] sm:$0xff]  ;;  %v1570_v26 = vld [vmem:[#allocation8 + $0x1b18] sm:$0xff] }
 0x26b   :  { %3385 = vmatprep.subr.bf16.mxu0 %v3384_v56  ;;  %3641 = vmatprep.subr.bf16.mxu1 %v3640_v57  ;;  %v1466_v56 = vld [vmem:[#allocation8 + $0x17d8] sm:$0xff]  ;;  %v3402_v57 = vpack.c.bf16 %v1447_v47, %v1439_v46  ;;  %v3658_v58 = vpack.c.bf16 %v1449_v52, %v1441_v51  ;;  %v3404_v61 = vpack.c.bf16 %v1464_v54, %v1456_v53  ;;  %v1505_v46 = vld [vmem:[#allocation8 + $0x1910] sm:$0xff]  ;;  %v1519_v54 = vld [vmem:[#allocation8 + $0x1980] sm:$0xff] }
 0x26c   :  { %v3660_v62 = vpack.c.bf16 %v1466_v56, %v1458_v55  ;;  %v1513_v47 = vld [vmem:[#allocation8 + $0x1950] sm:$0xff]  ;;  %v1522_v51 = vld [vmem:[#allocation8 + $0x1998] sm:$0xff]  ;;  %v1527_v55 = vld [vmem:[#allocation8 + $0x19c0] sm:$0xff] }
 0x26d   :  { %v1530_v52 = vld [vmem:[#allocation8 + $0x19d8] sm:$0xff]  ;;  %v3674_v53 = vpack.c.bf16 %v1513_v47, %v1505_v46  ;;  %v1583_v47 = vld [vmem:[#allocation8 + $0x1b80] sm:$0xff] }
 0x26e   :  { %3387 = vmatpush1.bf16.msra.mxu0 %v3386_v2  ;;  %3643 = vmatpush1.bf16.msra.mxu1 %v3642_v3  ;;  %v1465_v2 = vld [vmem:[#allocation8 + $0x17d0] sm:$0xff]  ;;  %v1472_v3 = vld [vmem:[#allocation8 + $0x1808] sm:$0xff] }
 0x26f   :  { %3389 = vmatprep.subr.bf16.mxu0 %v3388_v7  ;;  %3645 = vmatprep.subr.bf16.mxu1 %v3644_v8  ;;  %v1482_v7 = vld [vmem:[#allocation8 + $0x1858] sm:$0xff]  ;;  %v3406_v8 = vpack.c.bf16 %v1463_v60, %v1455_v59  ;;  %v3662_v21 = vpack.c.bf16 %v1465_v2, %v1457_v1  ;;  %v3408_v11 = vpack.c.bf16 %v1480_v5, %v1472_v3  ;;  %v1529_v59 = vld [vmem:[#allocation8 + $0x19d0] sm:$0xff]  ;;  %v1536_v60 = vld [vmem:[#allocation8 + $0x1a08] sm:$0xff] }
 0x270   :  { %v3664_v12 = vpack.c.bf16 %v1482_v7, %v1474_v6  ;;  %v1546_v1 = vld [vmem:[#allocation8 + $0x1a58] sm:$0xff]  ;;  %v3422_v2 = vpack.c.bf16 %v1527_v55, %v1519_v54  ;;  %v1535_v5 = vld [vmem:[#allocation8 + $0x1a00] sm:$0xff]  ;;  %v1608_v54 = vld [vmem:[#allocation8 + $0x1c48] sm:$0xff] }
 0x271   :  { %v1543_v6 = vld [vmem:[#allocation8 + $0x1a40] sm:$0xff]  ;;  %v1602_v55 = vld [vmem:[#allocation8 + $0x1c18] sm:$0xff] }
 0x272   :  { %3391 = vmatpush1.bf16.msra.mxu0 %v3390_v14  ;;  %3647 = vmatpush1.bf16.msra.mxu1 %v3646_v15  ;;  %v1481_v14 = vld [vmem:[#allocation8 + $0x1850] sm:$0xff]  ;;  %v1488_v15 = vld [vmem:[#allocation8 + $0x1888] sm:$0xff] }
 0x273   :  { %3393 = vmatprep.subr.bf16.mxu0 %v3392_v17  ;;  %3649 = vmatprep.subr.bf16.mxu1 %v3648_v18  ;;  %v1490_v17 = vld [vmem:[#allocation8 + $0x1898] sm:$0xff]  ;;  %v3666_v24 = vpack.c.bf16 %v1481_v14, %v1473_v13  ;;  %v3412_v27 = vpack.c.bf16 %v1496_v16, %v1488_v15  ;;  %v3426_v14 = vpack.c.bf16 %v1543_v6, %v1535_v5  ;;  %v1559_v16 = vld [vmem:[#allocation8 + $0x1ac0] sm:$0xff]  ;;  %v1624_v5 = vld [vmem:[#allocation8 + $0x1cc8] sm:$0xff] }
 0x274   :  { %v1498_v18 = vld [vmem:[#allocation8 + $0x18d8] sm:$0xff] }
 0x275   :  { %v1562_v13 = vld [vmem:[#allocation8 + $0x1ad8] sm:$0xff] }
 0x276   :  { %3395 = vmatpush1.bf16.msra.mxu0 %v3394_v28  ;;  %3651 = vmatpush1.bf16.msra.mxu1 %v3650_v31  ;;  %v3668_v28 = vpack.c.bf16 %v1498_v18, %v1490_v17  ;;  %v1489_v31 = vld [vmem:[#allocation8 + $0x1890] sm:$0xff]  ;;  %v1618_v6 = vld [vmem:[#allocation8 + $0x1c98] sm:$0xff] }
 0x277   :  { %3397 = vmatprep.subr.bf16.mxu0 %v3396_v34  ;;  %3653 = vmatprep.subr.bf16.mxu1 %v3652_v35  ;;  %v4534_v34 = vsel %vm683_vm7, %v4501_v44, %v691_v48  ;;  %v1512_v35 = vld [vmem:[#allocation8 + $0x1948] sm:$0xff]  ;;  %v3670_v41 = vpack.c.bf16 %v1497_v32, %v1489_v31  ;;  %v1551_v48 = vld [vmem:[#allocation8 + $0x1a80] sm:$0xff] }
 0x278   :  { %v3416_v44 = vpack.c.bf16 %v1512_v35, %v1504_v33  ;;  %v1567_v32 = vld [vmem:[#allocation8 + $0x1b00] sm:$0xff] }
 0x279   :  { %v1575_v33 = vld [vmem:[#allocation8 + $0x1b40] sm:$0xff] }
 0x27a   :  { %3399 = vmatpush1.bf16.msra.mxu0 %v3398_v43  ;;  %3655 = vmatpush1.bf16.msra.mxu1 %v3654_v45  ;;  %v1511_v43 = vld [vmem:[#allocation8 + $0x1940] sm:$0xff]  ;;  %v3672_v45 = vpack.c.bf16 %v1514_v37, %v1506_v36  ;;  %v1569_v37 = vld [vmem:[#allocation8 + $0x1b10] sm:$0xff] }
 0x27b   :  { %3401 = vmatprep.subr.bf16.mxu0 %v3400_v49  ;;  %3657 = vmatprep.subr.bf16.mxu1 %v3656_v50  ;;  %v1520_v49 = vld [vmem:[#allocation8 + $0x1988] sm:$0xff]  ;;  %v3418_v30 = vpack.c.bf16 %v1511_v43, %v1503_v42  ;;  %v1586_v43 = vld [vmem:[#allocation8 + $0x1b98] sm:$0xff] }
 0x27c   :  { %v1528_v50 = vld [vmem:[#allocation8 + $0x19c8] sm:$0xff] }
 0x27d   :  { %v3420_v56 = vpack.c.bf16 %v1528_v50, %v1520_v49  ;;  %v1592_v42 = vld [vmem:[#allocation8 + $0x1bc8] sm:$0xff]  ;;  %v1591_v49 = vld [vmem:[#allocation8 + $0x1bc0] sm:$0xff] }
 0x27e   :  { %3403 = vmatpush1.bf16.msra.mxu0 %v3402_v57  ;;  %3659 = vmatpush1.bf16.msra.mxu1 %v3658_v58  ;;  %v3676_v57 = vpack.c.bf16 %v1530_v52, %v1522_v51  ;;  %v1521_v58 = vld [vmem:[#allocation8 + $0x1990] sm:$0xff] }
 0x27f   :  { %3405 = vmatprep.subr.bf16.mxu0 %v3404_v61  ;;  %3661 = vmatprep.subr.bf16.mxu1 %v3660_v62  ;;  %v1544_v61 = vld [vmem:[#allocation8 + $0x1a48] sm:$0xff]  ;;  %v1538_v62 = vld [vmem:[#allocation8 + $0x1a18] sm:$0xff]  ;;  %v3678_v3 = vpack.c.bf16 %v1529_v59, %v1521_v58  ;;  %v1585_v52 = vld [vmem:[#allocation8 + $0x1b90] sm:$0xff] }
 0x280   :  { %v3424_v7 = vpack.c.bf16 %v1544_v61, %v1536_v60  ;;  %v1599_v59 = vld [vmem:[#allocation8 + $0x1c00] sm:$0xff] }
 0x281   :  { %v1607_v60 = vld [vmem:[#allocation8 + $0x1c40] sm:$0xff] }
 0x282   :  { %3407 = vmatpush1.bf16.msra.mxu0 %v3406_v8  ;;  %3663 = vmatpush1.bf16.msra.mxu1 %v3662_v21  ;;  %v3680_v8 = vpack.c.bf16 %v1546_v1, %v1538_v62  ;;  %v1537_v21 = vld [vmem:[#allocation8 + $0x1a10] sm:$0xff] }
 0x283   :  { %3409 = vmatprep.subr.bf16.mxu0 %v3408_v11  ;;  %3665 = vmatprep.subr.bf16.mxu1 %v3664_v12  ;;  %v1560_v11 = vld [vmem:[#allocation8 + $0x1ac8] sm:$0xff]  ;;  %v1554_v12 = vld [vmem:[#allocation8 + $0x1a98] sm:$0xff]  ;;  %v3682_v15 = vpack.c.bf16 %v1545_v9, %v1537_v21  ;;  %v1601_v1 = vld [vmem:[#allocation8 + $0x1c10] sm:$0xff] }
 0x284   :  { %v3428_v17 = vpack.c.bf16 %v1560_v11, %v1552_v10  ;;  %v3684_v18 = vpack.c.bf16 %v1562_v13, %v1554_v12  ;;  %v1615_v9 = vld [vmem:[#allocation8 + $0x1c80] sm:$0xff]  ;;  %v1617_v13 = vld [vmem:[#allocation8 + $0x1c90] sm:$0xff] }
 0x285   :  { %1934 = vmatmul.mubr.f32.vlgmr.msra.gmra.mrb[8].mxu0 %v4534_v34  ;;  %2218 = vmatmul.mubr.f32.vlgmr.msra.gmra.mrb[8].mxu1 %v4534_v34  ;;  %v1623_v10 = vld [vmem:[#allocation8 + $0x1cc0] sm:$0xff] }
 0x286   :  { %3411 = vmatpush1.bf16.msra.mxu0 %v3410_v23  ;;  %3667 = vmatpush1.bf16.msra.mxu1 %v3666_v24  ;;  %v1561_v23 = vld [vmem:[#allocation8 + $0x1ad0] sm:$0xff]  ;;  %v1568_v24 = vld [vmem:[#allocation8 + $0x1b08] sm:$0xff] }
 0x287   :  { %3413 = vmatprep.subr.bf16.mxu0 %v3412_v27  ;;  %3669 = vmatprep.subr.bf16.mxu1 %v3668_v28  ;;  %v1578_v27 = vld [vmem:[#allocation8 + $0x1b58] sm:$0xff]  ;;  %v3430_v28 = vpack.c.bf16 %v1559_v16, %v1551_v48  ;;  %v3686_v31 = vpack.c.bf16 %v1561_v23, %v1553_v20  ;;  %v3432_v35 = vpack.c.bf16 %v1576_v25, %v1568_v24  ;;  %v1640_v48 = vld [vmem:[#allocation8 + $0x1d48] sm:$0xff]  ;;  %v1631_v23 = vld [vmem:[#allocation8 + $0x1d00] sm:$0xff] }
 0x288   :  { %2004 = vmatprep.mubr.f32.mxu0 %v4539_v39  ;;  %2288 = vmatprep.mubr.f32.mxu1 %v4539_v39  ;;  %v3688_v36 = vpack.c.bf16 %v1578_v27, %v1570_v26  ;;  %v1634_v16 = vld [vmem:[#allocation8 + $0x1d18] sm:$0xff]  ;;  %v1639_v24 = vld [vmem:[#allocation8 + $0x1d40] sm:$0xff]  ;;  %v1633_v27 = vld [vmem:[#allocation8 + $0x1d10] sm:$0xff] }
 0x28a   :  { %3415 = vmatpush1.bf16.msra.mxu0 %v3414_v40  ;;  %3671 = vmatpush1.bf16.msra.mxu1 %v3670_v41  ;;  %v1577_v40 = vld [vmem:[#allocation8 + $0x1b50] sm:$0xff]  ;;  %v1584_v41 = vld [vmem:[#allocation8 + $0x1b88] sm:$0xff] }
 0x28b   :  { %3417 = vmatprep.subr.bf16.mxu0 %v3416_v44  ;;  %3673 = vmatprep.subr.bf16.mxu1 %v3672_v45  ;;  %v1594_v44 = vld [vmem:[#allocation8 + $0x1bd8] sm:$0xff]  ;;  %v3434_v45 = vpack.c.bf16 %v1575_v33, %v1567_v32  ;;  %v3690_v46 = vpack.c.bf16 %v1577_v40, %v1569_v37  ;;  %v3436_v50 = vpack.c.bf16 %v1592_v42, %v1584_v41  ;;  %v1656_v32 = vld [vmem:[#allocation8 + $0x1dc8] sm:$0xff]  ;;  %v1647_v40 = vld [vmem:[#allocation8 + $0x1d80] sm:$0xff] }
 0x28c   :  { %v3692_v51 = vpack.c.bf16 %v1594_v44, %v1586_v43  ;;  %v1650_v33 = vld [vmem:[#allocation8 + $0x1d98] sm:$0xff]  ;;  %v1655_v41 = vld [vmem:[#allocation8 + $0x1dc0] sm:$0xff]  ;;  %v1649_v44 = vld [vmem:[#allocation8 + $0x1d90] sm:$0xff] }
 0x28e   :  { %3419 = vmatpush1.bf16.msra.mxu0 %v3418_v30  ;;  %3675 = vmatpush1.bf16.msra.mxu1 %v3674_v53  ;;  %v1593_v30 = vld [vmem:[#allocation8 + $0x1bd0] sm:$0xff]  ;;  %v1600_v53 = vld [vmem:[#allocation8 + $0x1c08] sm:$0xff] }
 0x28f   :  { %3421 = vmatprep.subr.bf16.mxu0 %v3420_v56  ;;  %3677 = vmatprep.subr.bf16.mxu1 %v3676_v57  ;;  %v1610_v56 = vld [vmem:[#allocation8 + $0x1c58] sm:$0xff]  ;;  %v3438_v57 = vpack.c.bf16 %v1591_v49, %v1583_v47  ;;  %v3694_v58 = vpack.c.bf16 %v1593_v30, %v1585_v52  ;;  %v3440_v61 = vpack.c.bf16 %v1608_v54, %v1600_v53  ;;  %v1672_v47 = vld [vmem:[#allocation8 + $0x1e48] sm:$0xff]  ;;  %v1663_v30 = vld [vmem:[#allocation8 + $0x1e00] sm:$0xff] }
 0x290   :  { %v3696_v62 = vpack.c.bf16 %v1610_v56, %v1602_v55  ;;  %v1666_v49 = vld [vmem:[#allocation8 + $0x1e18] sm:$0xff]  ;;  %v1671_v53 = vld [vmem:[#allocation8 + $0x1e40] sm:$0xff]  ;;  %v1665_v56 = vld [vmem:[#allocation8 + $0x1e10] sm:$0xff] }
 0x292   :  { %3423 = vmatpush1.bf16.msra.mxu0 %v3422_v2  ;;  %3679 = vmatpush1.bf16.msra.mxu1 %v3678_v3  ;;  %v1609_v2 = vld [vmem:[#allocation8 + $0x1c50] sm:$0xff]  ;;  %v1616_v3 = vld [vmem:[#allocation8 + $0x1c88] sm:$0xff] }
 0x293   :  { %3425 = vmatprep.subr.bf16.mxu0 %v3424_v7  ;;  %3681 = vmatprep.subr.bf16.mxu1 %v3680_v8  ;;  %v1626_v7 = vld [vmem:[#allocation8 + $0x1cd8] sm:$0xff]  ;;  %v3442_v8 = vpack.c.bf16 %v1607_v60, %v1599_v59  ;;  %v3698_v21 = vpack.c.bf16 %v1609_v2, %v1601_v1  ;;  %v3444_v11 = vpack.c.bf16 %v1624_v5, %v1616_v3  ;;  %v1688_v59 = vld [vmem:[#allocation8 + $0x1ec8] sm:$0xff]  ;;  %v1679_v2 = vld [vmem:[#allocation8 + $0x1e80] sm:$0xff] }
 0x294   :  { %v3700_v12 = vpack.c.bf16 %v1626_v7, %v1618_v6  ;;  %v1682_v60 = vld [vmem:[#allocation8 + $0x1e98] sm:$0xff]  ;;  %v1687_v3 = vld [vmem:[#allocation8 + $0x1ec0] sm:$0xff]  ;;  %v1681_v7 = vld [vmem:[#allocation8 + $0x1e90] sm:$0xff] }
 0x296   :  { %3427 = vmatpush1.bf16.msra.mxu0 %v3426_v14  ;;  %3683 = vmatpush1.bf16.msra.mxu1 %v3682_v15  ;;  %v1625_v14 = vld [vmem:[#allocation8 + $0x1cd0] sm:$0xff]  ;;  %v1632_v15 = vld [vmem:[#allocation8 + $0x1d08] sm:$0xff] }
 0x297   :  { %3429 = vmatprep.subr.bf16.mxu0 %v3428_v17  ;;  %3685 = vmatprep.subr.bf16.mxu1 %v3684_v18  ;;  %v1642_v17 = vld [vmem:[#allocation8 + $0x1d58] sm:$0xff]  ;;  %v3446_v18 = vpack.c.bf16 %v1623_v10, %v1615_v9  ;;  %v3702_v20 = vpack.c.bf16 %v1625_v14, %v1617_v13  ;;  %v3448_v25 = vpack.c.bf16 %v1640_v48, %v1632_v15  ;;  %v1704_v9 = vld [vmem:[#allocation8 + $0x1f48] sm:$0xff]  ;;  %v1695_v14 = vld [vmem:[#allocation8 + $0x1f00] sm:$0xff] }
 0x298   :  { %v3704_v26 = vpack.c.bf16 %v1642_v17, %v1634_v16  ;;  %v1698_v10 = vld [vmem:[#allocation8 + $0x1f18] sm:$0xff]  ;;  %v1703_v15 = vld [vmem:[#allocation8 + $0x1f40] sm:$0xff]  ;;  %v1697_v17 = vld [vmem:[#allocation8 + $0x1f10] sm:$0xff] }
 0x29a   :  { %3431 = vmatpush1.bf16.msra.mxu0 %v3430_v28  ;;  %3687 = vmatpush1.bf16.msra.mxu1 %v3686_v31  ;;  %v1641_v28 = vld [vmem:[#allocation8 + $0x1d50] sm:$0xff]  ;;  %v1648_v31 = vld [vmem:[#allocation8 + $0x1d88] sm:$0xff] }
 0x29b   :  { %3433 = vmatprep.subr.bf16.mxu0 %v3432_v35  ;;  %3689 = vmatprep.subr.bf16.mxu1 %v3688_v36  ;;  %v1658_v35 = vld [vmem:[#allocation8 + $0x1dd8] sm:$0xff]  ;;  %v3450_v36 = vpack.c.bf16 %v1639_v24, %v1631_v23  ;;  %v3706_v37 = vpack.c.bf16 %v1641_v28, %v1633_v27  ;;  %v3452_v42 = vpack.c.bf16 %v1656_v32, %v1648_v31  ;;  %v1720_v23 = vld [vmem:[#allocation8 + $0x1fc8] sm:$0xff]  ;;  %v1711_v28 = vld [vmem:[#allocation8 + $0x1f80] sm:$0xff] }
 0x29c   :  { %v3708_v43 = vpack.c.bf16 %v1658_v35, %v1650_v33  ;;  %v1714_v24 = vld [vmem:[#allocation8 + $0x1f98] sm:$0xff]  ;;  %v1719_v31 = vld [vmem:[#allocation8 + $0x1fc0] sm:$0xff]  ;;  %v1713_v35 = vld [vmem:[#allocation8 + $0x1f90] sm:$0xff] }
 0x29e   :  { %3435 = vmatpush1.bf16.msra.mxu0 %v3434_v45  ;;  %3691 = vmatpush1.bf16.msra.mxu1 %v3690_v46  ;;  %v1657_v45 = vld [vmem:[#allocation8 + $0x1dd0] sm:$0xff]  ;;  %v1664_v46 = vld [vmem:[#allocation8 + $0x1e08] sm:$0xff] }
 0x29f   :  { %3437 = vmatprep.subr.bf16.mxu0 %v3436_v50  ;;  %3693 = vmatprep.subr.bf16.mxu1 %v3692_v51  ;;  %v1674_v50 = vld [vmem:[#allocation8 + $0x1e58] sm:$0xff]  ;;  %v3454_v51 = vpack.c.bf16 %v1655_v41, %v1647_v40  ;;  %v3710_v52 = vpack.c.bf16 %v1657_v45, %v1649_v44  ;;  %v3456_v54 = vpack.c.bf16 %v1672_v47, %v1664_v46  ;;  %v716_v40 = vld [vmem:[#allocation8 + $0x68] sm:$0xff]  ;;  %v707_v47 = vld [vmem:[#allocation8 + $0x20] sm:$0xff] }
 0x2a0   :  { %v3712_v55 = vpack.c.bf16 %v1674_v50, %v1666_v49  ;;  %v710_v41 = vld [vmem:[#allocation8 + $0x38] sm:$0xff]  ;;  %v715_v49 = vld [vmem:[#allocation8 + $0x60] sm:$0xff]  ;;  %v693_v50 = vmul.f32 0.2, %v4507_v19 }
 0x2a2   :  { %3439 = vmatpush1.bf16.msra.mxu0 %v3438_v57  ;;  %3695 = vmatpush1.bf16.msra.mxu1 %v3694_v58  ;;  %v1673_v57 = vld [vmem:[#allocation8 + $0x1e50] sm:$0xff]  ;;  %v1680_v58 = vld [vmem:[#allocation8 + $0x1e88] sm:$0xff] }
 0x2a3   :  { %3441 = vmatprep.subr.bf16.mxu0 %v3440_v61  ;;  %3697 = vmatprep.subr.bf16.mxu1 %v3696_v62  ;;  %v1690_v61 = vld [vmem:[#allocation8 + $0x1ed8] sm:$0xff]  ;;  %v3458_v62 = vpack.c.bf16 %v1671_v53, %v1663_v30  ;;  %v3714_v1 = vpack.c.bf16 %v1673_v57, %v1665_v56  ;;  %v3460_v5 = vpack.c.bf16 %v1688_v59, %v1680_v58  ;;  %v724_v30 = vld [vmem:[#allocation8 + $0xa8] sm:$0xff]  ;;  %v723_v58 = vld [vmem:[#allocation8 + $0xa0] sm:$0xff] }
 0x2a4   :  { %v3716_v6 = vpack.c.bf16 %v1690_v61, %v1682_v60  ;;  %v732_v53 = vld [vmem:[#allocation8 + $0xe8] sm:$0xff]  ;;  %v3730_v56 = vpack.c.bf16 %v715_v49, %v707_v47  ;;  %v731_v59 = vld [vmem:[#allocation8 + $0xe0] sm:$0xff]  ;;  %v725_v60 = vld [vmem:[#allocation8 + $0xb0] sm:$0xff]  ;;  %v4546_v61 = vsel %vm685_vm9, %v4507_v19, %v693_v50 }
 0x2a5   :  { %v798_v47 = vld [vmem:[#allocation8 + $0x2f8] sm:$0xff] }
 0x2a6   :  { %3443 = vmatpush1.bf16.msra.mxu0 %v3442_v8  ;;  %3699 = vmatpush1.bf16.msra.mxu1 %v3698_v21  ;;  %v1689_v8 = vld [vmem:[#allocation8 + $0x1ed0] sm:$0xff]  ;;  %v1696_v21 = vld [vmem:[#allocation8 + $0x1f08] sm:$0xff] }
 0x2a7   :  { %3445 = vmatprep.subr.bf16.mxu0 %v3444_v11  ;;  %3701 = vmatprep.subr.bf16.mxu1 %v3700_v12  ;;  %v1706_v11 = vld [vmem:[#allocation8 + $0x1f58] sm:$0xff]  ;;  %v3462_v12 = vpack.c.bf16 %v1687_v3, %v1679_v2  ;;  %v3718_v13 = vpack.c.bf16 %v1689_v8, %v1681_v7  ;;  %v3464_v48 = vpack.c.bf16 %v1704_v9, %v1696_v21  ;;  %v733_v2 = vld [vmem:[#allocation8 + $0xf0] sm:$0xff]  ;;  %v740_v3 = vld [vmem:[#allocation8 + $0x128] sm:$0xff] }
 0x2a8   :  { %v3720_v16 = vpack.c.bf16 %v1706_v11, %v1698_v10  ;;  %v750_v7 = vld [vmem:[#allocation8 + $0x178] sm:$0xff]  ;;  %v3734_v8 = vpack.c.bf16 %v731_v59, %v723_v58  ;;  %v3990_v19 = vpack.c.bf16 %v733_v2, %v725_v60  ;;  %v739_v9 = vld [vmem:[#allocation8 + $0x120] sm:$0xff]  ;;  %v741_v11 = vld [vmem:[#allocation8 + $0x130] sm:$0xff] }
 0x2a9   :  { %v747_v10 = vld [vmem:[#allocation8 + $0x160] sm:$0xff]  ;;  %v806_v58 = vld [vmem:[#allocation8 + $0x338] sm:$0xff] }
 0x2aa   :  { %3447 = vmatpush1.bf16.msra.mxu0 %v3446_v18  ;;  %3703 = vmatpush1.bf16.msra.mxu1 %v3702_v20  ;;  %v1705_v18 = vld [vmem:[#allocation8 + $0x1f50] sm:$0xff]  ;;  %v1712_v20 = vld [vmem:[#allocation8 + $0x1f88] sm:$0xff]  ;;  %v814_v59 = vld [vmem:[#allocation8 + $0x378] sm:$0xff] }
 0x2ab   :  { %3449 = vmatprep.subr.bf16.mxu0 %v3448_v25  ;;  %3705 = vmatprep.subr.bf16.mxu1 %v3704_v26  ;;  %v1722_v25 = vld [vmem:[#allocation8 + $0x1fd8] sm:$0xff]  ;;  %v3466_v26 = vpack.c.bf16 %v1703_v15, %v1695_v14  ;;  %v3722_v27 = vpack.c.bf16 %v1705_v18, %v1697_v17  ;;  %v3468_v32 = vpack.c.bf16 %v1720_v23, %v1712_v20  ;;  %v756_v14 = vld [vmem:[#allocation8 + $0x1a8] sm:$0xff]  ;;  %v763_v23 = vld [vmem:[#allocation8 + $0x1e0] sm:$0xff] }
 0x2ac   :  { %v3724_v33 = vpack.c.bf16 %v1722_v25, %v1714_v24  ;;  %v764_v15 = vld [vmem:[#allocation8 + $0x1e8] sm:$0xff]  ;;  %v3738_v17 = vpack.c.bf16 %v747_v10, %v739_v9  ;;  %v757_v24 = vld [vmem:[#allocation8 + $0x1b0] sm:$0xff]  ;;  %v803_v2 = vld [vmem:[#allocation8 + $0x320] sm:$0xff] }
 0x2ad   :  { %v3740_v20 = vpack.c.bf16 %v764_v15, %v756_v14  ;;  %v830_v9 = vld [vmem:[#allocation8 + $0x3f8] sm:$0xff]  ;;  %v827_v14 = vld [vmem:[#allocation8 + $0x3e0] sm:$0xff]  ;;  %v821_v15 = vld [vmem:[#allocation8 + $0x3b0] sm:$0xff] }
 0x2ae   :  { %3451 = vmatpush1.bf16.msra.mxu0 %v3450_v36  ;;  %3707 = vmatpush1.bf16.msra.mxu1 %v3706_v37  ;;  %v1721_v36 = vld [vmem:[#allocation8 + $0x1fd0] sm:$0xff]  ;;  %v708_v37 = vld [vmem:[#allocation8 + $0x28] sm:$0xff] }
 0x2af   :  { %3453 = vmatprep.subr.bf16.mxu0 %v3452_v42  ;;  %3709 = vmatprep.subr.bf16.mxu1 %v3708_v43  ;;  %v718_v42 = vld [vmem:[#allocation8 + $0x78] sm:$0xff]  ;;  %v3470_v43 = vpack.c.bf16 %v1719_v31, %v1711_v28  ;;  %v3726_v44 = vpack.c.bf16 %v1721_v36, %v1713_v35  ;;  %v3728_v45 = vpack.c.bf16 %v716_v40, %v708_v37  ;;  %v780_v28 = vld [vmem:[#allocation8 + $0x268] sm:$0xff]  ;;  %v771_v37 = vld [vmem:[#allocation8 + $0x220] sm:$0xff] }
 0x2b0   :  { %v3984_v46 = vpack.c.bf16 %v718_v42, %v710_v41  ;;  %v774_v31 = vld [vmem:[#allocation8 + $0x238] sm:$0xff]  ;;  %v779_v40 = vld [vmem:[#allocation8 + $0x260] sm:$0xff]  ;;  %v773_v41 = vld [vmem:[#allocation8 + $0x230] sm:$0xff] }
 0x2b1   :  { %v3746_v49 = vpack.c.bf16 %v779_v40, %v771_v37  ;;  %v862_v37 = vld [vmem:[#allocation8 + $0x4f8] sm:$0xff] }
 0x2b2   :  { %3455 = vmatpush1.bf16.msra.mxu0 %v3454_v51  ;;  %3711 = vmatpush1.bf16.msra.mxu1 %v3710_v52  ;;  %v709_v51 = vld [vmem:[#allocation8 + $0x30] sm:$0xff] }
 0x2b3   :  { %3457 = vmatprep.subr.bf16.mxu0 %v3456_v54  ;;  %3713 = vmatprep.subr.bf16.mxu1 %v3712_v55  ;;  %v717_v52 = vld [vmem:[#allocation8 + $0x70] sm:$0xff]  ;;  %v726_v54 = vld [vmem:[#allocation8 + $0xb8] sm:$0xff] }
 0x2b4   :  { %v734_v55 = vld [vmem:[#allocation8 + $0xf8] sm:$0xff]  ;;  %v3986_v57 = vpack.c.bf16 %v717_v52, %v709_v51  ;;  %v787_v52 = vld [vmem:[#allocation8 + $0x2a0] sm:$0xff] }
 0x2b6   :  { %3459 = vmatpush1.bf16.msra.mxu0 %v3458_v62  ;;  %3715 = vmatpush1.bf16.msra.mxu1 %v3714_v1  ;;  %v3732_v62 = vpack.c.bf16 %v732_v53, %v724_v30  ;;  %v3988_v1 = vpack.c.bf16 %v734_v55, %v726_v54  ;;  %v795_v30 = vld [vmem:[#allocation8 + $0x2e0] sm:$0xff]  ;;  %v789_v53 = vld [vmem:[#allocation8 + $0x2b0] sm:$0xff] }
 0x2b7   :  { %3461 = vmatprep.subr.bf16.mxu0 %v3460_v5  ;;  %3717 = vmatprep.subr.bf16.mxu1 %v3716_v6  ;;  %v748_v5 = vld [vmem:[#allocation8 + $0x168] sm:$0xff]  ;;  %v742_v6 = vld [vmem:[#allocation8 + $0x138] sm:$0xff]  ;;  %v797_v55 = vld [vmem:[#allocation8 + $0x2f0] sm:$0xff]  ;;  %v3750_v60 = vpack.c.bf16 %v795_v30, %v787_v52 }
 0x2b8   :  { %v3736_v21 = vpack.c.bf16 %v748_v5, %v740_v3  ;;  %v811_v3 = vld [vmem:[#allocation8 + $0x360] sm:$0xff]  ;;  %v805_v5 = vld [vmem:[#allocation8 + $0x330] sm:$0xff]  ;;  %v878_v52 = vld [vmem:[#allocation8 + $0x578] sm:$0xff] }
 0x2b9   :  { %v3754_v10 = vpack.c.bf16 %v811_v3, %v803_v2  ;;  %v894_v2 = vld [vmem:[#allocation8 + $0x5f8] sm:$0xff] }
 0x2ba   :  { %3463 = vmatpush1.bf16.msra.mxu0 %v3462_v12  ;;  %3719 = vmatpush1.bf16.msra.mxu1 %v3718_v13  ;;  %v3992_v12 = vpack.c.bf16 %v750_v7, %v742_v6  ;;  %v749_v13 = vld [vmem:[#allocation8 + $0x170] sm:$0xff]  ;;  %v4008_v6 = vpack.c.bf16 %v814_v59, %v806_v58 }
 0x2bb   :  { %3465 = vmatprep.subr.bf16.mxu0 %v3464_v48  ;;  %3721 = vmatprep.subr.bf16.mxu1 %v3720_v16  ;;  %v758_v48 = vld [vmem:[#allocation8 + $0x1b8] sm:$0xff]  ;;  %v3994_v18 = vpack.c.bf16 %v749_v13, %v741_v11  ;;  %v813_v7 = vld [vmem:[#allocation8 + $0x370] sm:$0xff]  ;;  %v819_v13 = vld [vmem:[#allocation8 + $0x3a0] sm:$0xff] }
 0x2bc   :  { %v766_v16 = vld [vmem:[#allocation8 + $0x1f8] sm:$0xff]  ;;  %v4010_v11 = vpack.c.bf16 %v813_v7, %v805_v5  ;;  %v877_v59 = vld [vmem:[#allocation8 + $0x570] sm:$0xff]  ;;  %v883_v7 = vld [vmem:[#allocation8 + $0x5a0] sm:$0xff] }
 0x2bd   :  { %v3996_v25 = vpack.c.bf16 %v766_v16, %v758_v48  ;;  %v829_v16 = vld [vmem:[#allocation8 + $0x3f0] sm:$0xff] }
 0x2be   :  { %3467 = vmatpush1.bf16.msra.mxu0 %v3466_v26  ;;  %3723 = vmatpush1.bf16.msra.mxu1 %v3722_v27  ;;  %v765_v26 = vld [vmem:[#allocation8 + $0x1f0] sm:$0xff]  ;;  %v772_v27 = vld [vmem:[#allocation8 + $0x228] sm:$0xff] }
 0x2bf   :  { %3469 = vmatprep.subr.bf16.mxu0 %v3468_v32  ;;  %3725 = vmatprep.subr.bf16.mxu1 %v3724_v33  ;;  %v782_v32 = vld [vmem:[#allocation8 + $0x278] sm:$0xff]  ;;  %v3998_v35 = vpack.c.bf16 %v765_v26, %v757_v24  ;;  %v3744_v36 = vpack.c.bf16 %v780_v28, %v772_v27  ;;  %v4014_v24 = vpack.c.bf16 %v829_v16, %v821_v15  ;;  %v835_v26 = vld [vmem:[#allocation8 + $0x420] sm:$0xff]  ;;  %v837_v28 = vld [vmem:[#allocation8 + $0x430] sm:$0xff] }
 0x2c0   :  { %v4000_v42 = vpack.c.bf16 %v782_v32, %v774_v31  ;;  %v843_v27 = vld [vmem:[#allocation8 + $0x460] sm:$0xff]  ;;  %v845_v32 = vld [vmem:[#allocation8 + $0x470] sm:$0xff] }
 0x2c1   :  { %v3762_v40 = vpack.c.bf16 %v843_v27, %v835_v26  ;;  %v899_v16 = vld [vmem:[#allocation8 + $0x620] sm:$0xff]  ;;  %v926_v26 = vld [vmem:[#allocation8 + $0x6f8] sm:$0xff] }
 0x2c2   :  { %3471 = vmatpush1.bf16.msra.mxu0 %v3470_v43  ;;  %3727 = vmatpush1.bf16.msra.mxu1 %v3726_v44  ;;  %v781_v43 = vld [vmem:[#allocation8 + $0x270] sm:$0xff]  ;;  %v788_v44 = vld [vmem:[#allocation8 + $0x2a8] sm:$0xff] }
 0x2c3   :  { %3729 = vmatprep.subr.bf16.mxu0 %v3728_v45  ;;  %3985 = vmatprep.subr.bf16.mxu1 %v3984_v46  ;;  %v796_v45 = vld [vmem:[#allocation8 + $0x2e8] sm:$0xff]  ;;  %v790_v46 = vld [vmem:[#allocation8 + $0x2b8] sm:$0xff]  ;;  %v4002_v50 = vpack.c.bf16 %v781_v43, %v773_v41  ;;  %v4018_v41 = vpack.c.bf16 %v845_v32, %v837_v28  ;;  %v851_v43 = vld [vmem:[#allocation8 + $0x4a0] sm:$0xff] }
 0x2c4   :  { %v3748_v51 = vpack.c.bf16 %v796_v45, %v788_v44  ;;  %v4004_v54 = vpack.c.bf16 %v798_v47, %v790_v46  ;;  %v859_v44 = vld [vmem:[#allocation8 + $0x4e0] sm:$0xff]  ;;  %v853_v45 = vld [vmem:[#allocation8 + $0x4b0] sm:$0xff] }
 0x2c5   :  { %2005 = vmatmul.mubr.f32.vlgmr.msra.gmra.mrb[8].mxu0 %v4546_v61  ;;  %2289 = vmatmul.mubr.f32.vlgmr.msra.gmra.mrb[8].mxu1 %v4546_v61  ;;  %v861_v47 = vld [vmem:[#allocation8 + $0x4f0] sm:$0xff]  ;;  %v3766_v30 = vpack.c.bf16 %v859_v44, %v851_v43  ;;  %v915_v32 = vld [vmem:[#allocation8 + $0x6a0] sm:$0xff]  ;;  %v942_v43 = vld [vmem:[#allocation8 + $0x778] sm:$0xff] }
 0x2c6   :  { %3731 = vmatpush1.bf16.msra.mxu0 %v3730_v56  ;;  %2359 = vmatprep.mubr.f32.mxu0 %v4490_v22  ;;  %v804_v56 = vld [vmem:[#allocation8 + $0x328] sm:$0xff] }
 0x2c7   :  { %3987 = vmatpush1.bf16.msra.mxu1 %v3986_v57  ;;  %2643 = vmatprep.mubr.f32.mxu1 %v4490_v22  ;;  %v755_v22 = vld [vmem:[#allocation8 + $0x1a0] sm:$0xff]  ;;  %v812_v57 = vld [vmem:[#allocation8 + $0x368] sm:$0xff] }
 0x2c8   :  { %3733 = vmatprep.subr.bf16.mxu0 %v3732_v62  ;;  %3989 = vmatprep.subr.bf16.mxu1 %v3988_v1  ;;  %v3742_v33 = vpack.c.bf16 %v763_v23, %v755_v22  ;;  %v4006_v62 = vpack.c.bf16 %v797_v55, %v789_v53  ;;  %v3752_v1 = vpack.c.bf16 %v812_v57, %v804_v56  ;;  %v846_v22 = vld [vmem:[#allocation8 + $0x478] sm:$0xff]  ;;  %v867_v55 = vld [vmem:[#allocation8 + $0x520] sm:$0xff]  ;;  %v869_v57 = vld [vmem:[#allocation8 + $0x530] sm:$0xff] }
 0x2c9   :  { %v3758_v23 = vpack.c.bf16 %v827_v14, %v819_v13  ;;  %v4022_v53 = vpack.c.bf16 %v861_v47, %v853_v45  ;;  %v875_v56 = vld [vmem:[#allocation8 + $0x560] sm:$0xff]  ;;  %v4026_v5 = vpack.c.bf16 %v877_v59, %v869_v57  ;;  %v910_v13 = vld [vmem:[#allocation8 + $0x678] sm:$0xff] }
 0x2ca   :  { %3735 = vmatpush1.bf16.msra.mxu0 %v3734_v8  ;;  %v820_v8 = vld [vmem:[#allocation8 + $0x3a8] sm:$0xff]  ;;  %v3770_v3 = vpack.c.bf16 %v875_v56, %v867_v55  ;;  %v931_v47 = vld [vmem:[#allocation8 + $0x720] sm:$0xff]  ;;  %v958_v55 = vld [vmem:[#allocation8 + $0x7f8] sm:$0xff] }
 0x2cb   :  { %3991 = vmatpush1.bf16.msra.mxu1 %v3990_v19  ;;  %3737 = vmatprep.subr.bf16.mxu0 %v3736_v21  ;;  %v828_v19 = vld [vmem:[#allocation8 + $0x3e8] sm:$0xff]  ;;  %v822_v21 = vld [vmem:[#allocation8 + $0x3b8] sm:$0xff]  ;;  %v947_v59 = vld [vmem:[#allocation8 + $0x7a0] sm:$0xff] }
 0x2cc   :  { %3993 = vmatprep.subr.bf16.mxu1 %v3992_v12  ;;  %v3756_v12 = vpack.c.bf16 %v828_v19, %v820_v8  ;;  %v4012_v48 = vpack.c.bf16 %v830_v9, %v822_v21  ;;  %v891_v8 = vld [vmem:[#allocation8 + $0x5e0] sm:$0xff]  ;;  %v885_v19 = vld [vmem:[#allocation8 + $0x5b0] sm:$0xff] }
 0x2cd   :  { %v893_v9 = vld [vmem:[#allocation8 + $0x5f0] sm:$0xff]  ;;  %v3774_v14 = vpack.c.bf16 %v891_v8, %v883_v7  ;;  %v974_v7 = vld [vmem:[#allocation8 + $0x878] sm:$0xff] }
 0x2ce   :  { %3739 = vmatpush1.bf16.msra.mxu0 %v3738_v17  ;;  %v836_v17 = vld [vmem:[#allocation8 + $0x428] sm:$0xff]  ;;  %v4030_v15 = vpack.c.bf16 %v893_v9, %v885_v19  ;;  %v963_v9 = vld [vmem:[#allocation8 + $0x820] sm:$0xff] }
 0x2cf   :  { %3995 = vmatpush1.bf16.msra.mxu1 %v3994_v18  ;;  %3741 = vmatprep.subr.bf16.mxu0 %v3740_v20  ;;  %v844_v18 = vld [vmem:[#allocation8 + $0x468] sm:$0xff]  ;;  %v838_v20 = vld [vmem:[#allocation8 + $0x438] sm:$0xff] }
 0x2d0   :  { %3997 = vmatprep.subr.bf16.mxu1 %v3996_v25  ;;  %v3760_v25 = vpack.c.bf16 %v844_v18, %v836_v17  ;;  %v4016_v31 = vpack.c.bf16 %v846_v22, %v838_v20  ;;  %v907_v17 = vld [vmem:[#allocation8 + $0x660] sm:$0xff]  ;;  %v901_v18 = vld [vmem:[#allocation8 + $0x630] sm:$0xff] }
 0x2d1   :  { %v909_v22 = vld [vmem:[#allocation8 + $0x670] sm:$0xff]  ;;  %v3778_v27 = vpack.c.bf16 %v907_v17, %v899_v16  ;;  %v982_v16 = vld [vmem:[#allocation8 + $0x8b8] sm:$0xff] }
 0x2d2   :  { %3743 = vmatpush1.bf16.msra.mxu0 %v3742_v33  ;;  %v852_v33 = vld [vmem:[#allocation8 + $0x4a8] sm:$0xff]  ;;  %v4034_v28 = vpack.c.bf16 %v909_v22, %v901_v18  ;;  %v990_v17 = vld [vmem:[#allocation8 + $0x8f8] sm:$0xff]  ;;  %v987_v22 = vld [vmem:[#allocation8 + $0x8e0] sm:$0xff] }
 0x2d3   :  { %3999 = vmatpush1.bf16.msra.mxu1 %v3998_v35  ;;  %3745 = vmatprep.subr.bf16.mxu0 %v3744_v36  ;;  %v860_v35 = vld [vmem:[#allocation8 + $0x4e8] sm:$0xff]  ;;  %v854_v36 = vld [vmem:[#allocation8 + $0x4b8] sm:$0xff] }
 0x2d4   :  { %4001 = vmatprep.subr.bf16.mxu1 %v4000_v42  ;;  %v3764_v42 = vpack.c.bf16 %v860_v35, %v852_v33  ;;  %v4020_v46 = vpack.c.bf16 %v862_v37, %v854_v36  ;;  %v923_v33 = vld [vmem:[#allocation8 + $0x6e0] sm:$0xff]  ;;  %v917_v35 = vld [vmem:[#allocation8 + $0x6b0] sm:$0xff] }
 0x2d5   :  { %v925_v37 = vld [vmem:[#allocation8 + $0x6f0] sm:$0xff]  ;;  %v3782_v44 = vpack.c.bf16 %v923_v33, %v915_v32  ;;  %v1006_v32 = vld [vmem:[#allocation8 + $0x978] sm:$0xff] }
 0x2d6   :  { %3747 = vmatpush1.bf16.msra.mxu0 %v3746_v49  ;;  %v868_v49 = vld [vmem:[#allocation8 + $0x528] sm:$0xff]  ;;  %v4038_v45 = vpack.c.bf16 %v925_v37, %v917_v35  ;;  %v995_v37 = vld [vmem:[#allocation8 + $0x920] sm:$0xff] }
 0x2d7   :  { %4003 = vmatpush1.bf16.msra.mxu1 %v4002_v50  ;;  %3749 = vmatprep.subr.bf16.mxu0 %v3748_v51  ;;  %v876_v50 = vld [vmem:[#allocation8 + $0x568] sm:$0xff]  ;;  %v870_v51 = vld [vmem:[#allocation8 + $0x538] sm:$0xff] }
 0x2d8   :  { %4005 = vmatprep.subr.bf16.mxu1 %v4004_v54  ;;  %v3768_v54 = vpack.c.bf16 %v876_v50, %v868_v49  ;;  %v4024_v58 = vpack.c.bf16 %v878_v52, %v870_v51  ;;  %v939_v49 = vld [vmem:[#allocation8 + $0x760] sm:$0xff]  ;;  %v933_v50 = vld [vmem:[#allocation8 + $0x730] sm:$0xff] }
 0x2d9   :  { %v941_v52 = vld [vmem:[#allocation8 + $0x770] sm:$0xff]  ;;  %v3786_v56 = vpack.c.bf16 %v939_v49, %v931_v47 }
 0x2da   :  { %3751 = vmatpush1.bf16.msra.mxu0 %v3750_v60  ;;  %v884_v60 = vld [vmem:[#allocation8 + $0x5a8] sm:$0xff]  ;;  %v4042_v57 = vpack.c.bf16 %v941_v52, %v933_v50  ;;  %v1019_v52 = vld [vmem:[#allocation8 + $0x9e0] sm:$0xff] }
 0x2db   :  { %4007 = vmatpush1.bf16.msra.mxu1 %v4006_v62  ;;  %3753 = vmatprep.subr.bf16.mxu0 %v3752_v1  ;;  %v892_v62 = vld [vmem:[#allocation8 + $0x5e8] sm:$0xff]  ;;  %v886_v1 = vld [vmem:[#allocation8 + $0x5b8] sm:$0xff] }
 0x2dc   :  { %4009 = vmatprep.subr.bf16.mxu1 %v4008_v6  ;;  %v3772_v6 = vpack.c.bf16 %v892_v62, %v884_v60  ;;  %v4028_v21 = vpack.c.bf16 %v894_v2, %v886_v1  ;;  %v955_v60 = vld [vmem:[#allocation8 + $0x7e0] sm:$0xff]  ;;  %v949_v62 = vld [vmem:[#allocation8 + $0x7b0] sm:$0xff] }
 0x2dd   :  { %v957_v2 = vld [vmem:[#allocation8 + $0x7f0] sm:$0xff]  ;;  %v3790_v8 = vpack.c.bf16 %v955_v60, %v947_v59 }
 0x2de   :  { %3755 = vmatpush1.bf16.msra.mxu0 %v3754_v10  ;;  %v900_v10 = vld [vmem:[#allocation8 + $0x628] sm:$0xff]  ;;  %v4046_v19 = vpack.c.bf16 %v957_v2, %v949_v62  ;;  %v1027_v62 = vld [vmem:[#allocation8 + $0xa20] sm:$0xff]  ;;  %v1029_v2 = vld [vmem:[#allocation8 + $0xa30] sm:$0xff] }
 0x2df   :  { %4011 = vmatpush1.bf16.msra.mxu1 %v4010_v11  ;;  %3757 = vmatprep.subr.bf16.mxu0 %v3756_v12  ;;  %v908_v11 = vld [vmem:[#allocation8 + $0x668] sm:$0xff]  ;;  %v902_v12 = vld [vmem:[#allocation8 + $0x638] sm:$0xff] }
 0x2e0   :  { %4013 = vmatprep.subr.bf16.mxu1 %v4012_v48  ;;  %v3776_v48 = vpack.c.bf16 %v908_v11, %v900_v10  ;;  %v4032_v20 = vpack.c.bf16 %v910_v13, %v902_v12  ;;  %v971_v10 = vld [vmem:[#allocation8 + $0x860] sm:$0xff]  ;;  %v965_v12 = vld [vmem:[#allocation8 + $0x830] sm:$0xff] }
 0x2e1   :  { %v973_v13 = vld [vmem:[#allocation8 + $0x870] sm:$0xff] }
 0x2e2   :  { %3759 = vmatpush1.bf16.msra.mxu0 %v3758_v23  ;;  %v916_v23 = vld [vmem:[#allocation8 + $0x6a8] sm:$0xff]  ;;  %v4050_v18 = vpack.c.bf16 %v973_v13, %v965_v12  ;;  %v1051_v12 = vld [vmem:[#allocation8 + $0xae0] sm:$0xff]  ;;  %v1045_v13 = vld [vmem:[#allocation8 + $0xab0] sm:$0xff] }
 0x2e3   :  { %4015 = vmatpush1.bf16.msra.mxu1 %v4014_v24  ;;  %3761 = vmatprep.subr.bf16.mxu0 %v3760_v25  ;;  %v924_v24 = vld [vmem:[#allocation8 + $0x6e8] sm:$0xff]  ;;  %v918_v25 = vld [vmem:[#allocation8 + $0x6b8] sm:$0xff] }
 0x2e4   :  { %4017 = vmatprep.subr.bf16.mxu1 %v4016_v31  ;;  %v3780_v31 = vpack.c.bf16 %v924_v24, %v916_v23  ;;  %v4036_v36 = vpack.c.bf16 %v926_v26, %v918_v25  ;;  %v981_v23 = vld [vmem:[#allocation8 + $0x8b0] sm:$0xff]  ;;  %v996_v26 = vld [vmem:[#allocation8 + $0x928] sm:$0xff] }
 0x2e5   :  { %v989_v25 = vld [vmem:[#allocation8 + $0x8f0] sm:$0xff] }
 0x2e6   :  { %3763 = vmatpush1.bf16.msra.mxu0 %v3762_v40  ;;  %v932_v40 = vld [vmem:[#allocation8 + $0x728] sm:$0xff]  ;;  %v4054_v35 = vpack.c.bf16 %v989_v25, %v981_v23  ;;  %v1067_v25 = vld [vmem:[#allocation8 + $0xb60] sm:$0xff] }
 0x2e7   :  { %4019 = vmatpush1.bf16.msra.mxu1 %v4018_v41  ;;  %3765 = vmatprep.subr.bf16.mxu0 %v3764_v42  ;;  %v940_v41 = vld [vmem:[#allocation8 + $0x768] sm:$0xff]  ;;  %v934_v42 = vld [vmem:[#allocation8 + $0x738] sm:$0xff] }
 0x2e8   :  { %4021 = vmatprep.subr.bf16.mxu1 %v4020_v46  ;;  %v3784_v46 = vpack.c.bf16 %v940_v41, %v932_v40  ;;  %v4040_v51 = vpack.c.bf16 %v942_v43, %v934_v42  ;;  %v1003_v40 = vld [vmem:[#allocation8 + $0x960] sm:$0xff]  ;;  %v997_v41 = vld [vmem:[#allocation8 + $0x930] sm:$0xff] }
 0x2e9   :  { %v1005_v43 = vld [vmem:[#allocation8 + $0x970] sm:$0xff]  ;;  %v3802_v47 = vpack.c.bf16 %v1003_v40, %v995_v37 }
 0x2ea   :  { %3767 = vmatpush1.bf16.msra.mxu0 %v3766_v30  ;;  %v948_v30 = vld [vmem:[#allocation8 + $0x7a8] sm:$0xff]  ;;  %v4058_v49 = vpack.c.bf16 %v1005_v43, %v997_v41  ;;  %v1075_v41 = vld [vmem:[#allocation8 + $0xba0] sm:$0xff]  ;;  %v1077_v43 = vld [vmem:[#allocation8 + $0xbb0] sm:$0xff] }
 0x2eb   :  { %4023 = vmatpush1.bf16.msra.mxu1 %v4022_v53  ;;  %3769 = vmatprep.subr.bf16.mxu0 %v3768_v54  ;;  %v956_v53 = vld [vmem:[#allocation8 + $0x7e8] sm:$0xff]  ;;  %v950_v54 = vld [vmem:[#allocation8 + $0x7b8] sm:$0xff] }
 0x2ec   :  { %4025 = vmatprep.subr.bf16.mxu1 %v4024_v58  ;;  %v3788_v58 = vpack.c.bf16 %v956_v53, %v948_v30  ;;  %v4044_v1 = vpack.c.bf16 %v958_v55, %v950_v54  ;;  %v1013_v30 = vld [vmem:[#allocation8 + $0x9b0] sm:$0xff]  ;;  %v1028_v54 = vld [vmem:[#allocation8 + $0xa28] sm:$0xff] }
 0x2ed   :  { %v1036_v55 = vld [vmem:[#allocation8 + $0xa68] sm:$0xff] }
 0x2ee   :  { %3771 = vmatpush1.bf16.msra.mxu0 %v3770_v3  ;;  %v964_v3 = vld [vmem:[#allocation8 + $0x828] sm:$0xff]  ;;  %v3808_v60 = vpack.c.bf16 %v1036_v55, %v1028_v54  ;;  %v1101_v55 = vld [vmem:[#allocation8 + $0xc70] sm:$0xff] }
 0x2ef   :  { %4027 = vmatpush1.bf16.msra.mxu1 %v4026_v5  ;;  %3773 = vmatprep.subr.bf16.mxu0 %v3772_v6  ;;  %v972_v5 = vld [vmem:[#allocation8 + $0x868] sm:$0xff]  ;;  %v966_v6 = vld [vmem:[#allocation8 + $0x838] sm:$0xff] }
 0x2f0   :  { %4029 = vmatprep.subr.bf16.mxu1 %v4028_v21  ;;  %v3792_v21 = vpack.c.bf16 %v972_v5, %v964_v3  ;;  %v4048_v11 = vpack.c.bf16 %v974_v7, %v966_v6  ;;  %v1037_v5 = vld [vmem:[#allocation8 + $0xa70] sm:$0xff]  ;;  %v1044_v6 = vld [vmem:[#allocation8 + $0xaa8] sm:$0xff] }
 0x2f1   :  { %v1052_v7 = vld [vmem:[#allocation8 + $0xae8] sm:$0xff] }
 0x2f2   :  { %3775 = vmatpush1.bf16.msra.mxu0 %v3774_v14  ;;  %v980_v14 = vld [vmem:[#allocation8 + $0x8a8] sm:$0xff] }
 0x2f3   :  { %4031 = vmatpush1.bf16.msra.mxu1 %v4030_v15  ;;  %3777 = vmatprep.subr.bf16.mxu0 %v3776_v48  ;;  %v988_v15 = vld [vmem:[#allocation8 + $0x8e8] sm:$0xff]  ;;  %v3794_v48 = vpack.c.bf16 %v971_v10, %v963_v9  ;;  %v4066_v9 = vpack.c.bf16 %v1037_v5, %v1029_v2  ;;  %v3812_v10 = vpack.c.bf16 %v1052_v7, %v1044_v6  ;;  %v1107_v2 = vld [vmem:[#allocation8 + $0xca0] sm:$0xff]  ;;  %v1109_v5 = vld [vmem:[#allocation8 + $0xcb0] sm:$0xff] }
 0x2f4   :  { %4033 = vmatprep.subr.bf16.mxu1 %v4032_v20  ;;  %v979_v20 = vld [vmem:[#allocation8 + $0x8a0] sm:$0xff]  ;;  %v3796_v24 = vpack.c.bf16 %v988_v15, %v980_v14  ;;  %v1053_v15 = vld [vmem:[#allocation8 + $0xaf0] sm:$0xff] }
 0x2f5   :  { %v3798_v33 = vpack.c.bf16 %v987_v22, %v979_v20  ;;  %v4070_v22 = vpack.c.bf16 %v1053_v15, %v1045_v13  ;;  %v1117_v7 = vld [vmem:[#allocation8 + $0xcf0] sm:$0xff]  ;;  %v1123_v13 = vld [vmem:[#allocation8 + $0xd20] sm:$0xff] }
 0x2f6   :  { %3779 = vmatpush1.bf16.msra.mxu0 %v3778_v27  ;;  %v1004_v27 = vld [vmem:[#allocation8 + $0x968] sm:$0xff]  ;;  %v1125_v15 = vld [vmem:[#allocation8 + $0xd30] sm:$0xff] }
 0x2f7   :  { %4035 = vmatpush1.bf16.msra.mxu1 %v4034_v28  ;;  %3781 = vmatprep.subr.bf16.mxu0 %v3780_v31  ;;  %v4052_v28 = vpack.c.bf16 %v990_v17, %v982_v16  ;;  %v998_v31 = vld [vmem:[#allocation8 + $0x938] sm:$0xff]  ;;  %v1068_v16 = vld [vmem:[#allocation8 + $0xb68] sm:$0xff] }
 0x2f8   :  { %4037 = vmatprep.subr.bf16.mxu1 %v4036_v36  ;;  %v3800_v36 = vpack.c.bf16 %v1004_v27, %v996_v26  ;;  %v4056_v42 = vpack.c.bf16 %v1006_v32, %v998_v31  ;;  %v1062_v17 = vld [vmem:[#allocation8 + $0xb38] sm:$0xff]  ;;  %v1061_v26 = vld [vmem:[#allocation8 + $0xb30] sm:$0xff]  ;;  %v1076_v31 = vld [vmem:[#allocation8 + $0xba8] sm:$0xff] }
 0x2f9   :  { %v1084_v32 = vld [vmem:[#allocation8 + $0xbe8] sm:$0xff] }
 0x2fa   :  { %3783 = vmatpush1.bf16.msra.mxu0 %v3782_v44  ;;  %v1012_v44 = vld [vmem:[#allocation8 + $0x9a8] sm:$0xff]  ;;  %v3820_v40 = vpack.c.bf16 %v1084_v32, %v1076_v31  ;;  %v1149_v32 = vld [vmem:[#allocation8 + $0xdf0] sm:$0xff] }
 0x2fb   :  { %4039 = vmatpush1.bf16.msra.mxu1 %v4038_v45  ;;  %3785 = vmatprep.subr.bf16.mxu0 %v3784_v46  ;;  %v1020_v45 = vld [vmem:[#allocation8 + $0x9e8] sm:$0xff]  ;;  %v1014_v46 = vld [vmem:[#allocation8 + $0x9b8] sm:$0xff] }
 0x2fc   :  { %4041 = vmatprep.subr.bf16.mxu1 %v4040_v51  ;;  %v3804_v50 = vpack.c.bf16 %v1020_v45, %v1012_v44  ;;  %v1011_v51 = vld [vmem:[#allocation8 + $0x9a0] sm:$0xff]  ;;  %v1085_v45 = vld [vmem:[#allocation8 + $0xbf0] sm:$0xff] }
 0x2fe   :  { %3787 = vmatpush1.bf16.msra.mxu0 %v3786_v56  ;;  %v1030_v56 = vld [vmem:[#allocation8 + $0xa38] sm:$0xff] }
 0x2ff   :  { %4043 = vmatpush1.bf16.msra.mxu1 %v4042_v57  ;;  %3789 = vmatprep.subr.bf16.mxu0 %v3788_v58  ;;  %v1038_v57 = vld [vmem:[#allocation8 + $0xa78] sm:$0xff]  ;;  %v3806_v58 = vpack.c.bf16 %v1019_v52, %v1011_v51  ;;  %v4078_v51 = vpack.c.bf16 %v1085_v45, %v1077_v43  ;;  %v1155_v43 = vld [vmem:[#allocation8 + $0xe20] sm:$0xff]  ;;  %v1157_v45 = vld [vmem:[#allocation8 + $0xe30] sm:$0xff] }
 0x300   :  { %4045 = vmatprep.subr.bf16.mxu1 %v4044_v1  ;;  %v1035_v1 = vld [vmem:[#allocation8 + $0xa60] sm:$0xff]  ;;  %v4064_v3 = vpack.c.bf16 %v1038_v57, %v1030_v56  ;;  %v1108_v56 = vld [vmem:[#allocation8 + $0xca8] sm:$0xff] }
 0x301   :  { %v1116_v57 = vld [vmem:[#allocation8 + $0xce8] sm:$0xff] }
 0x302   :  { %3791 = vmatpush1.bf16.msra.mxu0 %v3790_v8  ;;  %v1046_v8 = vld [vmem:[#allocation8 + $0xab8] sm:$0xff] }
 0x303   :  { %4047 = vmatpush1.bf16.msra.mxu1 %v4046_v19  ;;  %3793 = vmatprep.subr.bf16.mxu0 %v3792_v21  ;;  %v1054_v19 = vld [vmem:[#allocation8 + $0xaf8] sm:$0xff]  ;;  %v3810_v21 = vpack.c.bf16 %v1035_v1, %v1027_v62  ;;  %v3828_v1 = vpack.c.bf16 %v1116_v57, %v1108_v56  ;;  %v1181_v57 = vld [vmem:[#allocation8 + $0xef0] sm:$0xff] }
 0x304   :  { %4049 = vmatprep.subr.bf16.mxu1 %v4048_v11  ;;  %v1043_v11 = vld [vmem:[#allocation8 + $0xaa0] sm:$0xff]  ;;  %v4068_v14 = vpack.c.bf16 %v1054_v19, %v1046_v8  ;;  %v1124_v8 = vld [vmem:[#allocation8 + $0xd28] sm:$0xff] }
 0x305   :  { %2360 = vmatmul.mubr.f32.vlgmr.msra.gmra.mrb[10].mxu0 %v4495_v29  ;;  %v3814_v20 = vpack.c.bf16 %v1051_v12, %v1043_v11  ;;  %v1132_v19 = vld [vmem:[#allocation8 + $0xd68] sm:$0xff]  ;;  %v4086_v11 = vpack.c.bf16 %v1117_v7, %v1109_v5  ;;  %v1187_v5 = vld [vmem:[#allocation8 + $0xf20] sm:$0xff]  ;;  %v1189_v7 = vld [vmem:[#allocation8 + $0xf30] sm:$0xff] }
 0x306   :  { %2644 = vmatmul.mubr.f32.vlgmr.msra.gmra.mrb[10].mxu1 %v4495_v29  ;;  %3795 = vmatpush1.bf16.msra.mxu0 %v3794_v48  ;;  %v1022_v29 = vld [vmem:[#allocation8 + $0x9f8] sm:$0xff]  ;;  %v1060_v48 = vld [vmem:[#allocation8 + $0xb28] sm:$0xff]  ;;  %v3832_v12 = vpack.c.bf16 %v1132_v19, %v1124_v8  ;;  %v1197_v19 = vld [vmem:[#allocation8 + $0xf70] sm:$0xff] }
 0x307   :  { %2430 = vmatprep.mubr.f32.mxu0 %v4499_v38  ;;  %4051 = vmatpush1.bf16.msra.mxu1 %v4050_v18  ;;  %v4060_v53 = vpack.c.bf16 %v1022_v29, %v1014_v46  ;;  %v1070_v18 = vld [vmem:[#allocation8 + $0xb78] sm:$0xff]  ;;  %v3816_v23 = vpack.c.bf16 %v1068_v16, %v1060_v48  ;;  %v1092_v46 = vld [vmem:[#allocation8 + $0xc28] sm:$0xff]  ;;  %v1133_v16 = vld [vmem:[#allocation8 + $0xd70] sm:$0xff] }
 0x308   :  { %2714 = vmatprep.mubr.f32.mxu1 %v4499_v38  ;;  %3797 = vmatprep.subr.bf16.mxu0 %v3796_v24  ;;  %v1021_v38 = vld [vmem:[#allocation8 + $0x9f0] sm:$0xff]  ;;  %v1059_v24 = vld [vmem:[#allocation8 + $0xb20] sm:$0xff]  ;;  %v4072_v27 = vpack.c.bf16 %v1070_v18, %v1062_v17  ;;  %v1100_v29 = vld [vmem:[#allocation8 + $0xc68] sm:$0xff] }
 0x309   :  { %4053 = vmatprep.subr.bf16.mxu1 %v4052_v28  ;;  %v4062_v59 = vpack.c.bf16 %v1021_v38, %v1013_v30  ;;  %v1069_v28 = vld [vmem:[#allocation8 + $0xb70] sm:$0xff]  ;;  %v3824_v52 = vpack.c.bf16 %v1100_v29, %v1092_v46  ;;  %v1091_v30 = vld [vmem:[#allocation8 + $0xc20] sm:$0xff]  ;;  %v1140_v17 = vld [vmem:[#allocation8 + $0xda8] sm:$0xff] }
 0x30a   :  { %3799 = vmatpush1.bf16.msra.mxu0 %v3798_v33  ;;  %v1078_v33 = vld [vmem:[#allocation8 + $0xbb8] sm:$0xff]  ;;  %v4074_v37 = vpack.c.bf16 %v1069_v28, %v1061_v26  ;;  %v1093_v38 = vld [vmem:[#allocation8 + $0xc30] sm:$0xff]  ;;  %v1148_v18 = vld [vmem:[#allocation8 + $0xde8] sm:$0xff] }
 0x30b   :  { %4055 = vmatpush1.bf16.msra.mxu1 %v4054_v35  ;;  %3801 = vmatprep.subr.bf16.mxu0 %v3800_v36  ;;  %v1086_v35 = vld [vmem:[#allocation8 + $0xbf8] sm:$0xff]  ;;  %v3818_v36 = vpack.c.bf16 %v1067_v25, %v1059_v24  ;;  %v4082_v62 = vpack.c.bf16 %v1101_v55, %v1093_v38  ;;  %v4090_v24 = vpack.c.bf16 %v1133_v16, %v1125_v15  ;;  %v1139_v26 = vld [vmem:[#allocation8 + $0xda0] sm:$0xff]  ;;  %v1141_v28 = vld [vmem:[#allocation8 + $0xdb0] sm:$0xff] }
 0x30c   :  { %4057 = vmatprep.subr.bf16.mxu1 %v4056_v42  ;;  %v1083_v42 = vld [vmem:[#allocation8 + $0xbe0] sm:$0xff]  ;;  %v4076_v44 = vpack.c.bf16 %v1086_v35, %v1078_v33  ;;  %v3836_v25 = vpack.c.bf16 %v1148_v18, %v1140_v17  ;;  %v1156_v33 = vld [vmem:[#allocation8 + $0xe28] sm:$0xff]  ;;  %v1165_v29 = vld [vmem:[#allocation8 + $0xe70] sm:$0xff] }
 0x30d   :  { %v1164_v35 = vld [vmem:[#allocation8 + $0xe68] sm:$0xff]  ;;  %v1171_v38 = vld [vmem:[#allocation8 + $0xea0] sm:$0xff]  ;;  %v1173_v55 = vld [vmem:[#allocation8 + $0xeb0] sm:$0xff] }
 0x30e   :  { %3803 = vmatpush1.bf16.msra.mxu0 %v3802_v47  ;;  %v1094_v47 = vld [vmem:[#allocation8 + $0xc38] sm:$0xff]  ;;  %v1203_v15 = vld [vmem:[#allocation8 + $0xfa0] sm:$0xff]  ;;  %v1205_v16 = vld [vmem:[#allocation8 + $0xfb0] sm:$0xff] }
 0x30f   :  { %4059 = vmatpush1.bf16.msra.mxu1 %v4058_v49  ;;  %3805 = vmatprep.subr.bf16.mxu0 %v3804_v50  ;;  %v1102_v49 = vld [vmem:[#allocation8 + $0xc78] sm:$0xff]  ;;  %v3822_v50 = vpack.c.bf16 %v1083_v42, %v1075_v41  ;;  %v4094_v41 = vpack.c.bf16 %v1149_v32, %v1141_v28  ;;  %v3840_v42 = vpack.c.bf16 %v1164_v35, %v1156_v33  ;;  %v1213_v18 = vld [vmem:[#allocation8 + $0xff0] sm:$0xff]  ;;  %v1219_v28 = vld [vmem:[#allocation8 + $0x1020] sm:$0xff] }
 0x310   :  { %4061 = vmatprep.subr.bf16.mxu1 %v4060_v53  ;;  %v1099_v53 = vld [vmem:[#allocation8 + $0xc60] sm:$0xff]  ;;  %v4080_v54 = vpack.c.bf16 %v1102_v49, %v1094_v47  ;;  %v1172_v47 = vld [vmem:[#allocation8 + $0xea8] sm:$0xff]  ;;  %v1221_v33 = vld [vmem:[#allocation8 + $0x1030] sm:$0xff] }
 0x311   :  { %v1180_v49 = vld [vmem:[#allocation8 + $0xee8] sm:$0xff]  ;;  %v1229_v35 = vld [vmem:[#allocation8 + $0x1070] sm:$0xff] }
 0x312   :  { %3807 = vmatpush1.bf16.msra.mxu0 %v3806_v58  ;;  %v1110_v58 = vld [vmem:[#allocation8 + $0xcb8] sm:$0xff] }
 0x313   :  { %4063 = vmatpush1.bf16.msra.mxu1 %v4062_v59  ;;  %3809 = vmatprep.subr.bf16.mxu0 %v3808_v60  ;;  %v1118_v59 = vld [vmem:[#allocation8 + $0xcf8] sm:$0xff]  ;;  %v3826_v60 = vpack.c.bf16 %v1099_v53, %v1091_v30  ;;  %v4098_v30 = vpack.c.bf16 %v1165_v29, %v1157_v45  ;;  %v3844_v53 = vpack.c.bf16 %v1180_v49, %v1172_v47  ;;  %v1243_v45 = vld [vmem:[#allocation8 + $0x10e0] sm:$0xff]  ;;  %v1245_v47 = vld [vmem:[#allocation8 + $0x10f0] sm:$0xff] }
 0x314   :  { %4065 = vmatprep.subr.bf16.mxu1 %v4064_v3  ;;  %v1115_v3 = vld [vmem:[#allocation8 + $0xce0] sm:$0xff]  ;;  %v4084_v6 = vpack.c.bf16 %v1118_v59, %v1110_v58  ;;  %v1188_v58 = vld [vmem:[#allocation8 + $0xf28] sm:$0xff] }
 0x315   :  { %v1196_v59 = vld [vmem:[#allocation8 + $0xf68] sm:$0xff] }
 0x316   :  { %3811 = vmatpush1.bf16.msra.mxu0 %v3810_v21  ;;  %v1126_v21 = vld [vmem:[#allocation8 + $0xd38] sm:$0xff]  ;;  %v1252_v49 = vld [vmem:[#allocation8 + $0x1128] sm:$0xff] }
 0x317   :  { %4067 = vmatpush1.bf16.msra.mxu1 %v4066_v9  ;;  %3813 = vmatprep.subr.bf16.mxu0 %v3812_v10  ;;  %v1134_v9 = vld [vmem:[#allocation8 + $0xd78] sm:$0xff]  ;;  %v3830_v10 = vpack.c.bf16 %v1115_v3, %v1107_v2  ;;  %v4102_v2 = vpack.c.bf16 %v1181_v57, %v1173_v55  ;;  %v3848_v3 = vpack.c.bf16 %v1196_v59, %v1188_v58  ;;  %v1251_v55 = vld [vmem:[#allocation8 + $0x1120] sm:$0xff]  ;;  %v1253_v57 = vld [vmem:[#allocation8 + $0x1130] sm:$0xff] }
 0x318   :  { %4069 = vmatprep.subr.bf16.mxu1 %v4068_v14  ;;  %v1131_v14 = vld [vmem:[#allocation8 + $0xd60] sm:$0xff]  ;;  %v4088_v48 = vpack.c.bf16 %v1134_v9, %v1126_v21  ;;  %v1204_v21 = vld [vmem:[#allocation8 + $0xfa8] sm:$0xff]  ;;  %v1261_v59 = vld [vmem:[#allocation8 + $0x1170] sm:$0xff] }
 0x319   :  { %v1212_v9 = vld [vmem:[#allocation8 + $0xfe8] sm:$0xff] }
 0x31a   :  { %3815 = vmatpush1.bf16.msra.mxu0 %v3814_v20  ;;  %v1142_v20 = vld [vmem:[#allocation8 + $0xdb8] sm:$0xff] }
 0x31b   :  { %4071 = vmatpush1.bf16.msra.mxu1 %v4070_v22  ;;  %3817 = vmatprep.subr.bf16.mxu0 %v3816_v23  ;;  %v1150_v22 = vld [vmem:[#allocation8 + $0xdf8] sm:$0xff]  ;;  %v3834_v23 = vpack.c.bf16 %v1131_v14, %v1123_v13  ;;  %v4106_v13 = vpack.c.bf16 %v1197_v19, %v1189_v7  ;;  %v3852_v14 = vpack.c.bf16 %v1212_v9, %v1204_v21  ;;  %v1275_v7 = vld [vmem:[#allocation8 + $0x11e0] sm:$0xff]  ;;  %v1284_v21 = vld [vmem:[#allocation8 + $0x1228] sm:$0xff] }
 0x31c   :  { %4073 = vmatprep.subr.bf16.mxu1 %v4072_v27  ;;  %v1147_v27 = vld [vmem:[#allocation8 + $0xde0] sm:$0xff]  ;;  %v4092_v31 = vpack.c.bf16 %v1150_v22, %v1142_v20  ;;  %v1220_v20 = vld [vmem:[#allocation8 + $0x1028] sm:$0xff] }
 0x31d   :  { %v1228_v22 = vld [vmem:[#allocation8 + $0x1068] sm:$0xff] }
 0x31e   :  { %3819 = vmatpush1.bf16.msra.mxu0 %v3818_v36  ;;  %v1158_v36 = vld [vmem:[#allocation8 + $0xe38] sm:$0xff]  ;;  %v1292_v9 = vld [vmem:[#allocation8 + $0x1268] sm:$0xff] }
 0x31f   :  { %4075 = vmatpush1.bf16.msra.mxu1 %v4074_v37  ;;  %3821 = vmatprep.subr.bf16.mxu0 %v3820_v40  ;;  %v1166_v37 = vld [vmem:[#allocation8 + $0xe78] sm:$0xff]  ;;  %v3838_v40 = vpack.c.bf16 %v1147_v27, %v1139_v26  ;;  %v4110_v26 = vpack.c.bf16 %v1213_v18, %v1205_v16  ;;  %v3856_v27 = vpack.c.bf16 %v1228_v22, %v1220_v20  ;;  %v1285_v16 = vld [vmem:[#allocation8 + $0x1230] sm:$0xff]  ;;  %v1300_v20 = vld [vmem:[#allocation8 + $0x12a8] sm:$0xff] }
 0x320   :  { %4077 = vmatprep.subr.bf16.mxu1 %v4076_v44  ;;  %v1163_v44 = vld [vmem:[#allocation8 + $0xe60] sm:$0xff]  ;;  %v4096_v46 = vpack.c.bf16 %v1166_v37, %v1158_v36  ;;  %v1236_v36 = vld [vmem:[#allocation8 + $0x10a8] sm:$0xff]  ;;  %v1293_v18 = vld [vmem:[#allocation8 + $0x1270] sm:$0xff] }
 0x321   :  { %v1244_v37 = vld [vmem:[#allocation8 + $0x10e8] sm:$0xff] }
 0x322   :  { %3823 = vmatpush1.bf16.msra.mxu0 %v3822_v50  ;;  %v1174_v50 = vld [vmem:[#allocation8 + $0xeb8] sm:$0xff]  ;;  %v3860_v29 = vpack.c.bf16 %v1244_v37, %v1236_v36  ;;  %v1308_v22 = vld [vmem:[#allocation8 + $0x12e8] sm:$0xff] }
 0x323   :  { %4079 = vmatpush1.bf16.msra.mxu1 %v4078_v51  ;;  %3825 = vmatprep.subr.bf16.mxu0 %v3824_v52  ;;  %v1182_v51 = vld [vmem:[#allocation8 + $0xef8] sm:$0xff]  ;;  %v3842_v52 = vpack.c.bf16 %v1163_v44, %v1155_v43  ;;  %v4114_v43 = vpack.c.bf16 %v1229_v35, %v1221_v33  ;;  %v1235_v44 = vld [vmem:[#allocation8 + $0x10a0] sm:$0xff]  ;;  %v1309_v35 = vld [vmem:[#allocation8 + $0x12f0] sm:$0xff] }
 0x324   :  { %4081 = vmatprep.subr.bf16.mxu1 %v4080_v54  ;;  %v1179_v54 = vld [vmem:[#allocation8 + $0xee0] sm:$0xff]  ;;  %v4100_v56 = vpack.c.bf16 %v1182_v51, %v1174_v50  ;;  %v1260_v50 = vld [vmem:[#allocation8 + $0x1168] sm:$0xff] }
 0x325   :  { %v1316_v36 = vld [vmem:[#allocation8 + $0x1328] sm:$0xff] }
 0x326   :  { %3827 = vmatpush1.bf16.msra.mxu0 %v3826_v60  ;;  %v1190_v60 = vld [vmem:[#allocation8 + $0xf38] sm:$0xff]  ;;  %v1324_v37 = vld [vmem:[#allocation8 + $0x1368] sm:$0xff] }
 0x327   :  { %4083 = vmatpush1.bf16.msra.mxu1 %v4082_v62  ;;  %3829 = vmatprep.subr.bf16.mxu0 %v3828_v1  ;;  %v1198_v62 = vld [vmem:[#allocation8 + $0xf78] sm:$0xff]  ;;  %v3846_v1 = vpack.c.bf16 %v1179_v54, %v1171_v38  ;;  %v3864_v54 = vpack.c.bf16 %v1260_v50, %v1252_v49  ;;  %v1325_v49 = vld [vmem:[#allocation8 + $0x1370] sm:$0xff]  ;;  %v1332_v50 = vld [vmem:[#allocation8 + $0x13a8] sm:$0xff] }
 0x328   :  { %4085 = vmatprep.subr.bf16.mxu1 %v4084_v6  ;;  %v1195_v6 = vld [vmem:[#allocation8 + $0xf60] sm:$0xff]  ;;  %v4104_v8 = vpack.c.bf16 %v1198_v62, %v1190_v60  ;;  %v1268_v60 = vld [vmem:[#allocation8 + $0x11a8] sm:$0xff] }
 0x329   :  { %v1276_v62 = vld [vmem:[#allocation8 + $0x11e8] sm:$0xff] }
 0x32a   :  { %3831 = vmatpush1.bf16.msra.mxu0 %v3830_v10  ;;  %v1206_v10 = vld [vmem:[#allocation8 + $0xfb8] sm:$0xff] }
 0x32b   :  { %4087 = vmatpush1.bf16.msra.mxu1 %v4086_v11  ;;  %3833 = vmatprep.subr.bf16.mxu0 %v3832_v12  ;;  %v1214_v11 = vld [vmem:[#allocation8 + $0xff8] sm:$0xff]  ;;  %v3850_v12 = vpack.c.bf16 %v1195_v6, %v1187_v5  ;;  %v3868_v5 = vpack.c.bf16 %v1276_v62, %v1268_v60  ;;  %v1267_v6 = vld [vmem:[#allocation8 + $0x11a0] sm:$0xff]  ;;  %v1348_v60 = vld [vmem:[#allocation8 + $0x1428] sm:$0xff] }
 0x32c   :  { %4089 = vmatprep.subr.bf16.mxu1 %v4088_v48  ;;  %v1211_v48 = vld [vmem:[#allocation8 + $0xfe0] sm:$0xff]  ;;  %v4108_v17 = vpack.c.bf16 %v1214_v11, %v1206_v10  ;;  %v1286_v10 = vld [vmem:[#allocation8 + $0x1238] sm:$0xff]  ;;  %v1356_v62 = vld [vmem:[#allocation8 + $0x1468] sm:$0xff] }
 0x32d   :  { %v1294_v11 = vld [vmem:[#allocation8 + $0x1278] sm:$0xff] }
 0x32e   :  { %3835 = vmatpush1.bf16.msra.mxu0 %v3834_v23  ;;  %v1222_v23 = vld [vmem:[#allocation8 + $0x1038] sm:$0xff] }
 0x32f   :  { %4091 = vmatpush1.bf16.msra.mxu1 %v4090_v24  ;;  %3837 = vmatprep.subr.bf16.mxu0 %v3836_v25  ;;  %v1230_v24 = vld [vmem:[#allocation8 + $0x1078] sm:$0xff]  ;;  %v3854_v25 = vpack.c.bf16 %v1211_v48, %v1203_v15  ;;  %v1283_v15 = vld [vmem:[#allocation8 + $0x1220] sm:$0xff] }
 0x330   :  { %4093 = vmatprep.subr.bf16.mxu1 %v4092_v31  ;;  %v1227_v31 = vld [vmem:[#allocation8 + $0x1060] sm:$0xff]  ;;  %v4112_v32 = vpack.c.bf16 %v1230_v24, %v1222_v23  ;;  %v1302_v23 = vld [vmem:[#allocation8 + $0x12b8] sm:$0xff] }
 0x331   :  { %v1291_v48 = vld [vmem:[#allocation8 + $0x1260] sm:$0xff]  ;;  %v1310_v24 = vld [vmem:[#allocation8 + $0x12f8] sm:$0xff] }
 0x332   :  { %3839 = vmatpush1.bf16.msra.mxu0 %v3838_v40  ;;  %v3858_v40 = vpack.c.bf16 %v1227_v31, %v1219_v28  ;;  %v1299_v28 = vld [vmem:[#allocation8 + $0x12a0] sm:$0xff]  ;;  %v4132_v33 = vpack.c.bf16 %v1310_v24, %v1302_v23  ;;  %v1382_v23 = vld [vmem:[#allocation8 + $0x1538] sm:$0xff] }
 0x333   :  { %4095 = vmatpush1.bf16.msra.mxu1 %v4094_v41  ;;  %3841 = vmatprep.subr.bf16.mxu0 %v3840_v42  ;;  %v1238_v41 = vld [vmem:[#allocation8 + $0x10b8] sm:$0xff]  ;;  %v1307_v31 = vld [vmem:[#allocation8 + $0x12e0] sm:$0xff] }
 0x334   :  { %4097 = vmatprep.subr.bf16.mxu1 %v4096_v46  ;;  %v1246_v42 = vld [vmem:[#allocation8 + $0x10f8] sm:$0xff]  ;;  %v1237_v46 = vld [vmem:[#allocation8 + $0x10b0] sm:$0xff] }
 0x335   :  { %v4116_v51 = vpack.c.bf16 %v1246_v42, %v1238_v41  ;;  %v4118_v38 = vpack.c.bf16 %v1245_v47, %v1237_v46  ;;  %v1326_v41 = vld [vmem:[#allocation8 + $0x1378] sm:$0xff]  ;;  %v3878_v42 = vpack.c.bf16 %v1307_v31, %v1299_v28  ;;  %v1323_v46 = vld [vmem:[#allocation8 + $0x1360] sm:$0xff] }
 0x336   :  { %3843 = vmatpush1.bf16.msra.mxu0 %v3842_v52  ;;  %v1254_v52 = vld [vmem:[#allocation8 + $0x1138] sm:$0xff]  ;;  %v1379_v28 = vld [vmem:[#allocation8 + $0x1520] sm:$0xff] }
 0x337   :  { %4099 = vmatpush1.bf16.msra.mxu1 %v4098_v30  ;;  %3845 = vmatprep.subr.bf16.mxu0 %v3844_v53  ;;  %v1262_v30 = vld [vmem:[#allocation8 + $0x1178] sm:$0xff]  ;;  %v3862_v53 = vpack.c.bf16 %v1243_v45, %v1235_v44  ;;  %v3880_v44 = vpack.c.bf16 %v1324_v37, %v1316_v36  ;;  %v1315_v45 = vld [vmem:[#allocation8 + $0x1320] sm:$0xff]  ;;  %v1396_v36 = vld [vmem:[#allocation8 + $0x15a8] sm:$0xff] }
 0x338   :  { %4101 = vmatprep.subr.bf16.mxu1 %v4100_v56  ;;  %v1259_v56 = vld [vmem:[#allocation8 + $0x1160] sm:$0xff]  ;;  %v4120_v58 = vpack.c.bf16 %v1262_v30, %v1254_v52  ;;  %v1334_v52 = vld [vmem:[#allocation8 + $0x13b8] sm:$0xff]  ;;  %v1404_v37 = vld [vmem:[#allocation8 + $0x15e8] sm:$0xff] }
 0x339   :  { %v1342_v30 = vld [vmem:[#allocation8 + $0x13f8] sm:$0xff]  ;;  %v1387_v31 = vld [vmem:[#allocation8 + $0x1560] sm:$0xff] }
 0x33a   :  { %3847 = vmatpush1.bf16.msra.mxu0 %v3846_v1  ;;  %v1270_v1 = vld [vmem:[#allocation8 + $0x11b8] sm:$0xff] }
 0x33b   :  { %4103 = vmatpush1.bf16.msra.mxu1 %v4102_v2  ;;  %3849 = vmatprep.subr.bf16.mxu0 %v3848_v3  ;;  %v3866_v2 = vpack.c.bf16 %v1259_v56, %v1251_v55  ;;  %v4122_v3 = vpack.c.bf16 %v1261_v59, %v1253_v57  ;;  %v1331_v55 = vld [vmem:[#allocation8 + $0x13a0] sm:$0xff]  ;;  %v1333_v57 = vld [vmem:[#allocation8 + $0x13b0] sm:$0xff]  ;;  %v1390_v24 = vld [vmem:[#allocation8 + $0x1578] sm:$0xff] }
 0x33c   :  { %4105 = vmatprep.subr.bf16.mxu1 %v4104_v8  ;;  %v1269_v8 = vld [vmem:[#allocation8 + $0x11b0] sm:$0xff]  ;;  %v1339_v56 = vld [vmem:[#allocation8 + $0x13e0] sm:$0xff] }
 0x33d   :  { %v1341_v59 = vld [vmem:[#allocation8 + $0x13f0] sm:$0xff] }
 0x33e   :  { %3851 = vmatpush1.bf16.msra.mxu0 %v3850_v12  ;;  %v3870_v12 = vpack.c.bf16 %v1275_v7, %v1267_v6  ;;  %v1347_v6 = vld [vmem:[#allocation8 + $0x1420] sm:$0xff] }
 0x33f   :  { %4107 = vmatpush1.bf16.msra.mxu1 %v4106_v13  ;;  %3853 = vmatprep.subr.bf16.mxu0 %v3852_v14  ;;  %v3872_v14 = vpack.c.bf16 %v1292_v9, %v1284_v21  ;;  %v1355_v7 = vld [vmem:[#allocation8 + $0x1460] sm:$0xff]  ;;  %v1364_v21 = vld [vmem:[#allocation8 + $0x14a8] sm:$0xff] }
 0x340   :  { %4109 = vmatprep.subr.bf16.mxu1 %v4108_v17  ;;  %v4128_v17 = vpack.c.bf16 %v1294_v11, %v1286_v10  ;;  %v1372_v9 = vld [vmem:[#allocation8 + $0x14e8] sm:$0xff]  ;;  %v1366_v10 = vld [vmem:[#allocation8 + $0x14b8] sm:$0xff] }
 0x341   :  { %v1374_v11 = vld [vmem:[#allocation8 + $0x14f8] sm:$0xff] }
 0x342   :  { %3855 = vmatpush1.bf16.msra.mxu0 %v3854_v25  ;;  %v3874_v25 = vpack.c.bf16 %v1291_v48, %v1283_v15  ;;  %v1363_v15 = vld [vmem:[#allocation8 + $0x14a0] sm:$0xff] }
 0x343   :  { %4111 = vmatpush1.bf16.msra.mxu1 %v4110_v26  ;;  %3857 = vmatprep.subr.bf16.mxu0 %v3856_v27  ;;  %v4130_v26 = vpack.c.bf16 %v1293_v18, %v1285_v16  ;;  %v3876_v27 = vpack.c.bf16 %v1308_v22, %v1300_v20  ;;  %v1371_v48 = vld [vmem:[#allocation8 + $0x14e0] sm:$0xff]  ;;  %v1365_v16 = vld [vmem:[#allocation8 + $0x14b0] sm:$0xff]  ;;  %v1380_v20 = vld [vmem:[#allocation8 + $0x1528] sm:$0xff] }
 0x344   :  { %4113 = vmatprep.subr.bf16.mxu1 %v4112_v32  ;;  %v1301_v32 = vld [vmem:[#allocation8 + $0x12b0] sm:$0xff]  ;;  %v1388_v22 = vld [vmem:[#allocation8 + $0x1568] sm:$0xff] }
 0x345   :  { %2431 = vmatmul.mubr.f32.vlgmr.msra.gmra.mrb[10].mxu0 %v4518_v63  ;;  %v1373_v18 = vld [vmem:[#allocation8 + $0x14f0] sm:$0xff] }
 0x346   :  { %2715 = vmatmul.mubr.f32.vlgmr.msra.gmra.mrb[10].mxu1 %v4518_v63  ;;  %3859 = vmatpush1.bf16.msra.mxu0 %v3858_v40  ;;  %v1278_v63 = vld [vmem:[#allocation8 + $0x11f8] sm:$0xff] }
 0x347   :  { %2501 = vmatprep.mubr.f32.mxu0 %v4523_v4  ;;  %4115 = vmatpush1.bf16.msra.mxu1 %v4114_v43  ;;  %v4124_v19 = vpack.c.bf16 %v1278_v63, %v1270_v1  ;;  %v1318_v40 = vld [vmem:[#allocation8 + $0x1338] sm:$0xff]  ;;  %v4134_v43 = vpack.c.bf16 %v1309_v35, %v1301_v32  ;;  %v1381_v32 = vld [vmem:[#allocation8 + $0x1530] sm:$0xff] }
 0x348   :  { %2785 = vmatprep.mubr.f32.mxu1 %v4523_v4  ;;  %3861 = vmatprep.subr.bf16.mxu0 %v3860_v29  ;;  %v1277_v4 = vld [vmem:[#allocation8 + $0x11f0] sm:$0xff]  ;;  %v4136_v47 = vpack.c.bf16 %v1326_v41, %v1318_v40  ;;  %v1350_v1 = vld [vmem:[#allocation8 + $0x1438] sm:$0xff] }
 0x349   :  { %4117 = vmatprep.subr.bf16.mxu1 %v4116_v51  ;;  %v4126_v13 = vpack.c.bf16 %v1277_v4, %v1269_v8  ;;  %v1317_v29 = vld [vmem:[#allocation8 + $0x1330] sm:$0xff]  ;;  %v1340_v51 = vld [vmem:[#allocation8 + $0x13e8] sm:$0xff]  ;;  %v1358_v63 = vld [vmem:[#allocation8 + $0x1478] sm:$0xff] }
 0x34a   :  { %3863 = vmatpush1.bf16.msra.mxu0 %v3862_v53  ;;  %v3882_v53 = vpack.c.bf16 %v1323_v46, %v1315_v45  ;;  %v1349_v8 = vld [vmem:[#allocation8 + $0x1430] sm:$0xff]  ;;  %v1398_v40 = vld [vmem:[#allocation8 + $0x15b8] sm:$0xff]  ;;  %v1395_v45 = vld [vmem:[#allocation8 + $0x15a0] sm:$0xff] }
 0x34b   :  { %4119 = vmatpush1.bf16.msra.mxu1 %v4118_v38  ;;  %3865 = vmatprep.subr.bf16.mxu0 %v3864_v54  ;;  %v4138_v38 = vpack.c.bf16 %v1325_v49, %v1317_v29  ;;  %v3884_v54 = vpack.c.bf16 %v1340_v51, %v1332_v50  ;;  %v1357_v4 = vld [vmem:[#allocation8 + $0x1470] sm:$0xff]  ;;  %v1406_v41 = vld [vmem:[#allocation8 + $0x15f8] sm:$0xff]  ;;  %v1403_v46 = vld [vmem:[#allocation8 + $0x15e0] sm:$0xff] }
 0x34c   :  { %4121 = vmatprep.subr.bf16.mxu1 %v4120_v58  ;;  %v4140_v58 = vpack.c.bf16 %v1342_v30, %v1334_v52  ;;  %v1389_v35 = vld [vmem:[#allocation8 + $0x1570] sm:$0xff]  ;;  %v1412_v50 = vld [vmem:[#allocation8 + $0x1628] sm:$0xff]  ;;  %v1414_v52 = vld [vmem:[#allocation8 + $0x1638] sm:$0xff] }
 0x34d   :  { %v1397_v29 = vld [vmem:[#allocation8 + $0x15b0] sm:$0xff]  ;;  %v1420_v51 = vld [vmem:[#allocation8 + $0x1668] sm:$0xff]  ;;  %v1422_v30 = vld [vmem:[#allocation8 + $0x1678] sm:$0xff] }
 0x34e   :  { %3867 = vmatpush1.bf16.msra.mxu0 %v3866_v2  ;;  %v3886_v2 = vpack.c.bf16 %v1339_v56, %v1331_v55  ;;  %v1405_v49 = vld [vmem:[#allocation8 + $0x15f0] sm:$0xff]  ;;  %v1411_v55 = vld [vmem:[#allocation8 + $0x1620] sm:$0xff] }
 0x34f   :  { %4123 = vmatpush1.bf16.msra.mxu1 %v4122_v3  ;;  %3869 = vmatprep.subr.bf16.mxu0 %v3868_v5  ;;  %v4142_v3 = vpack.c.bf16 %v1341_v59, %v1333_v57  ;;  %v3888_v5 = vpack.c.bf16 %v1356_v62, %v1348_v60  ;;  %v1419_v56 = vld [vmem:[#allocation8 + $0x1660] sm:$0xff]  ;;  %v1413_v57 = vld [vmem:[#allocation8 + $0x1630] sm:$0xff]  ;;  %v1428_v60 = vld [vmem:[#allocation8 + $0x16a8] sm:$0xff] }
 0x350   :  { %4125 = vmatprep.subr.bf16.mxu1 %v4124_v19  ;;  %v4144_v19 = vpack.c.bf16 %v1358_v63, %v1350_v1  ;;  %v1421_v59 = vld [vmem:[#allocation8 + $0x1670] sm:$0xff]  ;;  %v1436_v62 = vld [vmem:[#allocation8 + $0x16e8] sm:$0xff]  ;;  %v1430_v1 = vld [vmem:[#allocation8 + $0x16b8] sm:$0xff] }
 0x351   :  { %v1438_v63 = vld [vmem:[#allocation8 + $0x16f8] sm:$0xff] }
 0x352   :  { %3871 = vmatpush1.bf16.msra.mxu0 %v3870_v12  ;;  %v3890_v12 = vpack.c.bf16 %v1355_v7, %v1347_v6  ;;  %v1427_v6 = vld [vmem:[#allocation8 + $0x16a0] sm:$0xff] }
 0x353   :  { %4127 = vmatpush1.bf16.msra.mxu1 %v4126_v13  ;;  %3873 = vmatprep.subr.bf16.mxu0 %v3872_v14  ;;  %v4146_v13 = vpack.c.bf16 %v1357_v4, %v1349_v8  ;;  %v3892_v14 = vpack.c.bf16 %v1372_v9, %v1364_v21  ;;  %v1435_v7 = vld [vmem:[#allocation8 + $0x16e0] sm:$0xff]  ;;  %v1429_v8 = vld [vmem:[#allocation8 + $0x16b0] sm:$0xff]  ;;  %v1444_v21 = vld [vmem:[#allocation8 + $0x1728] sm:$0xff] }
 0x354   :  { %4129 = vmatprep.subr.bf16.mxu1 %v4128_v17  ;;  %v4148_v17 = vpack.c.bf16 %v1374_v11, %v1366_v10  ;;  %v1437_v4 = vld [vmem:[#allocation8 + $0x16f0] sm:$0xff]  ;;  %v1452_v9 = vld [vmem:[#allocation8 + $0x1768] sm:$0xff]  ;;  %v1446_v10 = vld [vmem:[#allocation8 + $0x1738] sm:$0xff] }
 0x355   :  { %v1454_v11 = vld [vmem:[#allocation8 + $0x1778] sm:$0xff] }
 0x356   :  { %3875 = vmatpush1.bf16.msra.mxu0 %v3874_v25  ;;  %v3894_v25 = vpack.c.bf16 %v1371_v48, %v1363_v15  ;;  %v1443_v15 = vld [vmem:[#allocation8 + $0x1720] sm:$0xff] }
 0x357   :  { %4131 = vmatpush1.bf16.msra.mxu1 %v4130_v26  ;;  %3877 = vmatprep.subr.bf16.mxu0 %v3876_v27  ;;  %v4150_v26 = vpack.c.bf16 %v1373_v18, %v1365_v16  ;;  %v3896_v27 = vpack.c.bf16 %v1388_v22, %v1380_v20  ;;  %v1451_v48 = vld [vmem:[#allocation8 + $0x1760] sm:$0xff]  ;;  %v1445_v16 = vld [vmem:[#allocation8 + $0x1730] sm:$0xff]  ;;  %v1460_v20 = vld [vmem:[#allocation8 + $0x17a8] sm:$0xff] }
 0x358   :  { %4133 = vmatprep.subr.bf16.mxu1 %v4132_v33  ;;  %v4152_v33 = vpack.c.bf16 %v1390_v24, %v1382_v23  ;;  %v1453_v18 = vld [vmem:[#allocation8 + $0x1770] sm:$0xff]  ;;  %v1468_v22 = vld [vmem:[#allocation8 + $0x17e8] sm:$0xff]  ;;  %v1462_v23 = vld [vmem:[#allocation8 + $0x17b8] sm:$0xff] }
 0x359   :  { %v1470_v24 = vld [vmem:[#allocation8 + $0x17f8] sm:$0xff] }
 0x35a   :  { %3879 = vmatpush1.bf16.msra.mxu0 %v3878_v42  ;;  %v3898_v42 = vpack.c.bf16 %v1387_v31, %v1379_v28  ;;  %v1459_v28 = vld [vmem:[#allocation8 + $0x17a0] sm:$0xff] }
 0x35b   :  { %4135 = vmatpush1.bf16.msra.mxu1 %v4134_v43  ;;  %3881 = vmatprep.subr.bf16.mxu0 %v3880_v44  ;;  %v4154_v43 = vpack.c.bf16 %v1389_v35, %v1381_v32  ;;  %v3900_v44 = vpack.c.bf16 %v1404_v37, %v1396_v36  ;;  %v1467_v31 = vld [vmem:[#allocation8 + $0x17e0] sm:$0xff]  ;;  %v1461_v32 = vld [vmem:[#allocation8 + $0x17b0] sm:$0xff]  ;;  %v1476_v36 = vld [vmem:[#allocation8 + $0x1828] sm:$0xff] }
 0x35c   :  { %4137 = vmatprep.subr.bf16.mxu1 %v4136_v47  ;;  %v4156_v47 = vpack.c.bf16 %v1406_v41, %v1398_v40  ;;  %v1469_v35 = vld [vmem:[#allocation8 + $0x17f0] sm:$0xff]  ;;  %v1484_v37 = vld [vmem:[#allocation8 + $0x1868] sm:$0xff]  ;;  %v1478_v40 = vld [vmem:[#allocation8 + $0x1838] sm:$0xff] }
 0x35d   :  { %v1486_v41 = vld [vmem:[#allocation8 + $0x1878] sm:$0xff] }
 0x35e   :  { %3883 = vmatpush1.bf16.msra.mxu0 %v3882_v53  ;;  %v3902_v53 = vpack.c.bf16 %v1403_v46, %v1395_v45  ;;  %v1475_v45 = vld [vmem:[#allocation8 + $0x1820] sm:$0xff] }
 0x35f   :  { %4139 = vmatpush1.bf16.msra.mxu1 %v4138_v38  ;;  %3885 = vmatprep.subr.bf16.mxu0 %v3884_v54  ;;  %v4158_v38 = vpack.c.bf16 %v1405_v49, %v1397_v29  ;;  %v3904_v54 = vpack.c.bf16 %v1420_v51, %v1412_v50  ;;  %v1483_v46 = vld [vmem:[#allocation8 + $0x1860] sm:$0xff]  ;;  %v4176_v29 = vpack.c.bf16 %v1486_v41, %v1478_v40  ;;  %v1485_v49 = vld [vmem:[#allocation8 + $0x1870] sm:$0xff]  ;;  %v1492_v50 = vld [vmem:[#allocation8 + $0x18a8] sm:$0xff] }
 0x360   :  { %4141 = vmatprep.subr.bf16.mxu1 %v4140_v58  ;;  %v4160_v58 = vpack.c.bf16 %v1422_v30, %v1414_v52  ;;  %v1500_v51 = vld [vmem:[#allocation8 + $0x18e8] sm:$0xff]  ;;  %v3922_v52 = vpack.c.bf16 %v1483_v46, %v1475_v45  ;;  %v1494_v30 = vld [vmem:[#allocation8 + $0x18b8] sm:$0xff]  ;;  %v1557_v45 = vld [vmem:[#allocation8 + $0x1ab0] sm:$0xff] }
 0x362   :  { %3887 = vmatpush1.bf16.msra.mxu0 %v3886_v2  ;;  %v3906_v2 = vpack.c.bf16 %v1419_v56, %v1411_v55  ;;  %v1499_v55 = vld [vmem:[#allocation8 + $0x18e0] sm:$0xff]  ;;  %v1493_v56 = vld [vmem:[#allocation8 + $0x18b0] sm:$0xff] }
 0x363   :  { %4143 = vmatpush1.bf16.msra.mxu1 %v4142_v3  ;;  %3889 = vmatprep.subr.bf16.mxu0 %v3888_v5  ;;  %v4162_v3 = vpack.c.bf16 %v1421_v59, %v1413_v57  ;;  %v3908_v5 = vpack.c.bf16 %v1436_v62, %v1428_v60  ;;  %v3924_v57 = vpack.c.bf16 %v1500_v51, %v1492_v50  ;;  %v1508_v59 = vld [vmem:[#allocation8 + $0x1928] sm:$0xff]  ;;  %v1574_v50 = vld [vmem:[#allocation8 + $0x1b38] sm:$0xff] }
 0x364   :  { %4145 = vmatprep.subr.bf16.mxu1 %v4144_v19  ;;  %v4164_v19 = vpack.c.bf16 %v1438_v63, %v1430_v1  ;;  %v1516_v60 = vld [vmem:[#allocation8 + $0x1968] sm:$0xff]  ;;  %v1510_v1 = vld [vmem:[#allocation8 + $0x1938] sm:$0xff] }
 0x365   :  { %v1518_v63 = vld [vmem:[#allocation8 + $0x1978] sm:$0xff] }
 0x366   :  { %3891 = vmatpush1.bf16.msra.mxu0 %v3890_v12  ;;  %v3910_v12 = vpack.c.bf16 %v1435_v7, %v1427_v6  ;;  %v1507_v6 = vld [vmem:[#allocation8 + $0x1920] sm:$0xff]  ;;  %v1582_v51 = vld [vmem:[#allocation8 + $0x1b78] sm:$0xff] }
 0x367   :  { %4147 = vmatpush1.bf16.msra.mxu1 %v4146_v13  ;;  %3893 = vmatprep.subr.bf16.mxu0 %v3892_v14  ;;  %v4166_v13 = vpack.c.bf16 %v1437_v4, %v1429_v8  ;;  %v3912_v14 = vpack.c.bf16 %v1452_v9, %v1444_v21  ;;  %v1515_v7 = vld [vmem:[#allocation8 + $0x1960] sm:$0xff]  ;;  %v1509_v8 = vld [vmem:[#allocation8 + $0x1930] sm:$0xff]  ;;  %v1524_v21 = vld [vmem:[#allocation8 + $0x19a8] sm:$0xff] }
 0x368   :  { %4149 = vmatprep.subr.bf16.mxu1 %v4148_v17  ;;  %v4168_v17 = vpack.c.bf16 %v1454_v11, %v1446_v10  ;;  %v1517_v4 = vld [vmem:[#allocation8 + $0x1970] sm:$0xff]  ;;  %v1532_v9 = vld [vmem:[#allocation8 + $0x19e8] sm:$0xff]  ;;  %v1526_v10 = vld [vmem:[#allocation8 + $0x19b8] sm:$0xff]  ;;  %v3930_v11 = vpack.c.bf16 %v1515_v7, %v1507_v6 }
 0x36a   :  { %3895 = vmatpush1.bf16.msra.mxu0 %v3894_v25  ;;  %v3914_v25 = vpack.c.bf16 %v1451_v48, %v1443_v15  ;;  %v1531_v15 = vld [vmem:[#allocation8 + $0x19e0] sm:$0xff]  ;;  %v1525_v48 = vld [vmem:[#allocation8 + $0x19b0] sm:$0xff] }
 0x36b   :  { %4151 = vmatpush1.bf16.msra.mxu1 %v4150_v26  ;;  %3897 = vmatprep.subr.bf16.mxu0 %v3896_v27  ;;  %v4170_v26 = vpack.c.bf16 %v1453_v18, %v1445_v16  ;;  %v3916_v27 = vpack.c.bf16 %v1468_v22, %v1460_v20  ;;  %v1548_v18 = vld [vmem:[#allocation8 + $0x1a68] sm:$0xff]  ;;  %v1542_v20 = vld [vmem:[#allocation8 + $0x1a38] sm:$0xff] }
 0x36c   :  { %4153 = vmatprep.subr.bf16.mxu1 %v4152_v33  ;;  %v4172_v33 = vpack.c.bf16 %v1470_v24, %v1462_v23  ;;  %v1550_v22 = vld [vmem:[#allocation8 + $0x1a78] sm:$0xff] }
 0x36e   :  { %3899 = vmatpush1.bf16.msra.mxu0 %v3898_v42  ;;  %v3918_v42 = vpack.c.bf16 %v1467_v31, %v1459_v28  ;;  %v1541_v28 = vld [vmem:[#allocation8 + $0x1a30] sm:$0xff]  ;;  %v4192_v31 = vpack.c.bf16 %v1550_v22, %v1542_v20  ;;  %v1620_v20 = vld [vmem:[#allocation8 + $0x1ca8] sm:$0xff] }
 0x36f   :  { %4155 = vmatpush1.bf16.msra.mxu1 %v4154_v43  ;;  %3901 = vmatprep.subr.bf16.mxu0 %v3900_v44  ;;  %v4174_v43 = vpack.c.bf16 %v1469_v35, %v1461_v32  ;;  %v3920_v44 = vpack.c.bf16 %v1484_v37, %v1476_v36  ;;  %v1549_v32 = vld [vmem:[#allocation8 + $0x1a70] sm:$0xff]  ;;  %v1564_v35 = vld [vmem:[#allocation8 + $0x1ae8] sm:$0xff]  ;;  %v1558_v36 = vld [vmem:[#allocation8 + $0x1ab8] sm:$0xff] }
 0x370   :  { %4157 = vmatprep.subr.bf16.mxu1 %v4156_v47  ;;  %v1477_v47 = vld [vmem:[#allocation8 + $0x1830] sm:$0xff]  ;;  %v1566_v37 = vld [vmem:[#allocation8 + $0x1af8] sm:$0xff]  ;;  %v4194_v41 = vpack.c.bf16 %v1549_v32, %v1541_v28  ;;  %v1628_v22 = vld [vmem:[#allocation8 + $0x1ce8] sm:$0xff] }
 0x371   :  { %v4196_v46 = vpack.c.bf16 %v1566_v37, %v1558_v36  ;;  %v1619_v28 = vld [vmem:[#allocation8 + $0x1ca0] sm:$0xff]  ;;  %v1621_v32 = vld [vmem:[#allocation8 + $0x1cb0] sm:$0xff]  ;;  %v1636_v36 = vld [vmem:[#allocation8 + $0x1d28] sm:$0xff] }
 0x372   :  { %3903 = vmatpush1.bf16.msra.mxu0 %v3902_v53  ;;  %v1502_v53 = vld [vmem:[#allocation8 + $0x18f8] sm:$0xff]  ;;  %v1644_v37 = vld [vmem:[#allocation8 + $0x1d68] sm:$0xff] }
 0x373   :  { %4159 = vmatpush1.bf16.msra.mxu1 %v4158_v38  ;;  %3905 = vmatprep.subr.bf16.mxu0 %v3904_v54  ;;  %v4178_v38 = vpack.c.bf16 %v1485_v49, %v1477_v47  ;;  %v1491_v54 = vld [vmem:[#allocation8 + $0x18a0] sm:$0xff]  ;;  %v4180_v62 = vpack.c.bf16 %v1502_v53, %v1494_v30  ;;  %v1572_v47 = vld [vmem:[#allocation8 + $0x1b28] sm:$0xff] }
 0x374   :  { %4161 = vmatprep.subr.bf16.mxu1 %v4160_v58  ;;  %v1501_v58 = vld [vmem:[#allocation8 + $0x18f0] sm:$0xff]  ;;  %v1580_v49 = vld [vmem:[#allocation8 + $0x1b68] sm:$0xff] }
 0x375   :  { %v3944_v53 = vpack.c.bf16 %v1580_v49, %v1572_v47  ;;  %v1645_v49 = vld [vmem:[#allocation8 + $0x1d70] sm:$0xff] }
 0x376   :  { %3907 = vmatpush1.bf16.msra.mxu0 %v3906_v2  ;;  %v3926_v2 = vpack.c.bf16 %v1499_v55, %v1491_v54  ;;  %v1579_v54 = vld [vmem:[#allocation8 + $0x1b60] sm:$0xff]  ;;  %v1573_v55 = vld [vmem:[#allocation8 + $0x1b30] sm:$0xff] }
 0x377   :  { %4163 = vmatpush1.bf16.msra.mxu1 %v4162_v3  ;;  %3909 = vmatprep.subr.bf16.mxu0 %v3908_v5  ;;  %v4182_v3 = vpack.c.bf16 %v1501_v58, %v1493_v56  ;;  %v3928_v5 = vpack.c.bf16 %v1516_v60, %v1508_v59  ;;  %v4200_v58 = vpack.c.bf16 %v1582_v51, %v1574_v50  ;;  %v1581_v59 = vld [vmem:[#allocation8 + $0x1b70] sm:$0xff]  ;;  %v1588_v60 = vld [vmem:[#allocation8 + $0x1ba8] sm:$0xff] }
 0x378   :  { %4165 = vmatprep.subr.bf16.mxu1 %v4164_v19  ;;  %v4184_v19 = vpack.c.bf16 %v1518_v63, %v1510_v1  ;;  %v4202_v6 = vpack.c.bf16 %v1581_v59, %v1573_v55  ;;  %v1652_v50 = vld [vmem:[#allocation8 + $0x1da8] sm:$0xff]  ;;  %v1651_v55 = vld [vmem:[#allocation8 + $0x1da0] sm:$0xff]  ;;  %v1653_v59 = vld [vmem:[#allocation8 + $0x1db0] sm:$0xff] }
 0x379   :  { %v1660_v51 = vld [vmem:[#allocation8 + $0x1de8] sm:$0xff] }
 0x37a   :  { %3911 = vmatpush1.bf16.msra.mxu0 %v3910_v12  ;;  %v4186_v12 = vpack.c.bf16 %v1517_v4, %v1509_v8  ;;  %v1587_v8 = vld [vmem:[#allocation8 + $0x1ba0] sm:$0xff]  ;;  %v1589_v4 = vld [vmem:[#allocation8 + $0x1bb0] sm:$0xff] }
 0x37b   :  { %4167 = vmatpush1.bf16.msra.mxu1 %v4166_v13  ;;  %3913 = vmatprep.subr.bf16.mxu0 %v3912_v14  ;;  %v3932_v13 = vpack.c.bf16 %v1532_v9, %v1524_v21  ;;  %v1523_v14 = vld [vmem:[#allocation8 + $0x19a0] sm:$0xff]  ;;  %v1597_v9 = vld [vmem:[#allocation8 + $0x1bf0] sm:$0xff] }
 0x37c   :  { %4169 = vmatprep.subr.bf16.mxu1 %v4168_v17  ;;  %v1540_v17 = vld [vmem:[#allocation8 + $0x1a28] sm:$0xff]  ;;  %v3934_v23 = vpack.c.bf16 %v1531_v15, %v1523_v14  ;;  %v4206_v14 = vpack.c.bf16 %v1597_v9, %v1589_v4  ;;  %v1667_v4 = vld [vmem:[#allocation8 + $0x1e20] sm:$0xff]  ;;  %v1669_v9 = vld [vmem:[#allocation8 + $0x1e30] sm:$0xff] }
 0x37e   :  { %3915 = vmatpush1.bf16.msra.mxu0 %v3914_v25  ;;  %v3936_v25 = vpack.c.bf16 %v1548_v18, %v1540_v17  ;;  %v1613_v18 = vld [vmem:[#allocation8 + $0x1c70] sm:$0xff] }
 0x37f   :  { %4171 = vmatpush1.bf16.msra.mxu1 %v4170_v26  ;;  %3917 = vmatprep.subr.bf16.mxu0 %v3916_v27  ;;  %v1539_v26 = vld [vmem:[#allocation8 + $0x1a20] sm:$0xff] }
 0x380   :  { %4173 = vmatprep.subr.bf16.mxu1 %v4172_v33  ;;  %v1547_v27 = vld [vmem:[#allocation8 + $0x1a60] sm:$0xff]  ;;  %v1556_v33 = vld [vmem:[#allocation8 + $0x1aa8] sm:$0xff] }
 0x381   :  { %v3938_v40 = vpack.c.bf16 %v1547_v27, %v1539_v26  ;;  %v3956_v27 = vpack.c.bf16 %v1628_v22, %v1620_v20  ;;  %v1693_v22 = vld [vmem:[#allocation8 + $0x1ef0] sm:$0xff] }
 0x382   :  { %3919 = vmatpush1.bf16.msra.mxu0 %v3918_v42  ;;  %v3940_v42 = vpack.c.bf16 %v1564_v35, %v1556_v33  ;;  %v1629_v35 = vld [vmem:[#allocation8 + $0x1cf0] sm:$0xff] }
 0x383   :  { %4175 = vmatpush1.bf16.msra.mxu1 %v4174_v43  ;;  %3921 = vmatprep.subr.bf16.mxu0 %v3920_v44  ;;  %v1555_v43 = vld [vmem:[#allocation8 + $0x1aa0] sm:$0xff] }
 0x384   :  { %4177 = vmatprep.subr.bf16.mxu1 %v4176_v29  ;;  %v1563_v44 = vld [vmem:[#allocation8 + $0x1ae0] sm:$0xff]  ;;  %v1565_v29 = vld [vmem:[#allocation8 + $0x1af0] sm:$0xff] }
 0x385   :  { %2502 = vmatmul.mubr.f32.vlgmr.msra.gmra.mrb[10].mxu0 %v4534_v34  ;;  %v4198_v30 = vpack.c.bf16 %v1565_v29, %v1557_v45  ;;  %v1635_v45 = vld [vmem:[#allocation8 + $0x1d20] sm:$0xff]  ;;  %v1637_v29 = vld [vmem:[#allocation8 + $0x1d30] sm:$0xff] }
 0x386   :  { %2786 = vmatmul.mubr.f32.vlgmr.msra.gmra.mrb[10].mxu1 %v4534_v34  ;;  %3923 = vmatpush1.bf16.msra.mxu0 %v3922_v52  ;;  %v1534_v34 = vld [vmem:[#allocation8 + $0x19f8] sm:$0xff]  ;;  %v3942_v52 = vpack.c.bf16 %v1563_v44, %v1555_v43  ;;  %v4214_v43 = vpack.c.bf16 %v1629_v35, %v1621_v32  ;;  %v3960_v44 = vpack.c.bf16 %v1644_v37, %v1636_v36  ;;  %v1699_v32 = vld [vmem:[#allocation8 + $0x1f20] sm:$0xff]  ;;  %v1701_v35 = vld [vmem:[#allocation8 + $0x1f30] sm:$0xff] }
 0x387   :  { %2572 = vmatprep.mubr.f32.mxu0 %v4539_v39  ;;  %4179 = vmatpush1.bf16.msra.mxu1 %v4178_v38  ;;  %v4188_v16 = vpack.c.bf16 %v1534_v34, %v1526_v10  ;;  %v1571_v38 = vld [vmem:[#allocation8 + $0x1b20] sm:$0xff]  ;;  %v1604_v10 = vld [vmem:[#allocation8 + $0x1c28] sm:$0xff]  ;;  %v1709_v37 = vld [vmem:[#allocation8 + $0x1f70] sm:$0xff] }
 0x388   :  { %2856 = vmatprep.mubr.f32.mxu1 %v4539_v39  ;;  %3925 = vmatprep.subr.bf16.mxu0 %v3924_v57  ;;  %v1533_v39 = vld [vmem:[#allocation8 + $0x19f0] sm:$0xff]  ;;  %v1612_v34 = vld [vmem:[#allocation8 + $0x1c68] sm:$0xff] }
 0x389   :  { %4181 = vmatprep.subr.bf16.mxu1 %v4180_v62  ;;  %v4190_v24 = vpack.c.bf16 %v1533_v39, %v1525_v48  ;;  %v1596_v62 = vld [vmem:[#allocation8 + $0x1be8] sm:$0xff]  ;;  %v3952_v15 = vpack.c.bf16 %v1612_v34, %v1604_v10  ;;  %v1603_v48 = vld [vmem:[#allocation8 + $0x1c20] sm:$0xff]  ;;  %v1605_v39 = vld [vmem:[#allocation8 + $0x1c30] sm:$0xff] }
 0x38a   :  { %3927 = vmatpush1.bf16.msra.mxu0 %v3926_v2  ;;  %v1590_v2 = vld [vmem:[#allocation8 + $0x1bb8] sm:$0xff]  ;;  %v3948_v7 = vpack.c.bf16 %v1596_v62, %v1588_v60  ;;  %v4210_v26 = vpack.c.bf16 %v1613_v18, %v1605_v39  ;;  %v1661_v62 = vld [vmem:[#allocation8 + $0x1df0] sm:$0xff]  ;;  %v1683_v39 = vld [vmem:[#allocation8 + $0x1ea0] sm:$0xff] }
 0x38b   :  { %4183 = vmatpush1.bf16.msra.mxu1 %v4182_v3  ;;  %3929 = vmatprep.subr.bf16.mxu0 %v3928_v5  ;;  %v1598_v3 = vld [vmem:[#allocation8 + $0x1bf8] sm:$0xff]  ;;  %v3946_v5 = vpack.c.bf16 %v1579_v54, %v1571_v38  ;;  %v4218_v38 = vpack.c.bf16 %v1645_v49, %v1637_v29  ;;  %v3964_v54 = vpack.c.bf16 %v1660_v51, %v1652_v50  ;;  %v1677_v34 = vld [vmem:[#allocation8 + $0x1e70] sm:$0xff]  ;;  %v1715_v29 = vld [vmem:[#allocation8 + $0x1fa0] sm:$0xff] }
 0x38c   :  { %4185 = vmatprep.subr.bf16.mxu1 %v4184_v19  ;;  %v1595_v19 = vld [vmem:[#allocation8 + $0x1be0] sm:$0xff]  ;;  %v4204_v21 = vpack.c.bf16 %v1598_v3, %v1590_v2  ;;  %v1668_v2 = vld [vmem:[#allocation8 + $0x1e28] sm:$0xff]  ;;  %v1685_v18 = vld [vmem:[#allocation8 + $0x1eb0] sm:$0xff] }
 0x38d   :  { %v1676_v3 = vld [vmem:[#allocation8 + $0x1e68] sm:$0xff]  ;;  %v1717_v50 = vld [vmem:[#allocation8 + $0x1fb0] sm:$0xff] }
 0x38e   :  { %3931 = vmatpush1.bf16.msra.mxu0 %v3930_v11  ;;  %v1606_v11 = vld [vmem:[#allocation8 + $0x1c38] sm:$0xff]  ;;  %v1725_v51 = vld [vmem:[#allocation8 + $0x1ff0] sm:$0xff] }
 0x38f   :  { %4187 = vmatpush1.bf16.msra.mxu1 %v4186_v12  ;;  %3933 = vmatprep.subr.bf16.mxu0 %v3932_v13  ;;  %v1614_v12 = vld [vmem:[#allocation8 + $0x1c78] sm:$0xff]  ;;  %v3950_v13 = vpack.c.bf16 %v1595_v19, %v1587_v8  ;;  %v4222_v8 = vpack.c.bf16 %v1661_v62, %v1653_v59  ;;  %v3968_v19 = vpack.c.bf16 %v1676_v3, %v1668_v2 }
 0x390   :  { %4189 = vmatprep.subr.bf16.mxu1 %v4188_v16  ;;  %v1611_v16 = vld [vmem:[#allocation8 + $0x1c60] sm:$0xff]  ;;  %v4208_v17 = vpack.c.bf16 %v1614_v12, %v1606_v11  ;;  %v1684_v11 = vld [vmem:[#allocation8 + $0x1ea8] sm:$0xff] }
 0x391   :  { %v1692_v12 = vld [vmem:[#allocation8 + $0x1ee8] sm:$0xff] }
 0x392   :  { %3935 = vmatpush1.bf16.msra.mxu0 %v3934_v23  ;;  %v1622_v23 = vld [vmem:[#allocation8 + $0x1cb8] sm:$0xff] }
 0x393   :  { %4191 = vmatpush1.bf16.msra.mxu1 %v4190_v24  ;;  %3937 = vmatprep.subr.bf16.mxu0 %v3936_v25  ;;  %v1630_v24 = vld [vmem:[#allocation8 + $0x1cf8] sm:$0xff]  ;;  %v3954_v25 = vpack.c.bf16 %v1611_v16, %v1603_v48  ;;  %v4226_v48 = vpack.c.bf16 %v1677_v34, %v1669_v9  ;;  %v3972_v16 = vpack.c.bf16 %v1692_v12, %v1684_v11 }
 0x394   :  { %4193 = vmatprep.subr.bf16.mxu1 %v4192_v31  ;;  %v1627_v31 = vld [vmem:[#allocation8 + $0x1ce0] sm:$0xff]  ;;  %v4212_v33 = vpack.c.bf16 %v1630_v24, %v1622_v23  ;;  %v1700_v23 = vld [vmem:[#allocation8 + $0x1f28] sm:$0xff] }
 0x395   :  { %v1708_v24 = vld [vmem:[#allocation8 + $0x1f68] sm:$0xff] }
 0x396   :  { %3939 = vmatpush1.bf16.msra.mxu0 %v3938_v40  ;;  %v1638_v40 = vld [vmem:[#allocation8 + $0x1d38] sm:$0xff] }
 0x397   :  { %4195 = vmatpush1.bf16.msra.mxu1 %v4194_v41  ;;  %3941 = vmatprep.subr.bf16.mxu0 %v3940_v42  ;;  %v1646_v41 = vld [vmem:[#allocation8 + $0x1d78] sm:$0xff]  ;;  %v3958_v42 = vpack.c.bf16 %v1627_v31, %v1619_v28  ;;  %v4230_v28 = vpack.c.bf16 %v1693_v22, %v1685_v18  ;;  %v3976_v31 = vpack.c.bf16 %v1708_v24, %v1700_v23 }
 0x398   :  { %v4564_v56 = vpop.f32.mrb[8].mxu0  ;;  %v4566_v57 = vpop.f32.mrb[8].mxu1  ;;  %4197 = vmatprep.subr.bf16.mxu1 %v4196_v46  ;;  %v1643_v46 = vld [vmem:[#allocation8 + $0x1d60] sm:$0xff]  ;;  %v4216_v47 = vpack.c.bf16 %v1646_v41, %v1638_v40  ;;  %v1716_v40 = vld [vmem:[#allocation8 + $0x1fa8] sm:$0xff] }
 0x399   :  { %v4568_v1 = vpop.f32.mrb[9].mxu0  ;;  %v4570_v63 = vpop.f32.mrb[9].mxu1  ;;  %v1724_v41 = vld [vmem:[#allocation8 + $0x1fe8] sm:$0xff] }
 0x39a   :  { %3943 = vmatpush1.bf16.msra.mxu0 %v3942_v52  ;;  %v1654_v52 = vld [vmem:[#allocation8 + $0x1db8] sm:$0xff] }
 0x39b   :  { %4199 = vmatpush1.bf16.msra.mxu1 %v4198_v30  ;;  %3945 = vmatprep.subr.bf16.mxu0 %v3944_v53  ;;  %v1662_v30 = vld [vmem:[#allocation8 + $0x1df8] sm:$0xff]  ;;  %v3962_v53 = vpack.c.bf16 %v1643_v46, %v1635_v45  ;;  %v4234_v45 = vpack.c.bf16 %v1709_v37, %v1701_v35  ;;  %v3980_v46 = vpack.c.bf16 %v1724_v41, %v1716_v40 }
 0x39c   :  { %4201 = vmatprep.subr.bf16.mxu1 %v4200_v58  ;;  %v1659_v58 = vld [vmem:[#allocation8 + $0x1de0] sm:$0xff]  ;;  %v4220_v60 = vpack.c.bf16 %v1662_v30, %v1654_v52  ;;  %v4238_v30 = vpack.c.bf16 %v1725_v51, %v1717_v50 }
 0x39e   :  { %3947 = vmatpush1.bf16.msra.mxu0 %v3946_v5  ;;  %v1670_v5 = vld [vmem:[#allocation8 + $0x1e38] sm:$0xff] }
 0x39f   :  { %4203 = vmatpush1.bf16.msra.mxu1 %v4202_v6  ;;  %3949 = vmatprep.subr.bf16.mxu0 %v3948_v7  ;;  %v1678_v6 = vld [vmem:[#allocation8 + $0x1e78] sm:$0xff]  ;;  %v3966_v7 = vpack.c.bf16 %v1659_v58, %v1651_v55 }
 0x3a0   :  { %4205 = vmatprep.subr.bf16.mxu1 %v4204_v21  ;;  %v1675_v21 = vld [vmem:[#allocation8 + $0x1e60] sm:$0xff]  ;;  %v4224_v10 = vpack.c.bf16 %v1678_v6, %v1670_v5 }
 0x3a2   :  { %3951 = vmatpush1.bf16.msra.mxu0 %v3950_v13  ;;  %v1686_v13 = vld [vmem:[#allocation8 + $0x1eb8] sm:$0xff] }
 0x3a3   :  { %4207 = vmatpush1.bf16.msra.mxu1 %v4206_v14  ;;  %3953 = vmatprep.subr.bf16.mxu0 %v3952_v15  ;;  %v1694_v14 = vld [vmem:[#allocation8 + $0x1ef8] sm:$0xff]  ;;  %v3970_v15 = vpack.c.bf16 %v1675_v21, %v1667_v4 }
 0x3a4   :  { %4209 = vmatprep.subr.bf16.mxu1 %v4208_v17  ;;  %v1691_v17 = vld [vmem:[#allocation8 + $0x1ee0] sm:$0xff]  ;;  %v4228_v20 = vpack.c.bf16 %v1694_v14, %v1686_v13 }
 0x3a6   :  { %3955 = vmatpush1.bf16.msra.mxu0 %v3954_v25  ;;  %v1702_v25 = vld [vmem:[#allocation8 + $0x1f38] sm:$0xff] }
 0x3a7   :  { %4211 = vmatpush1.bf16.msra.mxu1 %v4210_v26  ;;  %3957 = vmatprep.subr.bf16.mxu0 %v3956_v27  ;;  %v1710_v26 = vld [vmem:[#allocation8 + $0x1f78] sm:$0xff]  ;;  %v3974_v27 = vpack.c.bf16 %v1691_v17, %v1683_v39 }
 0x3a8   :  { %4213 = vmatprep.subr.bf16.mxu1 %v4212_v33  ;;  %v1707_v33 = vld [vmem:[#allocation8 + $0x1f60] sm:$0xff]  ;;  %v4232_v36 = vpack.c.bf16 %v1710_v26, %v1702_v25 }
 0x3aa   :  { %3959 = vmatpush1.bf16.msra.mxu0 %v3958_v42  ;;  %v1718_v42 = vld [vmem:[#allocation8 + $0x1fb8] sm:$0xff] }
 0x3ab   :  { %4215 = vmatpush1.bf16.msra.mxu1 %v4214_v43  ;;  %3961 = vmatprep.subr.bf16.mxu0 %v3960_v44  ;;  %v1726_v43 = vld [vmem:[#allocation8 + $0x1ff8] sm:$0xff]  ;;  %v3978_v44 = vpack.c.bf16 %v1707_v33, %v1699_v32 }
 0x3ac   :  { %4217 = vmatprep.subr.bf16.mxu1 %v4216_v47  ;;  %v1723_v47 = vld [vmem:[#allocation8 + $0x1fe0] sm:$0xff]  ;;  %v4236_v49 = vpack.c.bf16 %v1726_v43, %v1718_v42 }
 0x3ad   :  { %v3982_v52 = vpack.c.bf16 %v1723_v47, %v1715_v29 }
 0x3ae   :  { %3963 = vmatpush1.bf16.msra.mxu0 %v3962_v53  ;;  %v4272_v53 = vld [vmem:[#allocation5] sm:$0xff] }
 0x3af   :  { %4219 = vmatpush1.bf16.msra.mxu1 %v4218_v38  ;;  %3965 = vmatprep.subr.bf16.mxu0 %v3964_v54 }
 0x3b0   :  { %4221 = vmatprep.subr.bf16.mxu1 %v4220_v60 }
 0x3b2   :  { %3967 = vmatpush1.bf16.msra.mxu0 %v3966_v7 }
 0x3b3   :  { %4223 = vmatpush1.bf16.msra.mxu1 %v4222_v8  ;;  %3969 = vmatprep.subr.bf16.mxu0 %v3968_v19 }
 0x3b4   :  { %4225 = vmatprep.subr.bf16.mxu1 %v4224_v10 }
 0x3b6   :  { %3971 = vmatpush1.bf16.msra.mxu0 %v3970_v15 }
 0x3b7   :  { %4227 = vmatpush1.bf16.msra.mxu1 %v4226_v48  ;;  %3973 = vmatprep.subr.bf16.mxu0 %v3972_v16 }
 0x3b8   :  { %4229 = vmatprep.subr.bf16.mxu1 %v4228_v20 }
 0x3ba   :  { %3975 = vmatpush1.bf16.msra.mxu0 %v3974_v27 }
 0x3bb   :  { %4231 = vmatpush1.bf16.msra.mxu1 %v4230_v28  ;;  %3977 = vmatprep.subr.bf16.mxu0 %v3976_v31 }
 0x3bc   :  { %4233 = vmatprep.subr.bf16.mxu1 %v4232_v36 }
 0x3be   :  { %3979 = vmatpush1.bf16.msra.mxu0 %v3978_v44 }
 0x3bf   :  { %4235 = vmatpush1.bf16.msra.mxu1 %v4234_v45  ;;  %3981 = vmatprep.subr.bf16.mxu0 %v3980_v46 }
 0x3c0   :  { %4237 = vmatprep.subr.bf16.mxu1 %v4236_v49 }
 0x3c2   :  { %3983 = vmatpush1.bf16.msra.mxu0 %v3982_v52 }
 0x3c3   :  { %4239 = vmatpush1.bf16.msra.mxu1 %v4238_v30  ;;  %2863 = vmatprep.subr.mxu0 %v4568_v1 }
 0x3c4   :  { %2934 = vmatprep.subr.mxu1 %v4570_v63 }
 0x3c5   :  { %2573 = vmatmul.mubr.f32.vlgmr.msra.gmra.mrb[10].mxu0 %v4546_v61 }
 0x3c6   :  { %2857 = vmatmul.mubr.f32.vlgmr.msra.gmra.mrb[10].mxu1 %v4546_v61  ;;  %2864 = vmatpush1.msra.mxu0 %v4564_v56 }
 0x3c7   :  { %2935 = vmatpush1.msra.mxu1 %v4566_v57  ;;  %2927 = vmatprep.mubr.f32.mxu0 %v4397_v0 }
 0x3c8   :  { %2998 = vmatprep.mubr.f32.mxu1 %v4397_v0 }
 0x3c9   :  { %3180 = vmatmul.mubr.msk.f32.vlgmr.msra.gmra.mrb[12].mxu0 %vm391_vm1, %v4272_v53 }
 0x3ca   :  { %3181 = vmatmul.mubr.msk.f32.vlgmr.msra.gmra.mrb[12].mxu1 %vm391_vm1, %v4272_v53  ;;  %3069 = vmatprep.mubr.f32.mxu0 %v4397_v0 }
 0x3cb   :  { %3140 = vmatprep.mubr.f32.mxu1 %v4397_v0 }
 0x498   :  { %v2574_v1 = vpop.f32.mrb[10].mxu0 }
 0x499   :  { %v2858_v63 = vpop.f32.mrb[10].mxu1  ;;  %v2576_v61 = vpop.f32.mrb[11].mxu0 }
 0x49a   :  { %v2860_v38 = vpop.f32.mrb[11].mxu1  ;;  %3005 = vmatprep.subr.mxu0 %v2576_v61 }
 0x49b   :  { %3076 = vmatprep.subr.mxu1 %v2860_v38  ;;  %3006 = vmatpush1.msra.mxu0 %v2574_v1 }
 0x49c   :  { %3077 = vmatpush1.msra.mxu1 %v2858_v63  ;;  %3182 = vmatmul.mubr.msk.f32.vlgmr.msra.gmra.mrb[14].mxu0 %vm391_vm1, %v4272_v53  ;;  %v2929_v56 = vpop.f32.mrb[12].mxu0 }
 0x49d   :  { %3183 = vmatmul.mubr.msk.f32.vlgmr.msra.gmra.mrb[14].mxu1 %vm391_vm1, %v4272_v53  ;;  %3147 = vst [vmem:[#allocation10] sm:$0xff] %v2929_v56  ;;  %v3000_v57 = vpop.f32.mrb[12].mxu1  ;;  %v2931_v54 = vpop.f32.mrb[13].mxu0 }
 0x49e   :  { %3149 = vst [vmem:[#allocation10 + $0x10] sm:$0xff] %v3000_v57  ;;  %3148 = vst [vmem:[#allocation10 + $0x8] sm:$0xff] %v2931_v54  ;;  %v3002_v55 = vpop.f32.mrb[13].mxu1 }
 0x49f   :  { %3150 = vst [vmem:[#allocation10 + $0x18] sm:$0xff] %v3002_v55 }
 0x56f   :  { %v3071_v0 = vpop.f32.mrb[14].mxu0 }
 0x570   :  { %3151 = vst [vmem:[#allocation10 + $0x20] sm:$0xff] %v3071_v0  ;;  %v3142_v58 = vpop.f32.mrb[14].mxu1  ;;  %v3073_v59 = vpop.f32.mrb[15].mxu0 }
 0x571   :  { %3153 = vst [vmem:[#allocation10 + $0x30] sm:$0xff] %v3142_v58  ;;  %3152 = vst [vmem:[#allocation10 + $0x28] sm:$0xff] %v3073_v59  ;;  %v3144_v60 = vpop.f32.mrb[15].mxu1 }
 0x572   :  { %3154 = vst [vmem:[#allocation10 + $0x38] sm:$0xff] %v3144_v60 }
 0x573   :  { %4372 = shalt.err (!%p4369_p8)
}
 0x574   :  { %s4373_s13 = scalar_lea.hbm %s4602_s4, 1024 }
 0x575   :  { %p4374_p9 = scmp.ne.s32.totalorder %s4602_s4, %s4373_s13  ;;  %p4377_p10 = scmp.lt.u32.totalorder %s4373_s13, %s4602_s4 }
 0x577   :  { %p4379_p11 = pnand %p4377_p10, %p4374_p9 }
 0x579   :  { %4382 = shalt.err (!%p4379_p11)
}
 0x57a   :  { %3164 = dma.vmem_to_hbm [thread:$0]  %s3162_s10, 1024, %s4602_s4, [#allocation4]  }
 0x57b   :  { %4389 = dma.done.wait [#allocation4], 1024  }
 0x57c   :  { %4390 = vsyncadd [#allocation4], 4294966272 }
 0x57d   :  { %3168 = vsyncpa [#allocation3], 1 }
 0x57e   :  { %3169 = vsyncpa [#allocation6], 1 }
 0x57f   :  { %3170 = vsyncpa [#allocation9], 1 }
 0x580   :  { %3171 = vsyncpa [#allocation4], 1 }

</bundles_post_ra>
